<compile_context>
chip_gen: v7x
topology: tpu7x:2x2x1
jax: 0.10.0
libtpu: 0.0.40
codegen_flags: <defaults>
</compile_context>

<pallas_src>
import numpy as np
import jax
import jax.numpy as jnp
from jax import lax
from jax.experimental import pallas as pl
from jax.experimental.pallas import tpu as pltpu

COMPUTE_DTYPE = jnp.bfloat16        # MXU operand dtype (f32 accumulation everywhere)
LN_EPS = 1e-5
TILE_ROWS_MLP = 512                 # row tile for encoder/decoder MLP kernel
TILE_EDGES = 256                    # edge-update row tile (multiple of 128)
TILE_NODES = 256                    # node-update row tile (multiple of 128)
TILE_GRAPHS = 128                   # global-update row tile


def _vmem_limit_bytes():
    # Per-generation scoped-VMEM budget (review item: ~0.75 * physical, capped).
    try:
        info = pltpu.get_tpu_info()
        cap = getattr(info, "vmem_capacity_bytes", None)
        if cap:
            return min(int(cap) * 3 // 4, 100 * 1024 * 1024)
    except Exception:
        pass
    return 64 * 1024 * 1024


_VMEM_LIMIT = _vmem_limit_bytes()


def _compiler_params():
    return pltpu.CompilerParams(dimension_semantics=("parallel",),
                                vmem_limit_bytes=_VMEM_LIMIT)


def _pick_tile(rows, max_tile):
    # Full rows if small (block == full dim is always legal); otherwise a multiple of 128.
    return rows if rows <= max_tile else max_tile


# ---------------------------------------------------------------------------
# Shared kernel tails
# ---------------------------------------------------------------------------
def _ln_epilogue(y, ep):
    # ep rows = [b2, gamma, beta] packed as (3, H) -> single DMA.
    y = y + ep[0:1, :]
    mu = jnp.mean(y, axis=-1, keepdims=True)
    var = jnp.mean(jnp.square(y - mu), axis=-1, keepdims=True)
    return (y - mu) * lax.rsqrt(var + LN_EPS) * ep[1:2, :] + ep[2:3, :]


def _mlp_tail(pieces, w1_ref, b1_ref, w2_ref, ep_ref, o_ref):
    # Layer 1 as row-block partial dots against W1 (offsets are multiples of 8 for H=16),
    # bf16 operands / f32 accumulation; then ReLU, layer 2, f32 LayerNorm epilogue.
    h = b1_ref[...]
    off = 0
    for p in pieces:
        k = p.shape[1]
        h = h + jnp.dot(p.astype(COMPUTE_DTYPE), w1_ref[off:off + k, :],
                        preferred_element_type=jnp.float32)
        off += k
    h = jnp.maximum(h, 0.0)
    y = jnp.dot(h.astype(COMPUTE_DTYPE), w2_ref[...],
                preferred_element_type=jnp.float32)
    o_ref[...] = _ln_epilogue(y, ep_ref[...])


def _onehot(iota, ids_row):
    # bf16 one-hot selection mask (exact 0/1 values).
    return (iota == ids_row).astype(jnp.float32).astype(COMPUTE_DTYPE)


def _gather_dot(mask, table_ref):
    # (rows, T) one-hot contracted over `rows` with a resident (rows, F) table -> (T, F).
    return lax.dot_general(mask, table_ref[...].astype(COMPUTE_DTYPE),
                           (((0,), (0,)), ((), ())),
                           preferred_element_type=jnp.float32)


# ---------------------------------------------------------------------------
# Kernel 1: row-tiled MLP (Linear -> ReLU -> Linear -> LayerNorm)  (encoders/decoders)
# ---------------------------------------------------------------------------
def _mlp_ln_kernel(x_ref, w1_ref, b1_ref, w2_ref, ep_ref, o_ref):
    _mlp_tail((x_ref[...],), w1_ref, b1_ref, w2_ref, ep_ref, o_ref)


def pallas_mlp(x, pp):
    w1c, b1, w2c, ep = pp
    m, d_in = x.shape
    h1, h2 = w1c.shape[1], w2c.shape[1]
    tm = _pick_tile(m, TILE_ROWS_MLP)

    def row(i):
        return (i, 0)

    def const(i):
        return (0, 0)

    return pl.pallas_call(
        _mlp_ln_kernel,
        out_shape=jax.ShapeDtypeStruct((m, h2), jnp.float32),
        grid_spec=pltpu.PrefetchScalarGridSpec(
            num_scalar_prefetch=0,
            grid=(pl.cdiv(m, tm),),
            in_specs=[
                pl.BlockSpec((tm, d_in), row),
                pl.BlockSpec((d_in, h1), const),
                pl.BlockSpec((1, h1), const),
                pl.BlockSpec((h1, h2), const),
                pl.BlockSpec((3, h2), const),
            ],
            out_specs=pl.BlockSpec((tm, h2), row),
        ),
        compiler_params=_compiler_params(),
    )(x, w1c, b1, w2c, ep)


# ---------------------------------------------------------------------------
# Kernel 2: fused, tiled edge update  (gather + marshalling + edge MLP)
# ---------------------------------------------------------------------------
def _edge_update_kernel(recv_ref, send_ref, egid_ref,
                        lat_n_ref, cur_n_ref,
                        lat_e_ref, cur_e_ref,
                        lat_g_ref, cur_g_ref,
                        w1_ref, b1_ref, w2_ref, ep_ref, o_ref):
    n_rows = lat_n_ref.shape[0]
    g_rows = lat_g_ref.shape[0]
    te = o_ref.shape[0]

    n_iota = lax.broadcasted_iota(jnp.int32, (n_rows, te), 0)
    g_iota = lax.broadcasted_iota(jnp.int32, (g_rows, te), 0)
    mr = _onehot(n_iota, recv_ref[...])     # (N, TE)
    ms = _onehot(n_iota, send_ref[...])     # (N, TE)
    mg = _onehot(g_iota, egid_ref[...])     # (G, TE)

    # W1 row-block order = [nodes_c[recv] | nodes_c[send] | edges_c | globs_c[egid]]
    pieces = (_gather_dot(mr, lat_n_ref), _gather_dot(mr, cur_n_ref),
              _gather_dot(ms, lat_n_ref), _gather_dot(ms, cur_n_ref),
              lat_e_ref[...], cur_e_ref[...],
              _gather_dot(mg, lat_g_ref), _gather_dot(mg, cur_g_ref))
    _mlp_tail(pieces, w1_ref, b1_ref, w2_ref, ep_ref, o_ref)


def pallas_edge_update(lat_n, cur_n, lat_e, cur_e, lat_g, cur_g,
                       recv_row, send_row, egid_row, pp):
    w1c, b1, w2c, ep = pp
    e_rows = cur_e.shape[0]
    n_rows = cur_n.shape[0]
    g_rows = cur_g.shape[0]
    h1, h2 = w1c.shape[1], w2c.shape[1]
    te = _pick_tile(e_rows, TILE_EDGES)

    def idrow(i):
        return (0, i)

    def erow(i):
        return (i, 0)

    def const(i):
        return (0, 0)

    return pl.pallas_call(
        _edge_update_kernel,
        out_shape=jax.ShapeDtypeStruct((e_rows, h2), jnp.float32),
        grid_spec=pltpu.PrefetchScalarGridSpec(
            num_scalar_prefetch=0,
            grid=(pl.cdiv(e_rows, te),),
            in_specs=[
                pl.BlockSpec((1, te), idrow),                       # receivers (lane-major)
                pl.BlockSpec((1, te), idrow),                       # senders
                pl.BlockSpec((1, te), idrow),                       # per-edge graph ids
                pl.BlockSpec((n_rows, lat_n.shape[1]), const),      # latent nodes (resident)
                pl.BlockSpec((n_rows, cur_n.shape[1]), const),      # current nodes (resident)
                pl.BlockSpec((te, lat_e.shape[1]), erow),           # latent edge tile
                pl.BlockSpec((te, cur_e.shape[1]), erow),           # current edge tile
                pl.BlockSpec((g_rows, lat_g.shape[1]), const),      # latent globals
                pl.BlockSpec((g_rows, cur_g.shape[1]), const),      # current globals
                pl.BlockSpec((w1c.shape[0], h1), const),
                pl.BlockSpec((1, h1), const),
                pl.BlockSpec((h1, h2), const),
                pl.BlockSpec((3, h2), const),
            ],
            out_specs=pl.BlockSpec((te, h2), erow),
        ),
        compiler_params=_compiler_params(),
    )(recv_row, send_row, egid_row, lat_n, cur_n, lat_e, cur_e, lat_g, cur_g,
      w1c, b1, w2c, ep)


# ---------------------------------------------------------------------------
# Kernel 3: fused, tiled node update  (receiver segment-sum + global gather + node MLP)
# ---------------------------------------------------------------------------
def _node_update_kernel(ngid_ref, recv_ref,
                        lat_n_ref, cur_n_ref, enew_ref,
                        lat_g_ref, cur_g_ref,
                        w1_ref, b1_ref, w2_ref, ep_ref, o_ref):
    tn = o_ref.shape[0]
    e_rows = enew_ref.shape[0]
    g_rows = lat_g_ref.shape[0]
    n0 = pl.program_id(0) * tn

    # Receiver segment-sum: (TILE_N, E) bf16 mask x resident (E, He) edge table.
    node_ids = lax.broadcasted_iota(jnp.int32, (tn, e_rows), 0) + n0
    amask = _onehot(node_ids, recv_ref[...])
    agg = jnp.dot(amask, enew_ref[...].astype(COMPUTE_DTYPE),
                  preferred_element_type=jnp.float32)              # (TN, He)

    # Per-node global gather.
    g_iota = lax.broadcasted_iota(jnp.int32, (g_rows, tn), 0)
    gmask = _onehot(g_iota, ngid_ref[...])                          # (G, TN)

    # W1 row-block order = [nodes_c | agg | globs_c[ngid]]
    pieces = (lat_n_ref[...], cur_n_ref[...], agg,
              _gather_dot(gmask, lat_g_ref), _gather_dot(gmask, cur_g_ref))
    _mlp_tail(pieces, w1_ref, b1_ref, w2_ref, ep_ref, o_ref)


def pallas_node_update(lat_n, cur_n, edges_new, lat_g, cur_g,
                       ngid_row, recv_row, pp):
    w1c, b1, w2c, ep = pp
    n_rows = cur_n.shape[0]
    e_rows = edges_new.shape[0]
    g_rows = cur_g.shape[0]
    h1, h2 = w1c.shape[1], w2c.shape[1]
    tn = _pick_tile(n_rows, TILE_NODES)

    def idrow(i):
        return (0, i)

    def nrow(i):
        return (i, 0)

    def const(i):
        return (0, 0)

    return pl.pallas_call(
        _node_update_kernel,
        out_shape=jax.ShapeDtypeStruct((n_rows, h2), jnp.float32),
        grid_spec=pltpu.PrefetchScalarGridSpec(
            num_scalar_prefetch=0,
            grid=(pl.cdiv(n_rows, tn),),
            in_specs=[
                pl.BlockSpec((1, tn), idrow),                       # per-node graph ids
                pl.BlockSpec((1, e_rows), const),                   # receivers (full, resident)
                pl.BlockSpec((tn, lat_n.shape[1]), nrow),           # latent node tile
                pl.BlockSpec((tn, cur_n.shape[1]), nrow),           # current node tile
                pl.BlockSpec((e_rows, edges_new.shape[1]), const),  # new edge table (resident)
                pl.BlockSpec((g_rows, lat_g.shape[1]), const),
                pl.BlockSpec((g_rows, cur_g.shape[1]), const),
                pl.BlockSpec((w1c.shape[0], h1), const),
                pl.BlockSpec((1, h1), const),
                pl.BlockSpec((h1, h2), const),
                pl.BlockSpec((3, h2), const),
            ],
            out_specs=pl.BlockSpec((tn, h2), nrow),
        ),
        compiler_params=_compiler_params(),
    )(ngid_row, recv_row, lat_n, cur_n, edges_new, lat_g, cur_g,
      w1c, b1, w2c, ep)


# ---------------------------------------------------------------------------
# Kernel 4: fused, tiled global update  (node/edge aggregation + global MLP)
# ---------------------------------------------------------------------------
def _global_update_kernel(ngid_ref, egid_ref,
                          lat_g_ref, cur_g_ref,
                          nnew_ref, enew_ref,
                          w1_ref, b1_ref, w2_ref, ep_ref, o_ref):
    tg = o_ref.shape[0]
    n_rows = nnew_ref.shape[0]
    e_rows = enew_ref.shape[0]
    g0 = pl.program_id(0) * tg

    n_ids = lax.broadcasted_iota(jnp.int32, (tg, n_rows), 0) + g0
    e_ids = lax.broadcasted_iota(jnp.int32, (tg, e_rows), 0) + g0
    nmask = _onehot(n_ids, ngid_ref[...])
    emask = _onehot(e_ids, egid_ref[...])
    nagg = jnp.dot(nmask, nnew_ref[...].astype(COMPUTE_DTYPE),
                   preferred_element_type=jnp.float32)              # (TG, Hn)
    eagg = jnp.dot(emask, enew_ref[...].astype(COMPUTE_DTYPE),
                   preferred_element_type=jnp.float32)              # (TG, He)

    # W1 row-block order = [globs_c | nodes_agg | edges_agg]
    pieces = (lat_g_ref[...], cur_g_ref[...], nagg, eagg)
    _mlp_tail(pieces, w1_ref, b1_ref, w2_ref, ep_ref, o_ref)


def pallas_global_update(lat_g, cur_g, nodes_new, edges_new,
                         ngid_row, egid_row, pp):
    w1c, b1, w2c, ep = pp
    g_rows = cur_g.shape[0]
    n_rows = nodes_new.shape[0]
    e_rows = edges_new.shape[0]
    h1, h2 = w1c.shape[1], w2c.shape[1]
    tg = _pick_tile(g_rows, TILE_GRAPHS)

    def grow(i):
        return (i, 0)

    def const(i):
        return (0, 0)

    return pl.pallas_call(
        _global_update_kernel,
        out_shape=jax.ShapeDtypeStruct((g_rows, h2), jnp.float32),
        grid_spec=pltpu.PrefetchScalarGridSpec(
            num_scalar_prefetch=0,
            grid=(pl.cdiv(g_rows, tg),),
            in_specs=[
                pl.BlockSpec((1, n_rows), const),                   # per-node graph ids
                pl.BlockSpec((1, e_rows), const),                   # per-edge graph ids
                pl.BlockSpec((tg, lat_g.shape[1]), grow),
                pl.BlockSpec((tg, cur_g.shape[1]), grow),
                pl.BlockSpec((n_rows, nodes_new.shape[1]), const),  # new node table (resident)
                pl.BlockSpec((e_rows, edges_new.shape[1]), const),  # new edge table (resident)
                pl.BlockSpec((w1c.shape[0], h1), const),
                pl.BlockSpec((1, h1), const),
                pl.BlockSpec((h1, h2), const),
                pl.BlockSpec((3, h2), const),
            ],
            out_specs=pl.BlockSpec((tg, h2), grow),
        ),
        compiler_params=_compiler_params(),
    )(ngid_row, egid_row, lat_g, cur_g, nodes_new, edges_new,
      w1c, b1, w2c, ep)


# ---------------------------------------------------------------------------
# Parameter prep (hoisted out of the step loop: bf16 casts + [b2;gamma;beta] pack)
# ---------------------------------------------------------------------------
def _prep(p):
    w1, b1, w2, b2, gamma, beta = p
    return (w1.astype(COMPUTE_DTYPE), b1, w2.astype(COMPUTE_DTYPE),
            jnp.concatenate([b2, gamma, beta], axis=0))


# ---------------------------------------------------------------------------
# Pallas forward core (jittable: segment ids are precomputed outside)
# ---------------------------------------------------------------------------
def _epd_core_pallas(params, nodes_in, edges_in, globs_in,
                     recv, send, ngid, egid, num_steps):
    pe = {k: _prep(v) for k, v in params.items()}

    nodes = pallas_mlp(nodes_in, pe["node_encoder"])
    edges = pallas_mlp(edges_in, pe["edge_encoder"])
    globs = pallas_mlp(globs_in, pe["global_encoder"])

    # Lane-major id rows (review: no (E,1)/(N,1) int32 VMEM columns).
    recv_row = recv[None, :]
    send_row = send[None, :]
    ngid_row = ngid[None, :]
    egid_row = egid[None, :]

    lat_n, lat_e, lat_g = nodes, edges, globs
    outs = []
    for _ in range(num_steps):
        edges = pallas_edge_update(lat_n, nodes, lat_e, edges, lat_g, globs,
                                   recv_row, send_row, egid_row, pe["edge_model"])
        nodes = pallas_node_update(lat_n, nodes, edges, lat_g, globs,
                                   ngid_row, recv_row, pe["node_model"])
        globs = pallas_global_update(lat_g, globs, nodes, edges,
                                     ngid_row, egid_row, pe["global_model"])
        outs.append((pallas_mlp(nodes, pe["node_decoder"]),
                     pallas_mlp(edges, pe["edge_decoder"]),
                     pallas_mlp(globs, pe["global_decoder"])))
    return outs


_epd_core_pallas_jit = jax.jit(_epd_core_pallas, static_argnums=(8,))


# ---------------------------------------------------------------------------
# Pure-JAX reference with identical bf16/f32 precision policy (self-check)
# ---------------------------------------------------------------------------
def ref_mlp(x, p):
    w1, b1, w2, b2, g, b = p
    h = jnp.dot(x.astype(COMPUTE_DTYPE), w1.astype(COMPUTE_DTYPE),
                preferred_element_type=jnp.float32) + b1
    h = jnp.maximum(h, 0.0)
    y = jnp.dot(h.astype(COMPUTE_DTYPE), w2.astype(COMPUTE_DTYPE),
                preferred_element_type=jnp.float32) + b2
    mu = y.mean(-1, keepdims=True)
    var = ((y - mu) ** 2).mean(-1, keepdims=True)
    return (y - mu) * lax.rsqrt(var + LN_EPS) * g + b


def _ref_seg_sum(ids, table, num_segments):
    # Mirrors the kernels: bf16 one-hot mask, bf16 features, f32 accumulation.
    mask = (ids[:, None] == jnp.arange(num_segments)[None, :]).astype(COMPUTE_DTYPE)
    return lax.dot_general(mask, table.astype(COMPUTE_DTYPE),
                           (((0,), (0,)), ((), ())),
                           preferred_element_type=jnp.float32)


def _epd_core_ref(params, nodes_in, edges_in, globs_in,
                  recv, send, ngid, egid, num_steps):
    nodes = ref_mlp(nodes_in, params["node_encoder"])
    edges = ref_mlp(edges_in, params["edge_encoder"])
    globs = ref_mlp(globs_in, params["global_encoder"])
    n_rows, g_rows = nodes.shape[0], globs.shape[0]

    lat_n, lat_e, lat_g = nodes, edges, globs
    outs = []
    for _ in range(num_steps):
        nodes_c = jnp.concatenate([lat_n, nodes], axis=1)
        edges_c = jnp.concatenate([lat_e, edges], axis=1)
        globs_c = jnp.concatenate([lat_g, globs], axis=1)

        edge_in = jnp.concatenate(
            [nodes_c[recv], nodes_c[send], edges_c, globs_c[egid]], axis=1)
        edges = ref_mlp(edge_in, params["edge_model"])

        agg = _ref_seg_sum(recv, edges, n_rows)
        node_in = jnp.concatenate([nodes_c, agg, globs_c[ngid]], axis=1)
        nodes = ref_mlp(node_in, params["node_model"])

        nagg = _ref_seg_sum(ngid, nodes, g_rows)
        eagg = _ref_seg_sum(egid, edges, g_rows)
        globs = ref_mlp(jnp.concatenate([globs_c, nagg, eagg], axis=1),
                        params["global_model"])

        outs.append((ref_mlp(nodes, params["node_decoder"]),
                     ref_mlp(edges, params["edge_decoder"]),
                     ref_mlp(globs, params["global_decoder"])))
    return outs


# ---------------------------------------------------------------------------
# Top-level EncodeProcessDecode.forward
# ---------------------------------------------------------------------------
def epd_forward(graph, params, num_steps, core_fn):
    # np.repeat on concrete counts, exactly as the torch code does (.cpu()).
    n_node = np.asarray(graph["n_node"]).reshape(-1)
    n_edge = np.asarray(graph["n_edge"]).reshape(-1)
    num_graphs = len(n_node)
    ngid = jnp.asarray(np.repeat(np.arange(num_graphs), n_node), jnp.int32)
    egid = jnp.asarray(np.repeat(np.arange(num_graphs), n_edge), jnp.int32)
    recv = jnp.asarray(graph["receivers"], jnp.int32).reshape(-1)
    send = jnp.asarray(graph["senders"], jnp.int32).reshape(-1)

    outs = core_fn(params, graph["nodes"], graph["edges"], graph["globals"],
                   recv, send, ngid, egid, num_steps)
    return [{"nodes": n, "edges": e, "globals": g,
             "receivers": graph["receivers"], "senders": graph["senders"],
             "n_node": graph["n_node"], "n_edge": graph["n_edge"]}
            for (n, e, g) in outs]


# ---------------------------------------------------------------------------
# Deterministic parameter init (mirrors the MLP shapes in __init__)
# ---------------------------------------------------------------------------
def init_mlp(key, d_in, h1, h2):
    k1, k2, k3, k4, k5, k6 = jax.random.split(key, 6)
    w1 = jax.random.normal(k1, (d_in, h1), jnp.float32) / np.sqrt(d_in)
    b1 = 0.01 * jax.random.normal(k2, (1, h1), jnp.float32)
    w2 = jax.random.normal(k3, (h1, h2), jnp.float32) / np.sqrt(h1)
    b2 = 0.01 * jax.random.normal(k4, (1, h2), jnp.float32)
    gamma = 1.0 + 0.05 * jax.random.normal(k5, (1, h2), jnp.float32)
    beta = 0.05 * jax.random.normal(k6, (1, h2), jnp.float32)
    return (w1, b1, w2, b2, gamma, beta)


if __name__ == "__main__":
    # dims = [node_dim=6, edge_dim=4, global_dim=3], hidden H=16, decoder width 8,
    # num_steps = 2 ; two graphs with 3+5 nodes and 4+4 edges.
    NODE_DIM, EDGE_DIM, GLOB_DIM, H, DEC, NUM_STEPS = 6, 4, 3, 16, 8, 2

    key = jax.random.PRNGKey(0)
    keys = jax.random.split(key, 16)

    params = {
        "node_encoder":   init_mlp(keys[0], NODE_DIM, H, H),
        "edge_encoder":   init_mlp(keys[1], EDGE_DIM, H, H),
        "global_encoder": init_mlp(keys[2], GLOB_DIM, H, H),
        "edge_model":     init_mlp(keys[3], 2 * (2 * H) + 2 * H + 2 * H, H, H),   # 128
        "node_model":     init_mlp(keys[4], 2 * H + H + 2 * H, H, H),             # 80
        "global_model":   init_mlp(keys[5], 2 * H + H + H, H, H),                 # 64
        "node_decoder":   init_mlp(keys[6], H, DEC, DEC),
        "edge_decoder":   init_mlp(keys[7], H, DEC, DEC),
        "global_decoder": init_mlp(keys[8], H, DEC, DEC),
    }

    n_node = np.array([3, 5], dtype=np.int32)
    n_edge = np.array([4, 4], dtype=np.int32)
    N, E, G = int(n_node.sum()), int(n_edge.sum()), 2
    receivers = np.array([0, 1, 2, 0, 3, 4, 5, 6], dtype=np.int32)
    senders = np.array([1, 2, 0, 2, 4, 5, 6, 7], dtype=np.int32)

    graph = {
        "nodes":   jax.random.normal(keys[9], (N, NODE_DIM), jnp.float32),
        "edges":   jax.random.normal(keys[10], (E, EDGE_DIM), jnp.float32),
        "globals": jax.random.normal(keys[11], (G, GLOB_DIM), jnp.float32),
        "receivers": jnp.asarray(receivers),
        "senders":   jnp.asarray(senders),
        "n_node": n_node,
        "n_edge": n_edge,
    }

    # Pallas forward (whole multi-step forward compiled in one jit).
    out_pallas = epd_forward(graph, params, NUM_STEPS, _epd_core_pallas_jit)
    jax.block_until_ready([o["nodes"] for o in out_pallas])

    # Self-check against a pure-JAX reference with the same precision policy.
    out_ref = epd_forward(graph, params, NUM_STEPS, _epd_core_ref)
    for op, orf in zip(out_pallas, out_ref):
        for k in ("nodes", "edges", "globals"):
            np.testing.assert_allclose(np.asarray(op[k]), np.asarray(orf[k]),
                                       rtol=1e-3, atol=1e-3)

    print("KERNEL_OK")
</pallas_src>

<mosaic_0001>
module attributes {stable_mosaic.version = 11 : i64} {
  func.func @_mlp_ln_kernel(%arg0: i32, %arg1: memref<2x3xf32, #tpu.memory_space<vmem>>, %arg2: memref<3x16xbf16, #tpu.memory_space<vmem>>, %arg3: memref<1x16xf32, #tpu.memory_space<vmem>>, %arg4: memref<16x16xbf16, #tpu.memory_space<vmem>>, %arg5: memref<3x16xf32, #tpu.memory_space<vmem>>, %arg6: memref<2x16xf32, #tpu.memory_space<vmem>>) attributes {dimension_semantics = [#tpu.dimension_semantics<parallel>], iteration_bounds = array<i64: 1>, scalar_prefetch = 0 : i64, scratch_operands = 0 : i64, tpu.core_type = #tpu.core_type<tc>, window_params = [{transform_indices = @transform_0, window_bounds = array<i64: 2, 3>}, {pipeline_mode = #tpu.pipeline_mode<synchronous>, transform_indices = @transform_1, window_bounds = array<i64: 3, 16>}, {pipeline_mode = #tpu.pipeline_mode<synchronous>, transform_indices = @transform_2, window_bounds = array<i64: 1, 16>}, {pipeline_mode = #tpu.pipeline_mode<synchronous>, transform_indices = @transform_3, window_bounds = array<i64: 16, 16>}, {pipeline_mode = #tpu.pipeline_mode<synchronous>, transform_indices = @transform_4, window_bounds = array<i64: 3, 16>}, {transform_indices = @transform_5, window_bounds = array<i64: 2, 16>}]} {
    %c0 = arith.constant 0 : index
    %c0_0 = arith.constant 0 : index
    %0 = vector.load %arg1[%c0, %c0_0] : memref<2x3xf32, #tpu.memory_space<vmem>>, vector<2x3xf32>
    %c0_1 = arith.constant 0 : index
    %c0_2 = arith.constant 0 : index
    %1 = vector.load %arg3[%c0_1, %c0_2] : memref<1x16xf32, #tpu.memory_space<vmem>>, vector<1x16xf32>
    %2 = arith.truncf %0 : vector<2x3xf32> to vector<2x3xbf16>
    %c0_3 = arith.constant 0 : index
    %c0_4 = arith.constant 0 : index
    %3 = vector.load %arg2[%c0_3, %c0_4] : memref<3x16xbf16, #tpu.memory_space<vmem>>, vector<3x16xbf16>
    %cst = arith.constant dense<0.000000e+00> : vector<2x16xf32>
    %4 = tpu.matmul %2, %3, %cst {dimension_numbers = #tpu.dot_dimension_numbers<[1], [0], [0], [1], [0, 0, 1, 1], [], []>} : vector<2x3xbf16>, vector<3x16xbf16>, vector<2x16xf32> -> vector<2x16xf32>
    %5 = vector.broadcast %1 : vector<1x16xf32> to vector<2x16xf32>
    %6 = arith.addf %5, %4 : vector<2x16xf32>
    %cst_5 = arith.constant 0.000000e+00 : f32
    %7 = vector.broadcast %cst_5 : f32 to vector<2x16xf32>
    %8 = arith.maximumf %6, %7 : vector<2x16xf32>
    %9 = arith.truncf %8 : vector<2x16xf32> to vector<2x16xbf16>
    %c0_6 = arith.constant 0 : index
    %c0_7 = arith.constant 0 : index
    %10 = vector.load %arg4[%c0_6, %c0_7] : memref<16x16xbf16, #tpu.memory_space<vmem>>, vector<16x16xbf16>
    %cst_8 = arith.constant dense<0.000000e+00> : vector<2x16xf32>
    %11 = tpu.matmul %9, %10, %cst_8 {dimension_numbers = #tpu.dot_dimension_numbers<[1], [0], [0], [1], [0, 0, 1, 1], [], []>} : vector<2x16xbf16>, vector<16x16xbf16>, vector<2x16xf32> -> vector<2x16xf32>
    %c0_9 = arith.constant 0 : index
    %c0_10 = arith.constant 0 : index
    %12 = vector.load %arg5[%c0_9, %c0_10] : memref<3x16xf32, #tpu.memory_space<vmem>>, vector<3x16xf32>
    %13 = vector.extract_strided_slice %12 {offsets = [0, 0], sizes = [1, 16], strides = [1, 1]} : vector<3x16xf32> to vector<1x16xf32>
    %14 = vector.broadcast %13 : vector<1x16xf32> to vector<2x16xf32>
    %15 = arith.addf %11, %14 : vector<2x16xf32>
    %cst_11 = arith.constant dense<0.000000e+00> : vector<2xf32>
    %16 = vector.multi_reduction <add>, %15, %cst_11 [1] : vector<2x16xf32> to vector<2xf32>
    %17 = vector.shape_cast %16 : vector<2xf32> to vector<2x1xf32>
    %cst_12 = arith.constant 1.600000e+01 : f32
    %18 = vector.broadcast %cst_12 : f32 to vector<2x1xf32>
    %19 = arith.divf %17, %18 : vector<2x1xf32>
    %20 = vector.broadcast %19 : vector<2x1xf32> to vector<2x16xf32>
    %21 = arith.subf %15, %20 : vector<2x16xf32>
    %22 = arith.mulf %21, %21 : vector<2x16xf32>
    %cst_13 = arith.constant dense<0.000000e+00> : vector<2xf32>
    %23 = vector.multi_reduction <add>, %22, %cst_13 [1] : vector<2x16xf32> to vector<2xf32>
    %24 = vector.shape_cast %23 : vector<2xf32> to vector<2x1xf32>
    %cst_14 = arith.constant 1.600000e+01 : f32
    %25 = vector.broadcast %cst_14 : f32 to vector<2x1xf32>
    %26 = arith.divf %24, %25 : vector<2x1xf32>
    %27 = vector.broadcast %19 : vector<2x1xf32> to vector<2x16xf32>
    %28 = arith.subf %15, %27 : vector<2x16xf32>
    %cst_15 = arith.constant 9.99999974E-6 : f32
    %29 = vector.broadcast %cst_15 : f32 to vector<2x1xf32>
    %30 = arith.addf %26, %29 : vector<2x1xf32>
    %31 = math.rsqrt %30 : vector<2x1xf32>
    %32 = vector.broadcast %31 : vector<2x1xf32> to vector<2x16xf32>
    %33 = arith.mulf %28, %32 : vector<2x16xf32>
    %34 = vector.extract_strided_slice %12 {offsets = [1, 0], sizes = [1, 16], strides = [1, 1]} : vector<3x16xf32> to vector<1x16xf32>
    %35 = vector.broadcast %34 : vector<1x16xf32> to vector<2x16xf32>
    %36 = arith.mulf %33, %35 : vector<2x16xf32>
    %37 = vector.extract_strided_slice %12 {offsets = [2, 0], sizes = [1, 16], strides = [1, 1]} : vector<3x16xf32> to vector<1x16xf32>
    %38 = vector.broadcast %37 : vector<1x16xf32> to vector<2x16xf32>
    %39 = arith.addf %36, %38 : vector<2x16xf32>
    %c0_16 = arith.constant 0 : index
    %c0_17 = arith.constant 0 : index
    %40 = vector.load %arg6[%c0_16, %c0_17] : memref<2x16xf32, #tpu.memory_space<vmem>>, vector<2x16xf32>
    tpu.vector_store %arg6[%c0_16, %c0_17], %39 {strides = array<i32>} : memref<2x16xf32, #tpu.memory_space<vmem>>, vector<2x16xf32>,
    return
  }
  func.func @transform_0(%arg0: i32) -> (i32, i32) {
    %c0_i32 = arith.constant 0 : i32
    %c0_i32_0 = arith.constant 0 : i32
    return %arg0, %c0_i32 : i32, i32
  }
  func.func @transform_1(%arg0: i32) -> (i32, i32) {
    %c0_i32 = arith.constant 0 : i32
    %c0_i32_0 = arith.constant 0 : i32
    %c0_i32_1 = arith.constant 0 : i32
    return %c0_i32, %c0_i32_0 : i32, i32
  }
  func.func @transform_2(%arg0: i32) -> (i32, i32) {
    %c0_i32 = arith.constant 0 : i32
    %c0_i32_0 = arith.constant 0 : i32
    %c0_i32_1 = arith.constant 0 : i32
    return %c0_i32, %c0_i32_0 : i32, i32
  }
  func.func @transform_3(%arg0: i32) -> (i32, i32) {
    %c0_i32 = arith.constant 0 : i32
    %c0_i32_0 = arith.constant 0 : i32
    %c0_i32_1 = arith.constant 0 : i32
    return %c0_i32, %c0_i32_0 : i32, i32
  }
  func.func @transform_4(%arg0: i32) -> (i32, i32) {
    %c0_i32 = arith.constant 0 : i32
    %c0_i32_0 = arith.constant 0 : i32
    %c0_i32_1 = arith.constant 0 : i32
    return %c0_i32, %c0_i32_0 : i32, i32
  }
  func.func @transform_5(%arg0: i32) -> (i32, i32) {
    %c0_i32 = arith.constant 0 : i32
    %c0_i32_0 = arith.constant 0 : i32
    return %arg0, %c0_i32 : i32, i32
  }
}

module attributes {stable_mosaic.version = 11 : i64} {
  func.func @_mlp_ln_kernel(%arg0: i32, %arg1: memref<8x6xf32, #tpu.memory_space<vmem>>, %arg2: memref<6x16xbf16, #tpu.memory_space<vmem>>, %arg3: memref<1x16xf32, #tpu.memory_space<vmem>>, %arg4: memref<16x16xbf16, #tpu.memory_space<vmem>>, %arg5: memref<3x16xf32, #tpu.memory_space<vmem>>, %arg6: memref<8x16xf32, #tpu.memory_space<vmem>>) attributes {dimension_semantics = [#tpu.dimension_semantics<parallel>], iteration_bounds = array<i64: 1>, scalar_prefetch = 0 : i64, scratch_operands = 0 : i64, tpu.core_type = #tpu.core_type<tc>, window_params = [{transform_indices = @transform_0, window_bounds = array<i64: 8, 6>}, {pipeline_mode = #tpu.pipeline_mode<synchronous>, transform_indices = @transform_1, window_bounds = array<i64: 6, 16>}, {pipeline_mode = #tpu.pipeline_mode<synchronous>, transform_indices = @transform_2, window_bounds = array<i64: 1, 16>}, {pipeline_mode = #tpu.pipeline_mode<synchronous>, transform_indices = @transform_3, window_bounds = array<i64: 16, 16>}, {pipeline_mode = #tpu.pipeline_mode<synchronous>, transform_indices = @transform_4, window_bounds = array<i64: 3, 16>}, {transform_indices = @transform_5, window_bounds = array<i64: 8, 16>}]} {
    %c0 = arith.constant 0 : index
    %c0_0 = arith.constant 0 : index
    %0 = vector.load %arg1[%c0, %c0_0] : memref<8x6xf32, #tpu.memory_space<vmem>>, vector<8x6xf32>
    %c0_1 = arith.constant 0 : index
    %c0_2 = arith.constant 0 : index
    %1 = vector.load %arg3[%c0_1, %c0_2] : memref<1x16xf32, #tpu.memory_space<vmem>>, vector<1x16xf32>
    %2 = arith.truncf %0 : vector<8x6xf32> to vector<8x6xbf16>
    %c0_3 = arith.constant 0 : index
    %c0_4 = arith.constant 0 : index
    %3 = vector.load %arg2[%c0_3, %c0_4] : memref<6x16xbf16, #tpu.memory_space<vmem>>, vector<6x16xbf16>
    %cst = arith.constant dense<0.000000e+00> : vector<8x16xf32>
    %4 = tpu.matmul %2, %3, %cst {dimension_numbers = #tpu.dot_dimension_numbers<[1], [0], [0], [1], [0, 0, 1, 1], [], []>} : vector<8x6xbf16>, vector<6x16xbf16>, vector<8x16xf32> -> vector<8x16xf32>
    %5 = vector.broadcast %1 : vector<1x16xf32> to vector<8x16xf32>
    %6 = arith.addf %5, %4 : vector<8x16xf32>
    %cst_5 = arith.constant 0.000000e+00 : f32
    %7 = vector.broadcast %cst_5 : f32 to vector<8x16xf32>
    %8 = arith.maximumf %6, %7 : vector<8x16xf32>
    %9 = arith.truncf %8 : vector<8x16xf32> to vector<8x16xbf16>
    %c0_6 = arith.constant 0 : index
    %c0_7 = arith.constant 0 : index
    %10 = vector.load %arg4[%c0_6, %c0_7] : memref<16x16xbf16, #tpu.memory_space<vmem>>, vector<16x16xbf16>
    %cst_8 = arith.constant dense<0.000000e+00> : vector<8x16xf32>
    %11 = tpu.matmul %9, %10, %cst_8 {dimension_numbers = #tpu.dot_dimension_numbers<[1], [0], [0], [1], [0, 0, 1, 1], [], []>} : vector<8x16xbf16>, vector<16x16xbf16>, vector<8x16xf32> -> vector<8x16xf32>
    %c0_9 = arith.constant 0 : index
    %c0_10 = arith.constant 0 : index
    %12 = vector.load %arg5[%c0_9, %c0_10] : memref<3x16xf32, #tpu.memory_space<vmem>>, vector<3x16xf32>
    %13 = vector.extract_strided_slice %12 {offsets = [0, 0], sizes = [1, 16], strides = [1, 1]} : vector<3x16xf32> to vector<1x16xf32>
    %14 = vector.broadcast %13 : vector<1x16xf32> to vector<8x16xf32>
    %15 = arith.addf %11, %14 : vector<8x16xf32>
    %cst_11 = arith.constant dense<0.000000e+00> : vector<8xf32>
    %16 = vector.multi_reduction <add>, %15, %cst_11 [1] : vector<8x16xf32> to vector<8xf32>
    %17 = vector.shape_cast %16 : vector<8xf32> to vector<8x1xf32>
    %cst_12 = arith.constant 1.600000e+01 : f32
    %18 = vector.broadcast %cst_12 : f32 to vector<8x1xf32>
    %19 = arith.divf %17, %18 : vector<8x1xf32>
    %20 = vector.broadcast %19 : vector<8x1xf32> to vector<8x16xf32>
    %21 = arith.subf %15, %20 : vector<8x16xf32>
    %22 = arith.mulf %21, %21 : vector<8x16xf32>
    %cst_13 = arith.constant dense<0.000000e+00> : vector<8xf32>
    %23 = vector.multi_reduction <add>, %22, %cst_13 [1] : vector<8x16xf32> to vector<8xf32>
    %24 = vector.shape_cast %23 : vector<8xf32> to vector<8x1xf32>
    %cst_14 = arith.constant 1.600000e+01 : f32
    %25 = vector.broadcast %cst_14 : f32 to vector<8x1xf32>
    %26 = arith.divf %24, %25 : vector<8x1xf32>
    %27 = vector.broadcast %19 : vector<8x1xf32> to vector<8x16xf32>
    %28 = arith.subf %15, %27 : vector<8x16xf32>
    %cst_15 = arith.constant 9.99999974E-6 : f32
    %29 = vector.broadcast %cst_15 : f32 to vector<8x1xf32>
    %30 = arith.addf %26, %29 : vector<8x1xf32>
    %31 = math.rsqrt %30 : vector<8x1xf32>
    %32 = vector.broadcast %31 : vector<8x1xf32> to vector<8x16xf32>
    %33 = arith.mulf %28, %32 : vector<8x16xf32>
    %34 = vector.extract_strided_slice %12 {offsets = [1, 0], sizes = [1, 16], strides = [1, 1]} : vector<3x16xf32> to vector<1x16xf32>
    %35 = vector.broadcast %34 : vector<1x16xf32> to vector<8x16xf32>
    %36 = arith.mulf %33, %35 : vector<8x16xf32>
    %37 = vector.extract_strided_slice %12 {offsets = [2, 0], sizes = [1, 16], strides = [1, 1]} : vector<3x16xf32> to vector<1x16xf32>
    %38 = vector.broadcast %37 : vector<1x16xf32> to vector<8x16xf32>
    %39 = arith.addf %36, %38 : vector<8x16xf32>
    %c0_16 = arith.constant 0 : index
    %c0_17 = arith.constant 0 : index
    %40 = vector.load %arg6[%c0_16, %c0_17] : memref<8x16xf32, #tpu.memory_space<vmem>>, vector<8x16xf32>
    tpu.vector_store %arg6[%c0_16, %c0_17], %39 {strides = array<i32>} : memref<8x16xf32, #tpu.memory_space<vmem>>, vector<8x16xf32>,
    return
  }
  func.func @transform_0(%arg0: i32) -> (i32, i32) {
    %c0_i32 = arith.constant 0 : i32
    %c0_i32_0 = arith.constant 0 : i32
    return %arg0, %c0_i32 : i32, i32
  }
  func.func @transform_1(%arg0: i32) -> (i32, i32) {
    %c0_i32 = arith.constant 0 : i32
    %c0_i32_0 = arith.constant 0 : i32
    %c0_i32_1 = arith.constant 0 : i32
    return %c0_i32, %c0_i32_0 : i32, i32
  }
  func.func @transform_2(%arg0: i32) -> (i32, i32) {
    %c0_i32 = arith.constant 0 : i32
    %c0_i32_0 = arith.constant 0 : i32
    %c0_i32_1 = arith.constant 0 : i32
    return %c0_i32, %c0_i32_0 : i32, i32
  }
  func.func @transform_3(%arg0: i32) -> (i32, i32) {
    %c0_i32 = arith.constant 0 : i32
    %c0_i32_0 = arith.constant 0 : i32
    %c0_i32_1 = arith.constant 0 : i32
    return %c0_i32, %c0_i32_0 : i32, i32
  }
  func.func @transform_4(%arg0: i32) -> (i32, i32) {
    %c0_i32 = arith.constant 0 : i32
    %c0_i32_0 = arith.constant 0 : i32
    %c0_i32_1 = arith.constant 0 : i32
    return %c0_i32, %c0_i32_0 : i32, i32
  }
  func.func @transform_5(%arg0: i32) -> (i32, i32) {
    %c0_i32 = arith.constant 0 : i32
    %c0_i32_0 = arith.constant 0 : i32
    return %arg0, %c0_i32 : i32, i32
  }
}

module attributes {stable_mosaic.version = 11 : i64} {
  func.func @_mlp_ln_kernel(%arg0: i32, %arg1: memref<8x4xf32, #tpu.memory_space<vmem>>, %arg2: memref<4x16xbf16, #tpu.memory_space<vmem>>, %arg3: memref<1x16xf32, #tpu.memory_space<vmem>>, %arg4: memref<16x16xbf16, #tpu.memory_space<vmem>>, %arg5: memref<3x16xf32, #tpu.memory_space<vmem>>, %arg6: memref<8x16xf32, #tpu.memory_space<vmem>>) attributes {dimension_semantics = [#tpu.dimension_semantics<parallel>], iteration_bounds = array<i64: 1>, scalar_prefetch = 0 : i64, scratch_operands = 0 : i64, tpu.core_type = #tpu.core_type<tc>, window_params = [{transform_indices = @transform_0, window_bounds = array<i64: 8, 4>}, {pipeline_mode = #tpu.pipeline_mode<synchronous>, transform_indices = @transform_1, window_bounds = array<i64: 4, 16>}, {pipeline_mode = #tpu.pipeline_mode<synchronous>, transform_indices = @transform_2, window_bounds = array<i64: 1, 16>}, {pipeline_mode = #tpu.pipeline_mode<synchronous>, transform_indices = @transform_3, window_bounds = array<i64: 16, 16>}, {pipeline_mode = #tpu.pipeline_mode<synchronous>, transform_indices = @transform_4, window_bounds = array<i64: 3, 16>}, {transform_indices = @transform_5, window_bounds = array<i64: 8, 16>}]} {
    %c0 = arith.constant 0 : index
    %c0_0 = arith.constant 0 : index
    %0 = vector.load %arg1[%c0, %c0_0] : memref<8x4xf32, #tpu.memory_space<vmem>>, vector<8x4xf32>
    %c0_1 = arith.constant 0 : index
    %c0_2 = arith.constant 0 : index
    %1 = vector.load %arg3[%c0_1, %c0_2] : memref<1x16xf32, #tpu.memory_space<vmem>>, vector<1x16xf32>
    %2 = arith.truncf %0 : vector<8x4xf32> to vector<8x4xbf16>
    %c0_3 = arith.constant 0 : index
    %c0_4 = arith.constant 0 : index
    %3 = vector.load %arg2[%c0_3, %c0_4] : memref<4x16xbf16, #tpu.memory_space<vmem>>, vector<4x16xbf16>
    %cst = arith.constant dense<0.000000e+00> : vector<8x16xf32>
    %4 = tpu.matmul %2, %3, %cst {dimension_numbers = #tpu.dot_dimension_numbers<[1], [0], [0], [1], [0, 0, 1, 1], [], []>} : vector<8x4xbf16>, vector<4x16xbf16>, vector<8x16xf32> -> vector<8x16xf32>
    %5 = vector.broadcast %1 : vector<1x16xf32> to vector<8x16xf32>
    %6 = arith.addf %5, %4 : vector<8x16xf32>
    %cst_5 = arith.constant 0.000000e+00 : f32
    %7 = vector.broadcast %cst_5 : f32 to vector<8x16xf32>
    %8 = arith.maximumf %6, %7 : vector<8x16xf32>
    %9 = arith.truncf %8 : vector<8x16xf32> to vector<8x16xbf16>
    %c0_6 = arith.constant 0 : index
    %c0_7 = arith.constant 0 : index
    %10 = vector.load %arg4[%c0_6, %c0_7] : memref<16x16xbf16, #tpu.memory_space<vmem>>, vector<16x16xbf16>
    %cst_8 = arith.constant dense<0.000000e+00> : vector<8x16xf32>
    %11 = tpu.matmul %9, %10, %cst_8 {dimension_numbers = #tpu.dot_dimension_numbers<[1], [0], [0], [1], [0, 0, 1, 1], [], []>} : vector<8x16xbf16>, vector<16x16xbf16>, vector<8x16xf32> -> vector<8x16xf32>
    %c0_9 = arith.constant 0 : index
    %c0_10 = arith.constant 0 : index
    %12 = vector.load %arg5[%c0_9, %c0_10] : memref<3x16xf32, #tpu.memory_space<vmem>>, vector<3x16xf32>
    %13 = vector.extract_strided_slice %12 {offsets = [0, 0], sizes = [1, 16], strides = [1, 1]} : vector<3x16xf32> to vector<1x16xf32>
    %14 = vector.broadcast %13 : vector<1x16xf32> to vector<8x16xf32>
    %15 = arith.addf %11, %14 : vector<8x16xf32>
    %cst_11 = arith.constant dense<0.000000e+00> : vector<8xf32>
    %16 = vector.multi_reduction <add>, %15, %cst_11 [1] : vector<8x16xf32> to vector<8xf32>
    %17 = vector.shape_cast %16 : vector<8xf32> to vector<8x1xf32>
    %cst_12 = arith.constant 1.600000e+01 : f32
    %18 = vector.broadcast %cst_12 : f32 to vector<8x1xf32>
    %19 = arith.divf %17, %18 : vector<8x1xf32>
    %20 = vector.broadcast %19 : vector<8x1xf32> to vector<8x16xf32>
    %21 = arith.subf %15, %20 : vector<8x16xf32>
    %22 = arith.mulf %21, %21 : vector<8x16xf32>
    %cst_13 = arith.constant dense<0.000000e+00> : vector<8xf32>
    %23 = vector.multi_reduction <add>, %22, %cst_13 [1] : vector<8x16xf32> to vector<8xf32>
    %24 = vector.shape_cast %23 : vector<8xf32> to vector<8x1xf32>
    %cst_14 = arith.constant 1.600000e+01 : f32
    %25 = vector.broadcast %cst_14 : f32 to vector<8x1xf32>
    %26 = arith.divf %24, %25 : vector<8x1xf32>
    %27 = vector.broadcast %19 : vector<8x1xf32> to vector<8x16xf32>
    %28 = arith.subf %15, %27 : vector<8x16xf32>
    %cst_15 = arith.constant 9.99999974E-6 : f32
    %29 = vector.broadcast %cst_15 : f32 to vector<8x1xf32>
    %30 = arith.addf %26, %29 : vector<8x1xf32>
    %31 = math.rsqrt %30 : vector<8x1xf32>
    %32 = vector.broadcast %31 : vector<8x1xf32> to vector<8x16xf32>
    %33 = arith.mulf %28, %32 : vector<8x16xf32>
    %34 = vector.extract_strided_slice %12 {offsets = [1, 0], sizes = [1, 16], strides = [1, 1]} : vector<3x16xf32> to vector<1x16xf32>
    %35 = vector.broadcast %34 : vector<1x16xf32> to vector<8x16xf32>
    %36 = arith.mulf %33, %35 : vector<8x16xf32>
    %37 = vector.extract_strided_slice %12 {offsets = [2, 0], sizes = [1, 16], strides = [1, 1]} : vector<3x16xf32> to vector<1x16xf32>
    %38 = vector.broadcast %37 : vector<1x16xf32> to vector<8x16xf32>
    %39 = arith.addf %36, %38 : vector<8x16xf32>
    %c0_16 = arith.constant 0 : index
    %c0_17 = arith.constant 0 : index
    %40 = vector.load %arg6[%c0_16, %c0_17] : memref<8x16xf32, #tpu.memory_space<vmem>>, vector<8x16xf32>
    tpu.vector_store %arg6[%c0_16, %c0_17], %39 {strides = array<i32>} : memref<8x16xf32, #tpu.memory_space<vmem>>, vector<8x16xf32>,
    return
  }
  func.func @transform_0(%arg0: i32) -> (i32, i32) {
    %c0_i32 = arith.constant 0 : i32
    %c0_i32_0 = arith.constant 0 : i32
    return %arg0, %c0_i32 : i32, i32
  }
  func.func @transform_1(%arg0: i32) -> (i32, i32) {
    %c0_i32 = arith.constant 0 : i32
    %c0_i32_0 = arith.constant 0 : i32
    %c0_i32_1 = arith.constant 0 : i32
    return %c0_i32, %c0_i32_0 : i32, i32
  }
  func.func @transform_2(%arg0: i32) -> (i32, i32) {
    %c0_i32 = arith.constant 0 : i32
    %c0_i32_0 = arith.constant 0 : i32
    %c0_i32_1 = arith.constant 0 : i32
    return %c0_i32, %c0_i32_0 : i32, i32
  }
  func.func @transform_3(%arg0: i32) -> (i32, i32) {
    %c0_i32 = arith.constant 0 : i32
    %c0_i32_0 = arith.constant 0 : i32
    %c0_i32_1 = arith.constant 0 : i32
    return %c0_i32, %c0_i32_0 : i32, i32
  }
  func.func @transform_4(%arg0: i32) -> (i32, i32) {
    %c0_i32 = arith.constant 0 : i32
    %c0_i32_0 = arith.constant 0 : i32
    %c0_i32_1 = arith.constant 0 : i32
    return %c0_i32, %c0_i32_0 : i32, i32
  }
  func.func @transform_5(%arg0: i32) -> (i32, i32) {
    %c0_i32 = arith.constant 0 : i32
    %c0_i32_0 = arith.constant 0 : i32
    return %arg0, %c0_i32 : i32, i32
  }
}

module attributes {stable_mosaic.version = 11 : i64} {
  func.func @_edge_update_kernel(%arg0: i32, %arg1: memref<1x8xi32, #tpu.memory_space<vmem>>, %arg2: memref<1x8xi32, #tpu.memory_space<vmem>>, %arg3: memref<1x8xi32, #tpu.memory_space<vmem>>, %arg4: memref<8x16xf32, #tpu.memory_space<vmem>>, %arg5: memref<8x16xf32, #tpu.memory_space<vmem>>, %arg6: memref<8x16xf32, #tpu.memory_space<vmem>>, %arg7: memref<8x16xf32, #tpu.memory_space<vmem>>, %arg8: memref<2x16xf32, #tpu.memory_space<vmem>>, %arg9: memref<2x16xf32, #tpu.memory_space<vmem>>, %arg10: memref<128x16xbf16, #tpu.memory_space<vmem>>, %arg11: memref<1x16xf32, #tpu.memory_space<vmem>>, %arg12: memref<16x16xbf16, #tpu.memory_space<vmem>>, %arg13: memref<3x16xf32, #tpu.memory_space<vmem>>, %arg14: memref<8x16xf32, #tpu.memory_space<vmem>>) attributes {dimension_semantics = [#tpu.dimension_semantics<parallel>], iteration_bounds = array<i64: 1>, scalar_prefetch = 0 : i64, scratch_operands = 0 : i64, tpu.core_type = #tpu.core_type<tc>, window_params = [{transform_indices = @transform_0, window_bounds = array<i64: 1, 8>}, {transform_indices = @transform_1, window_bounds = array<i64: 1, 8>}, {transform_indices = @transform_2, window_bounds = array<i64: 1, 8>}, {pipeline_mode = #tpu.pipeline_mode<synchronous>, transform_indices = @transform_3, window_bounds = array<i64: 8, 16>}, {pipeline_mode = #tpu.pipeline_mode<synchronous>, transform_indices = @transform_4, window_bounds = array<i64: 8, 16>}, {transform_indices = @transform_5, window_bounds = array<i64: 8, 16>}, {transform_indices = @transform_6, window_bounds = array<i64: 8, 16>}, {pipeline_mode = #tpu.pipeline_mode<synchronous>, transform_indices = @transform_7, window_bounds = array<i64: 2, 16>}, {pipeline_mode = #tpu.pipeline_mode<synchronous>, transform_indices = @transform_8, window_bounds = array<i64: 2, 16>}, {pipeline_mode = #tpu.pipeline_mode<synchronous>, transform_indices = @transform_9, window_bounds = array<i64: 128, 16>}, {pipeline_mode = #tpu.pipeline_mode<synchronous>, transform_indices = @transform_10, window_bounds = array<i64: 1, 16>}, {pipeline_mode = #tpu.pipeline_mode<synchronous>, transform_indices = @transform_11, window_bounds = array<i64: 16, 16>}, {pipeline_mode = #tpu.pipeline_mode<synchronous>, transform_indices = @transform_12, window_bounds = array<i64: 3, 16>}, {transform_indices = @transform_13, window_bounds = array<i64: 8, 16>}]} {
    %0 = tpu.iota {dimensions = array<i32: 0>} : vector<8x8xi32>
    %1 = tpu.iota {dimensions = array<i32: 0>} : vector<2x8xi32>
    %c0 = arith.constant 0 : index
    %c0_0 = arith.constant 0 : index
    %2 = vector.load %arg1[%c0, %c0_0] : memref<1x8xi32, #tpu.memory_space<vmem>>, vector<1x8xi32>
    %3 = vector.broadcast %2 : vector<1x8xi32> to vector<8x8xi32>
    %4 = arith.cmpi eq, %0, %3 : vector<8x8xi32>
    %5 = arith.extui %4 : vector<8x8xi1> to vector<8x8xi32>
    %6 = arith.sitofp %5 : vector<8x8xi32> to vector<8x8xf32>
    %7 = arith.truncf %6 : vector<8x8xf32> to vector<8x8xbf16>
    %c0_1 = arith.constant 0 : index
    %c0_2 = arith.constant 0 : index
    %8 = vector.load %arg2[%c0_1, %c0_2] : memref<1x8xi32, #tpu.memory_space<vmem>>, vector<1x8xi32>
    %9 = vector.broadcast %8 : vector<1x8xi32> to vector<8x8xi32>
    %10 = arith.cmpi eq, %0, %9 : vector<8x8xi32>
    %11 = arith.extui %10 : vector<8x8xi1> to vector<8x8xi32>
    %12 = arith.sitofp %11 : vector<8x8xi32> to vector<8x8xf32>
    %13 = arith.truncf %12 : vector<8x8xf32> to vector<8x8xbf16>
    %c0_3 = arith.constant 0 : index
    %c0_4 = arith.constant 0 : index
    %14 = vector.load %arg3[%c0_3, %c0_4] : memref<1x8xi32, #tpu.memory_space<vmem>>, vector<1x8xi32>
    %15 = vector.broadcast %14 : vector<1x8xi32> to vector<2x8xi32>
    %16 = arith.cmpi eq, %1, %15 : vector<2x8xi32>
    %17 = arith.extui %16 : vector<2x8xi1> to vector<2x8xi32>
    %18 = arith.sitofp %17 : vector<2x8xi32> to vector<2x8xf32>
    %19 = arith.truncf %18 : vector<2x8xf32> to vector<2x8xbf16>
    %c0_5 = arith.constant 0 : index
    %c0_6 = arith.constant 0 : index
    %20 = vector.load %arg4[%c0_5, %c0_6] : memref<8x16xf32, #tpu.memory_space<vmem>>, vector<8x16xf32>
    %21 = arith.truncf %20 : vector<8x16xf32> to vector<8x16xbf16>
    %cst = arith.constant dense<0.000000e+00> : vector<8x16xf32>
    %22 = tpu.matmul %7, %21, %cst {dimension_numbers = #tpu.dot_dimension_numbers<[0], [0], [1], [1], [0, 1, 1, 1], [], []>} : vector<8x8xbf16>, vector<8x16xbf16>, vector<8x16xf32> -> vector<8x16xf32>
    %c0_7 = arith.constant 0 : index
    %c0_8 = arith.constant 0 : index
    %23 = vector.load %arg5[%c0_7, %c0_8] : memref<8x16xf32, #tpu.memory_space<vmem>>, vector<8x16xf32>
    %24 = arith.truncf %23 : vector<8x16xf32> to vector<8x16xbf16>
    %cst_9 = arith.constant dense<0.000000e+00> : vector<8x16xf32>
    %25 = tpu.matmul %7, %24, %cst_9 {dimension_numbers = #tpu.dot_dimension_numbers<[0], [0], [1], [1], [0, 1, 1, 1], [], []>} : vector<8x8xbf16>, vector<8x16xbf16>, vector<8x16xf32> -> vector<8x16xf32>
    %c0_10 = arith.constant 0 : index
    %c0_11 = arith.constant 0 : index
    %26 = vector.load %arg4[%c0_10, %c0_11] : memref<8x16xf32, #tpu.memory_space<vmem>>, vector<8x16xf32>
    %27 = arith.truncf %26 : vector<8x16xf32> to vector<8x16xbf16>
    %cst_12 = arith.constant dense<0.000000e+00> : vector<8x16xf32>
    %28 = tpu.matmul %13, %27, %cst_12 {dimension_numbers = #tpu.dot_dimension_numbers<[0], [0], [1], [1], [0, 1, 1, 1], [], []>} : vector<8x8xbf16>, vector<8x16xbf16>, vector<8x16xf32> -> vector<8x16xf32>
    %c0_13 = arith.constant 0 : index
    %c0_14 = arith.constant 0 : index
    %29 = vector.load %arg5[%c0_13, %c0_14] : memref<8x16xf32, #tpu.memory_space<vmem>>, vector<8x16xf32>
    %30 = arith.truncf %29 : vector<8x16xf32> to vector<8x16xbf16>
    %cst_15 = arith.constant dense<0.000000e+00> : vector<8x16xf32>
    %31 = tpu.matmul %13, %30, %cst_15 {dimension_numbers = #tpu.dot_dimension_numbers<[0], [0], [1], [1], [0, 1, 1, 1], [], []>} : vector<8x8xbf16>, vector<8x16xbf16>, vector<8x16xf32> -> vector<8x16xf32>
    %c0_16 = arith.constant 0 : index
    %c0_17 = arith.constant 0 : index
    %32 = vector.load %arg6[%c0_16, %c0_17] : memref<8x16xf32, #tpu.memory_space<vmem>>, vector<8x16xf32>
    %c0_18 = arith.constant 0 : index
    %c0_19 = arith.constant 0 : index
    %33 = vector.load %arg7[%c0_18, %c0_19] : memref<8x16xf32, #tpu.memory_space<vmem>>, vector<8x16xf32>
    %c0_20 = arith.constant 0 : index
    %c0_21 = arith.constant 0 : index
    %34 = vector.load %arg8[%c0_20, %c0_21] : memref<2x16xf32, #tpu.memory_space<vmem>>, vector<2x16xf32>
    %35 = arith.truncf %34 : vector<2x16xf32> to vector<2x16xbf16>
    %cst_22 = arith.constant dense<0.000000e+00> : vector<8x16xf32>
    %36 = tpu.matmul %19, %35, %cst_22 {dimension_numbers = #tpu.dot_dimension_numbers<[0], [0], [1], [1], [0, 1, 1, 1], [], []>} : vector<2x8xbf16>, vector<2x16xbf16>, vector<8x16xf32> -> vector<8x16xf32>
    %c0_23 = arith.constant 0 : index
    %c0_24 = arith.constant 0 : index
    %37 = vector.load %arg9[%c0_23, %c0_24] : memref<2x16xf32, #tpu.memory_space<vmem>>, vector<2x16xf32>
    %38 = arith.truncf %37 : vector<2x16xf32> to vector<2x16xbf16>
    %cst_25 = arith.constant dense<0.000000e+00> : vector<8x16xf32>
    %39 = tpu.matmul %19, %38, %cst_25 {dimension_numbers = #tpu.dot_dimension_numbers<[0], [0], [1], [1], [0, 1, 1, 1], [], []>} : vector<2x8xbf16>, vector<2x16xbf16>, vector<8x16xf32> -> vector<8x16xf32>
    %c0_26 = arith.constant 0 : index
    %c0_27 = arith.constant 0 : index
    %40 = vector.load %arg11[%c0_26, %c0_27] : memref<1x16xf32, #tpu.memory_space<vmem>>, vector<1x16xf32>
    %41 = arith.truncf %22 : vector<8x16xf32> to vector<8x16xbf16>
    %c0_28 = arith.constant 0 : index
    %c0_29 = arith.constant 0 : index
    %42 = vector.load %arg10[%c0_28, %c0_29] : memref<128x16xbf16, #tpu.memory_space<vmem>>, vector<16x16xbf16>
    %cst_30 = arith.constant dense<0.000000e+00> : vector<8x16xf32>
    %43 = tpu.matmul %41, %42, %cst_30 {dimension_numbers = #tpu.dot_dimension_numbers<[1], [0], [0], [1], [0, 0, 1, 1], [], []>} : vector<8x16xbf16>, vector<16x16xbf16>, vector<8x16xf32> -> vector<8x16xf32>
    %44 = vector.broadcast %40 : vector<1x16xf32> to vector<8x16xf32>
    %45 = arith.addf %44, %43 : vector<8x16xf32>
    %46 = arith.truncf %25 : vector<8x16xf32> to vector<8x16xbf16>
    %c16 = arith.constant 16 : index
    %c0_31 = arith.constant 0 : index
    %47 = vector.load %arg10[%c16, %c0_31] : memref<128x16xbf16, #tpu.memory_space<vmem>>, vector<16x16xbf16>
    %cst_32 = arith.constant dense<0.000000e+00> : vector<8x16xf32>
    %48 = tpu.matmul %46, %47, %cst_32 {dimension_numbers = #tpu.dot_dimension_numbers<[1], [0], [0], [1], [0, 0, 1, 1], [], []>} : vector<8x16xbf16>, vector<16x16xbf16>, vector<8x16xf32> -> vector<8x16xf32>
    %49 = arith.addf %45, %48 : vector<8x16xf32>
    %50 = arith.truncf %28 : vector<8x16xf32> to vector<8x16xbf16>
    %c32 = arith.constant 32 : index
    %c0_33 = arith.constant 0 : index
    %51 = vector.load %arg10[%c32, %c0_33] : memref<128x16xbf16, #tpu.memory_space<vmem>>, vector<16x16xbf16>
    %cst_34 = arith.constant dense<0.000000e+00> : vector<8x16xf32>
    %52 = tpu.matmul %50, %51, %cst_34 {dimension_numbers = #tpu.dot_dimension_numbers<[1], [0], [0], [1], [0, 0, 1, 1], [], []>} : vector<8x16xbf16>, vector<16x16xbf16>, vector<8x16xf32> -> vector<8x16xf32>
    %53 = arith.addf %49, %52 : vector<8x16xf32>
    %54 = arith.truncf %31 : vector<8x16xf32> to vector<8x16xbf16>
    %c48 = arith.constant 48 : index
    %c0_35 = arith.constant 0 : index
    %55 = vector.load %arg10[%c48, %c0_35] : memref<128x16xbf16, #tpu.memory_space<vmem>>, vector<16x16xbf16>
    %cst_36 = arith.constant dense<0.000000e+00> : vector<8x16xf32>
    %56 = tpu.matmul %54, %55, %cst_36 {dimension_numbers = #tpu.dot_dimension_numbers<[1], [0], [0], [1], [0, 0, 1, 1], [], []>} : vector<8x16xbf16>, vector<16x16xbf16>, vector<8x16xf32> -> vector<8x16xf32>
    %57 = arith.addf %53, %56 : vector<8x16xf32>
    %58 = arith.truncf %32 : vector<8x16xf32> to vector<8x16xbf16>
    %c64 = arith.constant 64 : index
    %c0_37 = arith.constant 0 : index
    %59 = vector.load %arg10[%c64, %c0_37] : memref<128x16xbf16, #tpu.memory_space<vmem>>, vector<16x16xbf16>
    %cst_38 = arith.constant dense<0.000000e+00> : vector<8x16xf32>
    %60 = tpu.matmul %58, %59, %cst_38 {dimension_numbers = #tpu.dot_dimension_numbers<[1], [0], [0], [1], [0, 0, 1, 1], [], []>} : vector<8x16xbf16>, vector<16x16xbf16>, vector<8x16xf32> -> vector<8x16xf32>
    %61 = arith.addf %57, %60 : vector<8x16xf32>
    %62 = arith.truncf %33 : vector<8x16xf32> to vector<8x16xbf16>
    %c80 = arith.constant 80 : index
    %c0_39 = arith.constant 0 : index
    %63 = vector.load %arg10[%c80, %c0_39] : memref<128x16xbf16, #tpu.memory_space<vmem>>, vector<16x16xbf16>
    %cst_40 = arith.constant dense<0.000000e+00> : vector<8x16xf32>
    %64 = tpu.matmul %62, %63, %cst_40 {dimension_numbers = #tpu.dot_dimension_numbers<[1], [0], [0], [1], [0, 0, 1, 1], [], []>} : vector<8x16xbf16>, vector<16x16xbf16>, vector<8x16xf32> -> vector<8x16xf32>
    %65 = arith.addf %61, %64 : vector<8x16xf32>
    %66 = arith.truncf %36 : vector<8x16xf32> to vector<8x16xbf16>
    %c96 = arith.constant 96 : index
    %c0_41 = arith.constant 0 : index
    %67 = vector.load %arg10[%c96, %c0_41] : memref<128x16xbf16, #tpu.memory_space<vmem>>, vector<16x16xbf16>
    %cst_42 = arith.constant dense<0.000000e+00> : vector<8x16xf32>
    %68 = tpu.matmul %66, %67, %cst_42 {dimension_numbers = #tpu.dot_dimension_numbers<[1], [0], [0], [1], [0, 0, 1, 1], [], []>} : vector<8x16xbf16>, vector<16x16xbf16>, vector<8x16xf32> -> vector<8x16xf32>
    %69 = arith.addf %65, %68 : vector<8x16xf32>
    %70 = arith.truncf %39 : vector<8x16xf32> to vector<8x16xbf16>
    %c112 = arith.constant 112 : index
    %c0_43 = arith.constant 0 : index
    %71 = vector.load %arg10[%c112, %c0_43] : memref<128x16xbf16, #tpu.memory_space<vmem>>, vector<16x16xbf16>
    %cst_44 = arith.constant dense<0.000000e+00> : vector<8x16xf32>
    %72 = tpu.matmul %70, %71, %cst_44 {dimension_numbers = #tpu.dot_dimension_numbers<[1], [0], [0], [1], [0, 0, 1, 1], [], []>} : vector<8x16xbf16>, vector<16x16xbf16>, vector<8x16xf32> -> vector<8x16xf32>
    %73 = arith.addf %69, %72 : vector<8x16xf32>
    %cst_45 = arith.constant 0.000000e+00 : f32
    %74 = vector.broadcast %cst_45 : f32 to vector<8x16xf32>
    %75 = arith.maximumf %73, %74 : vector<8x16xf32>
    %76 = arith.truncf %75 : vector<8x16xf32> to vector<8x16xbf16>
    %c0_46 = arith.constant 0 : index
    %c0_47 = arith.constant 0 : index
    %77 = vector.load %arg12[%c0_46, %c0_47] : memref<16x16xbf16, #tpu.memory_space<vmem>>, vector<16x16xbf16>
    %cst_48 = arith.constant dense<0.000000e+00> : vector<8x16xf32>
    %78 = tpu.matmul %76, %77, %cst_48 {dimension_numbers = #tpu.dot_dimension_numbers<[1], [0], [0], [1], [0, 0, 1, 1], [], []>} : vector<8x16xbf16>, vector<16x16xbf16>, vector<8x16xf32> -> vector<8x16xf32>
    %c0_49 = arith.constant 0 : index
    %c0_50 = arith.constant 0 : index
    %79 = vector.load %arg13[%c0_49, %c0_50] : memref<3x16xf32, #tpu.memory_space<vmem>>, vector<3x16xf32>
    %80 = vector.extract_strided_slice %79 {offsets = [0, 0], sizes = [1, 16], strides = [1, 1]} : vector<3x16xf32> to vector<1x16xf32>
    %81 = vector.broadcast %80 : vector<1x16xf32> to vector<8x16xf32>
    %82 = arith.addf %78, %81 : vector<8x16xf32>
    %cst_51 = arith.constant dense<0.000000e+00> : vector<8xf32>
    %83 = vector.multi_reduction <add>, %82, %cst_51 [1] : vector<8x16xf32> to vector<8xf32>
    %84 = vector.shape_cast %83 : vector<8xf32> to vector<8x1xf32>
    %cst_52 = arith.constant 1.600000e+01 : f32
    %85 = vector.broadcast %cst_52 : f32 to vector<8x1xf32>
    %86 = arith.divf %84, %85 : vector<8x1xf32>
    %87 = vector.broadcast %86 : vector<8x1xf32> to vector<8x16xf32>
    %88 = arith.subf %82, %87 : vector<8x16xf32>
    %89 = arith.mulf %88, %88 : vector<8x16xf32>
    %cst_53 = arith.constant dense<0.000000e+00> : vector<8xf32>
    %90 = vector.multi_reduction <add>, %89, %cst_53 [1] : vector<8x16xf32> to vector<8xf32>
    %91 = vector.shape_cast %90 : vector<8xf32> to vector<8x1xf32>
    %cst_54 = arith.constant 1.600000e+01 : f32
    %92 = vector.broadcast %cst_54 : f32 to vector<8x1xf32>
    %93 = arith.divf %91, %92 : vector<8x1xf32>
    %94 = vector.broadcast %86 : vector<8x1xf32> to vector<8x16xf32>
    %95 = arith.subf %82, %94 : vector<8x16xf32>
    %cst_55 = arith.constant 9.99999974E-6 : f32
    %96 = vector.broadcast %cst_55 : f32 to vector<8x1xf32>
    %97 = arith.addf %93, %96 : vector<8x1xf32>
    %98 = math.rsqrt %97 : vector<8x1xf32>
    %99 = vector.broadcast %98 : vector<8x1xf32> to vector<8x16xf32>
    %100 = arith.mulf %95, %99 : vector<8x16xf32>
    %101 = vector.extract_strided_slice %79 {offsets = [1, 0], sizes = [1, 16], strides = [1, 1]} : vector<3x16xf32> to vector<1x16xf32>
    %102 = vector.broadcast %101 : vector<1x16xf32> to vector<8x16xf32>
    %103 = arith.mulf %100, %102 : vector<8x16xf32>
    %104 = vector.extract_strided_slice %79 {offsets = [2, 0], sizes = [1, 16], strides = [1, 1]} : vector<3x16xf32> to vector<1x16xf32>
    %105 = vector.broadcast %104 : vector<1x16xf32> to vector<8x16xf32>
    %106 = arith.addf %103, %105 : vector<8x16xf32>
    %c0_56 = arith.constant 0 : index
    %c0_57 = arith.constant 0 : index
    %107 = vector.load %arg14[%c0_56, %c0_57] : memref<8x16xf32, #tpu.memory_space<vmem>>, vector<8x16xf32>
    tpu.vector_store %arg14[%c0_56, %c0_57], %106 {strides = array<i32>} : memref<8x16xf32, #tpu.memory_space<vmem>>, vector<8x16xf32>,
    return
  }
  func.func @transform_0(%arg0: i32) -> (i32, i32) {
    %c0_i32 = arith.constant 0 : i32
    %c0_i32_0 = arith.constant 0 : i32
    return %c0_i32, %arg0 : i32, i32
  }
  func.func @transform_1(%arg0: i32) -> (i32, i32) {
    %c0_i32 = arith.constant 0 : i32
    %c0_i32_0 = arith.constant 0 : i32
    return %c0_i32, %arg0 : i32, i32
  }
  func.func @transform_2(%arg0: i32) -> (i32, i32) {
    %c0_i32 = arith.constant 0 : i32
    %c0_i32_0 = arith.constant 0 : i32
    return %c0_i32, %arg0 : i32, i32
  }
  func.func @transform_3(%arg0: i32) -> (i32, i32) {
    %c0_i32 = arith.constant 0 : i32
    %c0_i32_0 = arith.constant 0 : i32
    %c0_i32_1 = arith.constant 0 : i32
    return %c0_i32, %c0_i32_0 : i32, i32
  }
  func.func @transform_4(%arg0: i32) -> (i32, i32) {
    %c0_i32 = arith.constant 0 : i32
    %c0_i32_0 = arith.constant 0 : i32
    %c0_i32_1 = arith.constant 0 : i32
    return %c0_i32, %c0_i32_0 : i32, i32
  }
  func.func @transform_5(%arg0: i32) -> (i32, i32) {
    %c0_i32 = arith.constant 0 : i32
    %c0_i32_0 = arith.constant 0 : i32
    return %arg0, %c0_i32 : i32, i32
  }
  func.func @transform_6(%arg0: i32) -> (i32, i32) {
    %c0_i32 = arith.constant 0 : i32
    %c0_i32_0 = arith.constant 0 : i32
    return %arg0, %c0_i32 : i32, i32
  }
  func.func @transform_7(%arg0: i32) -> (i32, i32) {
    %c0_i32 = arith.constant 0 : i32
    %c0_i32_0 = arith.constant 0 : i32
    %c0_i32_1 = arith.constant 0 : i32
    return %c0_i32, %c0_i32_0 : i32, i32
  }
  func.func @transform_8(%arg0: i32) -> (i32, i32) {
    %c0_i32 = arith.constant 0 : i32
    %c0_i32_0 = arith.constant 0 : i32
    %c0_i32_1 = arith.constant 0 : i32
    return %c0_i32, %c0_i32_0 : i32, i32
  }
  func.func @transform_9(%arg0: i32) -> (i32, i32) {
    %c0_i32 = arith.constant 0 : i32
    %c0_i32_0 = arith.constant 0 : i32
    %c0_i32_1 = arith.constant 0 : i32
    return %c0_i32, %c0_i32_0 : i32, i32
  }
  func.func @transform_10(%arg0: i32) -> (i32, i32) {
    %c0_i32 = arith.constant 0 : i32
    %c0_i32_0 = arith.constant 0 : i32
    %c0_i32_1 = arith.constant 0 : i32
    return %c0_i32, %c0_i32_0 : i32, i32
  }
  func.func @transform_11(%arg0: i32) -> (i32, i32) {
    %c0_i32 = arith.constant 0 : i32
    %c0_i32_0 = arith.constant 0 : i32
    %c0_i32_1 = arith.constant 0 : i32
    return %c0_i32, %c0_i32_0 : i32, i32
  }
  func.func @transform_12(%arg0: i32) -> (i32, i32) {
    %c0_i32 = arith.constant 0 : i32
    %c0_i32_0 = arith.constant 0 : i32
    %c0_i32_1 = arith.constant 0 : i32
    return %c0_i32, %c0_i32_0 : i32, i32
  }
  func.func @transform_13(%arg0: i32) -> (i32, i32) {
    %c0_i32 = arith.constant 0 : i32
    %c0_i32_0 = arith.constant 0 : i32
    return %arg0, %c0_i32 : i32, i32
  }
}

module attributes {stable_mosaic.version = 11 : i64} {
  func.func @_node_update_kernel(%arg0: i32, %arg1: memref<1x8xi32, #tpu.memory_space<vmem>>, %arg2: memref<1x8xi32, #tpu.memory_space<vmem>>, %arg3: memref<8x16xf32, #tpu.memory_space<vmem>>, %arg4: memref<8x16xf32, #tpu.memory_space<vmem>>, %arg5: memref<8x16xf32, #tpu.memory_space<vmem>>, %arg6: memref<2x16xf32, #tpu.memory_space<vmem>>, %arg7: memref<2x16xf32, #tpu.memory_space<vmem>>, %arg8: memref<80x16xbf16, #tpu.memory_space<vmem>>, %arg9: memref<1x16xf32, #tpu.memory_space<vmem>>, %arg10: memref<16x16xbf16, #tpu.memory_space<vmem>>, %arg11: memref<3x16xf32, #tpu.memory_space<vmem>>, %arg12: memref<8x16xf32, #tpu.memory_space<vmem>>) attributes {dimension_semantics = [#tpu.dimension_semantics<parallel>], iteration_bounds = array<i64: 1>, scalar_prefetch = 0 : i64, scratch_operands = 0 : i64, tpu.core_type = #tpu.core_type<tc>, window_params = [{transform_indices = @transform_0, window_bounds = array<i64: 1, 8>}, {pipeline_mode = #tpu.pipeline_mode<synchronous>, transform_indices = @transform_1, window_bounds = array<i64: 1, 8>}, {transform_indices = @transform_2, window_bounds = array<i64: 8, 16>}, {transform_indices = @transform_3, window_bounds = array<i64: 8, 16>}, {pipeline_mode = #tpu.pipeline_mode<synchronous>, transform_indices = @transform_4, window_bounds = array<i64: 8, 16>}, {pipeline_mode = #tpu.pipeline_mode<synchronous>, transform_indices = @transform_5, window_bounds = array<i64: 2, 16>}, {pipeline_mode = #tpu.pipeline_mode<synchronous>, transform_indices = @transform_6, window_bounds = array<i64: 2, 16>}, {pipeline_mode = #tpu.pipeline_mode<synchronous>, transform_indices = @transform_7, window_bounds = array<i64: 80, 16>}, {pipeline_mode = #tpu.pipeline_mode<synchronous>, transform_indices = @transform_8, window_bounds = array<i64: 1, 16>}, {pipeline_mode = #tpu.pipeline_mode<synchronous>, transform_indices = @transform_9, window_bounds = array<i64: 16, 16>}, {pipeline_mode = #tpu.pipeline_mode<synchronous>, transform_indices = @transform_10, window_bounds = array<i64: 3, 16>}, {transform_indices = @transform_11, window_bounds = array<i64: 8, 16>}]} {
    %c8_i32 = arith.constant 8 : i32
    %0 = arith.muli %arg0, %c8_i32 : i32
    %1 = tpu.iota {dimensions = array<i32: 0>} : vector<8x8xi32>
    %2 = vector.broadcast %0 : i32 to vector<8x8xi32>
    %3 = arith.addi %1, %2 : vector<8x8xi32>
    %c0 = arith.constant 0 : index
    %c0_0 = arith.constant 0 : index
    %4 = vector.load %arg2[%c0, %c0_0] : memref<1x8xi32, #tpu.memory_space<vmem>>, vector<1x8xi32>
    %5 = vector.broadcast %4 : vector<1x8xi32> to vector<8x8xi32>
    %6 = arith.cmpi eq, %3, %5 : vector<8x8xi32>
    %7 = arith.extui %6 : vector<8x8xi1> to vector<8x8xi32>
    %8 = arith.sitofp %7 : vector<8x8xi32> to vector<8x8xf32>
    %9 = arith.truncf %8 : vector<8x8xf32> to vector<8x8xbf16>
    %c0_1 = arith.constant 0 : index
    %c0_2 = arith.constant 0 : index
    %10 = vector.load %arg5[%c0_1, %c0_2] : memref<8x16xf32, #tpu.memory_space<vmem>>, vector<8x16xf32>
    %11 = arith.truncf %10 : vector<8x16xf32> to vector<8x16xbf16>
    %cst = arith.constant dense<0.000000e+00> : vector<8x16xf32>
    %12 = tpu.matmul %9, %11, %cst {dimension_numbers = #tpu.dot_dimension_numbers<[1], [0], [0], [1], [0, 0, 1, 1], [], []>} : vector<8x8xbf16>, vector<8x16xbf16>, vector<8x16xf32> -> vector<8x16xf32>
    %13 = tpu.iota {dimensions = array<i32: 0>} : vector<2x8xi32>
    %c0_3 = arith.constant 0 : index
    %c0_4 = arith.constant 0 : index
    %14 = vector.load %arg1[%c0_3, %c0_4] : memref<1x8xi32, #tpu.memory_space<vmem>>, vector<1x8xi32>
    %15 = vector.broadcast %14 : vector<1x8xi32> to vector<2x8xi32>
    %16 = arith.cmpi eq, %13, %15 : vector<2x8xi32>
    %17 = arith.extui %16 : vector<2x8xi1> to vector<2x8xi32>
    %18 = arith.sitofp %17 : vector<2x8xi32> to vector<2x8xf32>
    %19 = arith.truncf %18 : vector<2x8xf32> to vector<2x8xbf16>
    %c0_5 = arith.constant 0 : index
    %c0_6 = arith.constant 0 : index
    %20 = vector.load %arg3[%c0_5, %c0_6] : memref<8x16xf32, #tpu.memory_space<vmem>>, vector<8x16xf32>
    %c0_7 = arith.constant 0 : index
    %c0_8 = arith.constant 0 : index
    %21 = vector.load %arg4[%c0_7, %c0_8] : memref<8x16xf32, #tpu.memory_space<vmem>>, vector<8x16xf32>
    %c0_9 = arith.constant 0 : index
    %c0_10 = arith.constant 0 : index
    %22 = vector.load %arg6[%c0_9, %c0_10] : memref<2x16xf32, #tpu.memory_space<vmem>>, vector<2x16xf32>
    %23 = arith.truncf %22 : vector<2x16xf32> to vector<2x16xbf16>
    %cst_11 = arith.constant dense<0.000000e+00> : vector<8x16xf32>
    %24 = tpu.matmul %19, %23, %cst_11 {dimension_numbers = #tpu.dot_dimension_numbers<[0], [0], [1], [1], [0, 1, 1, 1], [], []>} : vector<2x8xbf16>, vector<2x16xbf16>, vector<8x16xf32> -> vector<8x16xf32>
    %c0_12 = arith.constant 0 : index
    %c0_13 = arith.constant 0 : index
    %25 = vector.load %arg7[%c0_12, %c0_13] : memref<2x16xf32, #tpu.memory_space<vmem>>, vector<2x16xf32>
    %26 = arith.truncf %25 : vector<2x16xf32> to vector<2x16xbf16>
    %cst_14 = arith.constant dense<0.000000e+00> : vector<8x16xf32>
    %27 = tpu.matmul %19, %26, %cst_14 {dimension_numbers = #tpu.dot_dimension_numbers<[0], [0], [1], [1], [0, 1, 1, 1], [], []>} : vector<2x8xbf16>, vector<2x16xbf16>, vector<8x16xf32> -> vector<8x16xf32>
    %c0_15 = arith.constant 0 : index
    %c0_16 = arith.constant 0 : index
    %28 = vector.load %arg9[%c0_15, %c0_16] : memref<1x16xf32, #tpu.memory_space<vmem>>, vector<1x16xf32>
    %29 = arith.truncf %20 : vector<8x16xf32> to vector<8x16xbf16>
    %c0_17 = arith.constant 0 : index
    %c0_18 = arith.constant 0 : index
    %30 = vector.load %arg8[%c0_17, %c0_18] : memref<80x16xbf16, #tpu.memory_space<vmem>>, vector<16x16xbf16>
    %cst_19 = arith.constant dense<0.000000e+00> : vector<8x16xf32>
    %31 = tpu.matmul %29, %30, %cst_19 {dimension_numbers = #tpu.dot_dimension_numbers<[1], [0], [0], [1], [0, 0, 1, 1], [], []>} : vector<8x16xbf16>, vector<16x16xbf16>, vector<8x16xf32> -> vector<8x16xf32>
    %32 = vector.broadcast %28 : vector<1x16xf32> to vector<8x16xf32>
    %33 = arith.addf %32, %31 : vector<8x16xf32>
    %34 = arith.truncf %21 : vector<8x16xf32> to vector<8x16xbf16>
    %c16 = arith.constant 16 : index
    %c0_20 = arith.constant 0 : index
    %35 = vector.load %arg8[%c16, %c0_20] : memref<80x16xbf16, #tpu.memory_space<vmem>>, vector<16x16xbf16>
    %cst_21 = arith.constant dense<0.000000e+00> : vector<8x16xf32>
    %36 = tpu.matmul %34, %35, %cst_21 {dimension_numbers = #tpu.dot_dimension_numbers<[1], [0], [0], [1], [0, 0, 1, 1], [], []>} : vector<8x16xbf16>, vector<16x16xbf16>, vector<8x16xf32> -> vector<8x16xf32>
    %37 = arith.addf %33, %36 : vector<8x16xf32>
    %38 = arith.truncf %12 : vector<8x16xf32> to vector<8x16xbf16>
    %c32 = arith.constant 32 : index
    %c0_22 = arith.constant 0 : index
    %39 = vector.load %arg8[%c32, %c0_22] : memref<80x16xbf16, #tpu.memory_space<vmem>>, vector<16x16xbf16>
    %cst_23 = arith.constant dense<0.000000e+00> : vector<8x16xf32>
    %40 = tpu.matmul %38, %39, %cst_23 {dimension_numbers = #tpu.dot_dimension_numbers<[1], [0], [0], [1], [0, 0, 1, 1], [], []>} : vector<8x16xbf16>, vector<16x16xbf16>, vector<8x16xf32> -> vector<8x16xf32>
    %41 = arith.addf %37, %40 : vector<8x16xf32>
    %42 = arith.truncf %24 : vector<8x16xf32> to vector<8x16xbf16>
    %c48 = arith.constant 48 : index
    %c0_24 = arith.constant 0 : index
    %43 = vector.load %arg8[%c48, %c0_24] : memref<80x16xbf16, #tpu.memory_space<vmem>>, vector<16x16xbf16>
    %cst_25 = arith.constant dense<0.000000e+00> : vector<8x16xf32>
    %44 = tpu.matmul %42, %43, %cst_25 {dimension_numbers = #tpu.dot_dimension_numbers<[1], [0], [0], [1], [0, 0, 1, 1], [], []>} : vector<8x16xbf16>, vector<16x16xbf16>, vector<8x16xf32> -> vector<8x16xf32>
    %45 = arith.addf %41, %44 : vector<8x16xf32>
    %46 = arith.truncf %27 : vector<8x16xf32> to vector<8x16xbf16>
    %c64 = arith.constant 64 : index
    %c0_26 = arith.constant 0 : index
    %47 = vector.load %arg8[%c64, %c0_26] : memref<80x16xbf16, #tpu.memory_space<vmem>>, vector<16x16xbf16>
    %cst_27 = arith.constant dense<0.000000e+00> : vector<8x16xf32>
    %48 = tpu.matmul %46, %47, %cst_27 {dimension_numbers = #tpu.dot_dimension_numbers<[1], [0], [0], [1], [0, 0, 1, 1], [], []>} : vector<8x16xbf16>, vector<16x16xbf16>, vector<8x16xf32> -> vector<8x16xf32>
    %49 = arith.addf %45, %48 : vector<8x16xf32>
    %cst_28 = arith.constant 0.000000e+00 : f32
    %50 = vector.broadcast %cst_28 : f32 to vector<8x16xf32>
    %51 = arith.maximumf %49, %50 : vector<8x16xf32>
    %52 = arith.truncf %51 : vector<8x16xf32> to vector<8x16xbf16>
    %c0_29 = arith.constant 0 : index
    %c0_30 = arith.constant 0 : index
    %53 = vector.load %arg10[%c0_29, %c0_30] : memref<16x16xbf16, #tpu.memory_space<vmem>>, vector<16x16xbf16>
    %cst_31 = arith.constant dense<0.000000e+00> : vector<8x16xf32>
    %54 = tpu.matmul %52, %53, %cst_31 {dimension_numbers = #tpu.dot_dimension_numbers<[1], [0], [0], [1], [0, 0, 1, 1], [], []>} : vector<8x16xbf16>, vector<16x16xbf16>, vector<8x16xf32> -> vector<8x16xf32>
    %c0_32 = arith.constant 0 : index
    %c0_33 = arith.constant 0 : index
    %55 = vector.load %arg11[%c0_32, %c0_33] : memref<3x16xf32, #tpu.memory_space<vmem>>, vector<3x16xf32>
    %56 = vector.extract_strided_slice %55 {offsets = [0, 0], sizes = [1, 16], strides = [1, 1]} : vector<3x16xf32> to vector<1x16xf32>
    %57 = vector.broadcast %56 : vector<1x16xf32> to vector<8x16xf32>
    %58 = arith.addf %54, %57 : vector<8x16xf32>
    %cst_34 = arith.constant dense<0.000000e+00> : vector<8xf32>
    %59 = vector.multi_reduction <add>, %58, %cst_34 [1] : vector<8x16xf32> to vector<8xf32>
    %60 = vector.shape_cast %59 : vector<8xf32> to vector<8x1xf32>
    %cst_35 = arith.constant 1.600000e+01 : f32
    %61 = vector.broadcast %cst_35 : f32 to vector<8x1xf32>
    %62 = arith.divf %60, %61 : vector<8x1xf32>
    %63 = vector.broadcast %62 : vector<8x1xf32> to vector<8x16xf32>
    %64 = arith.subf %58, %63 : vector<8x16xf32>
    %65 = arith.mulf %64, %64 : vector<8x16xf32>
    %cst_36 = arith.constant dense<0.000000e+00> : vector<8xf32>
    %66 = vector.multi_reduction <add>, %65, %cst_36 [1] : vector<8x16xf32> to vector<8xf32>
    %67 = vector.shape_cast %66 : vector<8xf32> to vector<8x1xf32>
    %cst_37 = arith.constant 1.600000e+01 : f32
    %68 = vector.broadcast %cst_37 : f32 to vector<8x1xf32>
    %69 = arith.divf %67, %68 : vector<8x1xf32>
    %70 = vector.broadcast %62 : vector<8x1xf32> to vector<8x16xf32>
    %71 = arith.subf %58, %70 : vector<8x16xf32>
    %cst_38 = arith.constant 9.99999974E-6 : f32
    %72 = vector.broadcast %cst_38 : f32 to vector<8x1xf32>
    %73 = arith.addf %69, %72 : vector<8x1xf32>
    %74 = math.rsqrt %73 : vector<8x1xf32>
    %75 = vector.broadcast %74 : vector<8x1xf32> to vector<8x16xf32>
    %76 = arith.mulf %71, %75 : vector<8x16xf32>
    %77 = vector.extract_strided_slice %55 {offsets = [1, 0], sizes = [1, 16], strides = [1, 1]} : vector<3x16xf32> to vector<1x16xf32>
    %78 = vector.broadcast %77 : vector<1x16xf32> to vector<8x16xf32>
    %79 = arith.mulf %76, %78 : vector<8x16xf32>
    %80 = vector.extract_strided_slice %55 {offsets = [2, 0], sizes = [1, 16], strides = [1, 1]} : vector<3x16xf32> to vector<1x16xf32>
    %81 = vector.broadcast %80 : vector<1x16xf32> to vector<8x16xf32>
    %82 = arith.addf %79, %81 : vector<8x16xf32>
    %c0_39 = arith.constant 0 : index
    %c0_40 = arith.constant 0 : index
    %83 = vector.load %arg12[%c0_39, %c0_40] : memref<8x16xf32, #tpu.memory_space<vmem>>, vector<8x16xf32>
    tpu.vector_store %arg12[%c0_39, %c0_40], %82 {strides = array<i32>} : memref<8x16xf32, #tpu.memory_space<vmem>>, vector<8x16xf32>,
    return
  }
  func.func @transform_0(%arg0: i32) -> (i32, i32) {
    %c0_i32 = arith.constant 0 : i32
    %c0_i32_0 = arith.constant 0 : i32
    return %c0_i32, %arg0 : i32, i32
  }
  func.func @transform_1(%arg0: i32) -> (i32, i32) {
    %c0_i32 = arith.constant 0 : i32
    %c0_i32_0 = arith.constant 0 : i32
    %c0_i32_1 = arith.constant 0 : i32
    return %c0_i32, %c0_i32_0 : i32, i32
  }
  func.func @transform_2(%arg0: i32) -> (i32, i32) {
    %c0_i32 = arith.constant 0 : i32
    %c0_i32_0 = arith.constant 0 : i32
    return %arg0, %c0_i32 : i32, i32
  }
  func.func @transform_3(%arg0: i32) -> (i32, i32) {
    %c0_i32 = arith.constant 0 : i32
    %c0_i32_0 = arith.constant 0 : i32
    return %arg0, %c0_i32 : i32, i32
  }
  func.func @transform_4(%arg0: i32) -> (i32, i32) {
    %c0_i32 = arith.constant 0 : i32
    %c0_i32_0 = arith.constant 0 : i32
    %c0_i32_1 = arith.constant 0 : i32
    return %c0_i32, %c0_i32_0 : i32, i32
  }
  func.func @transform_5(%arg0: i32) -> (i32, i32) {
    %c0_i32 = arith.constant 0 : i32
    %c0_i32_0 = arith.constant 0 : i32
    %c0_i32_1 = arith.constant 0 : i32
    return %c0_i32, %c0_i32_0 : i32, i32
  }
  func.func @transform_6(%arg0: i32) -> (i32, i32) {
    %c0_i32 = arith.constant 0 : i32
    %c0_i32_0 = arith.constant 0 : i32
    %c0_i32_1 = arith.constant 0 : i32
    return %c0_i32, %c0_i32_0 : i32, i32
  }
  func.func @transform_7(%arg0: i32) -> (i32, i32) {
    %c0_i32 = arith.constant 0 : i32
    %c0_i32_0 = arith.constant 0 : i32
    %c0_i32_1 = arith.constant 0 : i32
    return %c0_i32, %c0_i32_0 : i32, i32
  }
  func.func @transform_8(%arg0: i32) -> (i32, i32) {
    %c0_i32 = arith.constant 0 : i32
    %c0_i32_0 = arith.constant 0 : i32
    %c0_i32_1 = arith.constant 0 : i32
    return %c0_i32, %c0_i32_0 : i32, i32
  }
  func.func @transform_9(%arg0: i32) -> (i32, i32) {
    %c0_i32 = arith.constant 0 : i32
    %c0_i32_0 = arith.constant 0 : i32
    %c0_i32_1 = arith.constant 0 : i32
    return %c0_i32, %c0_i32_0 : i32, i32
  }
  func.func @transform_10(%arg0: i32) -> (i32, i32) {
    %c0_i32 = arith.constant 0 : i32
    %c0_i32_0 = arith.constant 0 : i32
    %c0_i32_1 = arith.constant 0 : i32
    return %c0_i32, %c0_i32_0 : i32, i32
  }
  func.func @transform_11(%arg0: i32) -> (i32, i32) {
    %c0_i32 = arith.constant 0 : i32
    %c0_i32_0 = arith.constant 0 : i32
    return %arg0, %c0_i32 : i32, i32
  }
}

module attributes {stable_mosaic.version = 11 : i64} {
  func.func @_mlp_ln_kernel(%arg0: i32, %arg1: memref<2x16xf32, #tpu.memory_space<vmem>>, %arg2: memref<16x8xbf16, #tpu.memory_space<vmem>>, %arg3: memref<1x8xf32, #tpu.memory_space<vmem>>, %arg4: memref<8x8xbf16, #tpu.memory_space<vmem>>, %arg5: memref<3x8xf32, #tpu.memory_space<vmem>>, %arg6: memref<2x8xf32, #tpu.memory_space<vmem>>) attributes {dimension_semantics = [#tpu.dimension_semantics<parallel>], iteration_bounds = array<i64: 1>, scalar_prefetch = 0 : i64, scratch_operands = 0 : i64, tpu.core_type = #tpu.core_type<tc>, window_params = [{transform_indices = @transform_0, window_bounds = array<i64: 2, 16>}, {pipeline_mode = #tpu.pipeline_mode<synchronous>, transform_indices = @transform_1, window_bounds = array<i64: 16, 8>}, {pipeline_mode = #tpu.pipeline_mode<synchronous>, transform_indices = @transform_2, window_bounds = array<i64: 1, 8>}, {pipeline_mode = #tpu.pipeline_mode<synchronous>, transform_indices = @transform_3, window_bounds = array<i64: 8, 8>}, {pipeline_mode = #tpu.pipeline_mode<synchronous>, transform_indices = @transform_4, window_bounds = array<i64: 3, 8>}, {transform_indices = @transform_5, window_bounds = array<i64: 2, 8>}]} {
    %c0 = arith.constant 0 : index
    %c0_0 = arith.constant 0 : index
    %0 = vector.load %arg1[%c0, %c0_0] : memref<2x16xf32, #tpu.memory_space<vmem>>, vector<2x16xf32>
    %c0_1 = arith.constant 0 : index
    %c0_2 = arith.constant 0 : index
    %1 = vector.load %arg3[%c0_1, %c0_2] : memref<1x8xf32, #tpu.memory_space<vmem>>, vector<1x8xf32>
    %2 = arith.truncf %0 : vector<2x16xf32> to vector<2x16xbf16>
    %c0_3 = arith.constant 0 : index
    %c0_4 = arith.constant 0 : index
    %3 = vector.load %arg2[%c0_3, %c0_4] : memref<16x8xbf16, #tpu.memory_space<vmem>>, vector<16x8xbf16>
    %cst = arith.constant dense<0.000000e+00> : vector<2x8xf32>
    %4 = tpu.matmul %2, %3, %cst {dimension_numbers = #tpu.dot_dimension_numbers<[1], [0], [0], [1], [0, 0, 1, 1], [], []>} : vector<2x16xbf16>, vector<16x8xbf16>, vector<2x8xf32> -> vector<2x8xf32>
    %5 = vector.broadcast %1 : vector<1x8xf32> to vector<2x8xf32>
    %6 = arith.addf %5, %4 : vector<2x8xf32>
    %cst_5 = arith.constant 0.000000e+00 : f32
    %7 = vector.broadcast %cst_5 : f32 to vector<2x8xf32>
    %8 = arith.maximumf %6, %7 : vector<2x8xf32>
    %9 = arith.truncf %8 : vector<2x8xf32> to vector<2x8xbf16>
    %c0_6 = arith.constant 0 : index
    %c0_7 = arith.constant 0 : index
    %10 = vector.load %arg4[%c0_6, %c0_7] : memref<8x8xbf16, #tpu.memory_space<vmem>>, vector<8x8xbf16>
    %cst_8 = arith.constant dense<0.000000e+00> : vector<2x8xf32>
    %11 = tpu.matmul %9, %10, %cst_8 {dimension_numbers = #tpu.dot_dimension_numbers<[1], [0], [0], [1], [0, 0, 1, 1], [], []>} : vector<2x8xbf16>, vector<8x8xbf16>, vector<2x8xf32> -> vector<2x8xf32>
    %c0_9 = arith.constant 0 : index
    %c0_10 = arith.constant 0 : index
    %12 = vector.load %arg5[%c0_9, %c0_10] : memref<3x8xf32, #tpu.memory_space<vmem>>, vector<3x8xf32>
    %13 = vector.extract_strided_slice %12 {offsets = [0, 0], sizes = [1, 8], strides = [1, 1]} : vector<3x8xf32> to vector<1x8xf32>
    %14 = vector.broadcast %13 : vector<1x8xf32> to vector<2x8xf32>
    %15 = arith.addf %11, %14 : vector<2x8xf32>
    %cst_11 = arith.constant dense<0.000000e+00> : vector<2xf32>
    %16 = vector.multi_reduction <add>, %15, %cst_11 [1] : vector<2x8xf32> to vector<2xf32>
    %17 = vector.shape_cast %16 : vector<2xf32> to vector<2x1xf32>
    %cst_12 = arith.constant 8.000000e+00 : f32
    %18 = vector.broadcast %cst_12 : f32 to vector<2x1xf32>
    %19 = arith.divf %17, %18 : vector<2x1xf32>
    %20 = vector.broadcast %19 : vector<2x1xf32> to vector<2x8xf32>
    %21 = arith.subf %15, %20 : vector<2x8xf32>
    %22 = arith.mulf %21, %21 : vector<2x8xf32>
    %cst_13 = arith.constant dense<0.000000e+00> : vector<2xf32>
    %23 = vector.multi_reduction <add>, %22, %cst_13 [1] : vector<2x8xf32> to vector<2xf32>
    %24 = vector.shape_cast %23 : vector<2xf32> to vector<2x1xf32>
    %cst_14 = arith.constant 8.000000e+00 : f32
    %25 = vector.broadcast %cst_14 : f32 to vector<2x1xf32>
    %26 = arith.divf %24, %25 : vector<2x1xf32>
    %27 = vector.broadcast %19 : vector<2x1xf32> to vector<2x8xf32>
    %28 = arith.subf %15, %27 : vector<2x8xf32>
    %cst_15 = arith.constant 9.99999974E-6 : f32
    %29 = vector.broadcast %cst_15 : f32 to vector<2x1xf32>
    %30 = arith.addf %26, %29 : vector<2x1xf32>
    %31 = math.rsqrt %30 : vector<2x1xf32>
    %32 = vector.broadcast %31 : vector<2x1xf32> to vector<2x8xf32>
    %33 = arith.mulf %28, %32 : vector<2x8xf32>
    %34 = vector.extract_strided_slice %12 {offsets = [1, 0], sizes = [1, 8], strides = [1, 1]} : vector<3x8xf32> to vector<1x8xf32>
    %35 = vector.broadcast %34 : vector<1x8xf32> to vector<2x8xf32>
    %36 = arith.mulf %33, %35 : vector<2x8xf32>
    %37 = vector.extract_strided_slice %12 {offsets = [2, 0], sizes = [1, 8], strides = [1, 1]} : vector<3x8xf32> to vector<1x8xf32>
    %38 = vector.broadcast %37 : vector<1x8xf32> to vector<2x8xf32>
    %39 = arith.addf %36, %38 : vector<2x8xf32>
    %c0_16 = arith.constant 0 : index
    %c0_17 = arith.constant 0 : index
    %40 = vector.load %arg6[%c0_16, %c0_17] : memref<2x8xf32, #tpu.memory_space<vmem>>, vector<2x8xf32>
    tpu.vector_store %arg6[%c0_16, %c0_17], %39 {strides = array<i32>} : memref<2x8xf32, #tpu.memory_space<vmem>>, vector<2x8xf32>,
    return
  }
  func.func @transform_0(%arg0: i32) -> (i32, i32) {
    %c0_i32 = arith.constant 0 : i32
    %c0_i32_0 = arith.constant 0 : i32
    return %arg0, %c0_i32 : i32, i32
  }
  func.func @transform_1(%arg0: i32) -> (i32, i32) {
    %c0_i32 = arith.constant 0 : i32
    %c0_i32_0 = arith.constant 0 : i32
    %c0_i32_1 = arith.constant 0 : i32
    return %c0_i32, %c0_i32_0 : i32, i32
  }
  func.func @transform_2(%arg0: i32) -> (i32, i32) {
    %c0_i32 = arith.constant 0 : i32
    %c0_i32_0 = arith.constant 0 : i32
    %c0_i32_1 = arith.constant 0 : i32
    return %c0_i32, %c0_i32_0 : i32, i32
  }
  func.func @transform_3(%arg0: i32) -> (i32, i32) {
    %c0_i32 = arith.constant 0 : i32
    %c0_i32_0 = arith.constant 0 : i32
    %c0_i32_1 = arith.constant 0 : i32
    return %c0_i32, %c0_i32_0 : i32, i32
  }
  func.func @transform_4(%arg0: i32) -> (i32, i32) {
    %c0_i32 = arith.constant 0 : i32
    %c0_i32_0 = arith.constant 0 : i32
    %c0_i32_1 = arith.constant 0 : i32
    return %c0_i32, %c0_i32_0 : i32, i32
  }
  func.func @transform_5(%arg0: i32) -> (i32, i32) {
    %c0_i32 = arith.constant 0 : i32
    %c0_i32_0 = arith.constant 0 : i32
    return %arg0, %c0_i32 : i32, i32
  }
}

module attributes {stable_mosaic.version = 11 : i64} {
  func.func @_global_update_kernel(%arg0: i32, %arg1: memref<1x8xi32, #tpu.memory_space<vmem>>, %arg2: memref<1x8xi32, #tpu.memory_space<vmem>>, %arg3: memref<2x16xf32, #tpu.memory_space<vmem>>, %arg4: memref<2x16xf32, #tpu.memory_space<vmem>>, %arg5: memref<8x16xf32, #tpu.memory_space<vmem>>, %arg6: memref<8x16xf32, #tpu.memory_space<vmem>>, %arg7: memref<64x16xbf16, #tpu.memory_space<vmem>>, %arg8: memref<1x16xf32, #tpu.memory_space<vmem>>, %arg9: memref<16x16xbf16, #tpu.memory_space<vmem>>, %arg10: memref<3x16xf32, #tpu.memory_space<vmem>>, %arg11: memref<2x16xf32, #tpu.memory_space<vmem>>) attributes {dimension_semantics = [#tpu.dimension_semantics<parallel>], iteration_bounds = array<i64: 1>, scalar_prefetch = 0 : i64, scratch_operands = 0 : i64, tpu.core_type = #tpu.core_type<tc>, window_params = [{pipeline_mode = #tpu.pipeline_mode<synchronous>, transform_indices = @transform_0, window_bounds = array<i64: 1, 8>}, {pipeline_mode = #tpu.pipeline_mode<synchronous>, transform_indices = @transform_1, window_bounds = array<i64: 1, 8>}, {transform_indices = @transform_2, window_bounds = array<i64: 2, 16>}, {transform_indices = @transform_3, window_bounds = array<i64: 2, 16>}, {pipeline_mode = #tpu.pipeline_mode<synchronous>, transform_indices = @transform_4, window_bounds = array<i64: 8, 16>}, {pipeline_mode = #tpu.pipeline_mode<synchronous>, transform_indices = @transform_5, window_bounds = array<i64: 8, 16>}, {pipeline_mode = #tpu.pipeline_mode<synchronous>, transform_indices = @transform_6, window_bounds = array<i64: 64, 16>}, {pipeline_mode = #tpu.pipeline_mode<synchronous>, transform_indices = @transform_7, window_bounds = array<i64: 1, 16>}, {pipeline_mode = #tpu.pipeline_mode<synchronous>, transform_indices = @transform_8, window_bounds = array<i64: 16, 16>}, {pipeline_mode = #tpu.pipeline_mode<synchronous>, transform_indices = @transform_9, window_bounds = array<i64: 3, 16>}, {transform_indices = @transform_10, window_bounds = array<i64: 2, 16>}]} {
    %c2_i32 = arith.constant 2 : i32
    %0 = arith.muli %arg0, %c2_i32 : i32
    %1 = tpu.iota {dimensions = array<i32: 0>} : vector<2x8xi32>
    %2 = vector.broadcast %0 : i32 to vector<2x8xi32>
    %3 = arith.addi %1, %2 : vector<2x8xi32>
    %4 = tpu.iota {dimensions = array<i32: 0>} : vector<2x8xi32>
    %5 = vector.broadcast %0 : i32 to vector<2x8xi32>
    %6 = arith.addi %4, %5 : vector<2x8xi32>
    %c0 = arith.constant 0 : index
    %c0_0 = arith.constant 0 : index
    %7 = vector.load %arg1[%c0, %c0_0] : memref<1x8xi32, #tpu.memory_space<vmem>>, vector<1x8xi32>
    %8 = vector.broadcast %7 : vector<1x8xi32> to vector<2x8xi32>
    %9 = arith.cmpi eq, %3, %8 : vector<2x8xi32>
    %10 = arith.extui %9 : vector<2x8xi1> to vector<2x8xi32>
    %11 = arith.sitofp %10 : vector<2x8xi32> to vector<2x8xf32>
    %12 = arith.truncf %11 : vector<2x8xf32> to vector<2x8xbf16>
    %c0_1 = arith.constant 0 : index
    %c0_2 = arith.constant 0 : index
    %13 = vector.load %arg2[%c0_1, %c0_2] : memref<1x8xi32, #tpu.memory_space<vmem>>, vector<1x8xi32>
    %14 = vector.broadcast %13 : vector<1x8xi32> to vector<2x8xi32>
    %15 = arith.cmpi eq, %6, %14 : vector<2x8xi32>
    %16 = arith.extui %15 : vector<2x8xi1> to vector<2x8xi32>
    %17 = arith.sitofp %16 : vector<2x8xi32> to vector<2x8xf32>
    %18 = arith.truncf %17 : vector<2x8xf32> to vector<2x8xbf16>
    %c0_3 = arith.constant 0 : index
    %c0_4 = arith.constant 0 : index
    %19 = vector.load %arg5[%c0_3, %c0_4] : memref<8x16xf32, #tpu.memory_space<vmem>>, vector<8x16xf32>
    %20 = arith.truncf %19 : vector<8x16xf32> to vector<8x16xbf16>
    %cst = arith.constant dense<0.000000e+00> : vector<2x16xf32>
    %21 = tpu.matmul %12, %20, %cst {dimension_numbers = #tpu.dot_dimension_numbers<[1], [0], [0], [1], [0, 0, 1, 1], [], []>} : vector<2x8xbf16>, vector<8x16xbf16>, vector<2x16xf32> -> vector<2x16xf32>
    %c0_5 = arith.constant 0 : index
    %c0_6 = arith.constant 0 : index
    %22 = vector.load %arg6[%c0_5, %c0_6] : memref<8x16xf32, #tpu.memory_space<vmem>>, vector<8x16xf32>
    %23 = arith.truncf %22 : vector<8x16xf32> to vector<8x16xbf16>
    %cst_7 = arith.constant dense<0.000000e+00> : vector<2x16xf32>
    %24 = tpu.matmul %18, %23, %cst_7 {dimension_numbers = #tpu.dot_dimension_numbers<[1], [0], [0], [1], [0, 0, 1, 1], [], []>} : vector<2x8xbf16>, vector<8x16xbf16>, vector<2x16xf32> -> vector<2x16xf32>
    %c0_8 = arith.constant 0 : index
    %c0_9 = arith.constant 0 : index
    %25 = vector.load %arg3[%c0_8, %c0_9] : memref<2x16xf32, #tpu.memory_space<vmem>>, vector<2x16xf32>
    %c0_10 = arith.constant 0 : index
    %c0_11 = arith.constant 0 : index
    %26 = vector.load %arg4[%c0_10, %c0_11] : memref<2x16xf32, #tpu.memory_space<vmem>>, vector<2x16xf32>
    %c0_12 = arith.constant 0 : index
    %c0_13 = arith.constant 0 : index
    %27 = vector.load %arg8[%c0_12, %c0_13] : memref<1x16xf32, #tpu.memory_space<vmem>>, vector<1x16xf32>
    %28 = arith.truncf %25 : vector<2x16xf32> to vector<2x16xbf16>
    %c0_14 = arith.constant 0 : index
    %c0_15 = arith.constant 0 : index
    %29 = vector.load %arg7[%c0_14, %c0_15] : memref<64x16xbf16, #tpu.memory_space<vmem>>, vector<16x16xbf16>
    %cst_16 = arith.constant dense<0.000000e+00> : vector<2x16xf32>
    %30 = tpu.matmul %28, %29, %cst_16 {dimension_numbers = #tpu.dot_dimension_numbers<[1], [0], [0], [1], [0, 0, 1, 1], [], []>} : vector<2x16xbf16>, vector<16x16xbf16>, vector<2x16xf32> -> vector<2x16xf32>
    %31 = vector.broadcast %27 : vector<1x16xf32> to vector<2x16xf32>
    %32 = arith.addf %31, %30 : vector<2x16xf32>
    %33 = arith.truncf %26 : vector<2x16xf32> to vector<2x16xbf16>
    %c16 = arith.constant 16 : index
    %c0_17 = arith.constant 0 : index
    %34 = vector.load %arg7[%c16, %c0_17] : memref<64x16xbf16, #tpu.memory_space<vmem>>, vector<16x16xbf16>
    %cst_18 = arith.constant dense<0.000000e+00> : vector<2x16xf32>
    %35 = tpu.matmul %33, %34, %cst_18 {dimension_numbers = #tpu.dot_dimension_numbers<[1], [0], [0], [1], [0, 0, 1, 1], [], []>} : vector<2x16xbf16>, vector<16x16xbf16>, vector<2x16xf32> -> vector<2x16xf32>
    %36 = arith.addf %32, %35 : vector<2x16xf32>
    %37 = arith.truncf %21 : vector<2x16xf32> to vector<2x16xbf16>
    %c32 = arith.constant 32 : index
    %c0_19 = arith.constant 0 : index
    %38 = vector.load %arg7[%c32, %c0_19] : memref<64x16xbf16, #tpu.memory_space<vmem>>, vector<16x16xbf16>
    %cst_20 = arith.constant dense<0.000000e+00> : vector<2x16xf32>
    %39 = tpu.matmul %37, %38, %cst_20 {dimension_numbers = #tpu.dot_dimension_numbers<[1], [0], [0], [1], [0, 0, 1, 1], [], []>} : vector<2x16xbf16>, vector<16x16xbf16>, vector<2x16xf32> -> vector<2x16xf32>
    %40 = arith.addf %36, %39 : vector<2x16xf32>
    %41 = arith.truncf %24 : vector<2x16xf32> to vector<2x16xbf16>
    %c48 = arith.constant 48 : index
    %c0_21 = arith.constant 0 : index
    %42 = vector.load %arg7[%c48, %c0_21] : memref<64x16xbf16, #tpu.memory_space<vmem>>, vector<16x16xbf16>
    %cst_22 = arith.constant dense<0.000000e+00> : vector<2x16xf32>
    %43 = tpu.matmul %41, %42, %cst_22 {dimension_numbers = #tpu.dot_dimension_numbers<[1], [0], [0], [1], [0, 0, 1, 1], [], []>} : vector<2x16xbf16>, vector<16x16xbf16>, vector<2x16xf32> -> vector<2x16xf32>
    %44 = arith.addf %40, %43 : vector<2x16xf32>
    %cst_23 = arith.constant 0.000000e+00 : f32
    %45 = vector.broadcast %cst_23 : f32 to vector<2x16xf32>
    %46 = arith.maximumf %44, %45 : vector<2x16xf32>
    %47 = arith.truncf %46 : vector<2x16xf32> to vector<2x16xbf16>
    %c0_24 = arith.constant 0 : index
    %c0_25 = arith.constant 0 : index
    %48 = vector.load %arg9[%c0_24, %c0_25] : memref<16x16xbf16, #tpu.memory_space<vmem>>, vector<16x16xbf16>
    %cst_26 = arith.constant dense<0.000000e+00> : vector<2x16xf32>
    %49 = tpu.matmul %47, %48, %cst_26 {dimension_numbers = #tpu.dot_dimension_numbers<[1], [0], [0], [1], [0, 0, 1, 1], [], []>} : vector<2x16xbf16>, vector<16x16xbf16>, vector<2x16xf32> -> vector<2x16xf32>
    %c0_27 = arith.constant 0 : index
    %c0_28 = arith.constant 0 : index
    %50 = vector.load %arg10[%c0_27, %c0_28] : memref<3x16xf32, #tpu.memory_space<vmem>>, vector<3x16xf32>
    %51 = vector.extract_strided_slice %50 {offsets = [0, 0], sizes = [1, 16], strides = [1, 1]} : vector<3x16xf32> to vector<1x16xf32>
    %52 = vector.broadcast %51 : vector<1x16xf32> to vector<2x16xf32>
    %53 = arith.addf %49, %52 : vector<2x16xf32>
    %cst_29 = arith.constant dense<0.000000e+00> : vector<2xf32>
    %54 = vector.multi_reduction <add>, %53, %cst_29 [1] : vector<2x16xf32> to vector<2xf32>
    %55 = vector.shape_cast %54 : vector<2xf32> to vector<2x1xf32>
    %cst_30 = arith.constant 1.600000e+01 : f32
    %56 = vector.broadcast %cst_30 : f32 to vector<2x1xf32>
    %57 = arith.divf %55, %56 : vector<2x1xf32>
    %58 = vector.broadcast %57 : vector<2x1xf32> to vector<2x16xf32>
    %59 = arith.subf %53, %58 : vector<2x16xf32>
    %60 = arith.mulf %59, %59 : vector<2x16xf32>
    %cst_31 = arith.constant dense<0.000000e+00> : vector<2xf32>
    %61 = vector.multi_reduction <add>, %60, %cst_31 [1] : vector<2x16xf32> to vector<2xf32>
    %62 = vector.shape_cast %61 : vector<2xf32> to vector<2x1xf32>
    %cst_32 = arith.constant 1.600000e+01 : f32
    %63 = vector.broadcast %cst_32 : f32 to vector<2x1xf32>
    %64 = arith.divf %62, %63 : vector<2x1xf32>
    %65 = vector.broadcast %57 : vector<2x1xf32> to vector<2x16xf32>
    %66 = arith.subf %53, %65 : vector<2x16xf32>
    %cst_33 = arith.constant 9.99999974E-6 : f32
    %67 = vector.broadcast %cst_33 : f32 to vector<2x1xf32>
    %68 = arith.addf %64, %67 : vector<2x1xf32>
    %69 = math.rsqrt %68 : vector<2x1xf32>
    %70 = vector.broadcast %69 : vector<2x1xf32> to vector<2x16xf32>
    %71 = arith.mulf %66, %70 : vector<2x16xf32>
    %72 = vector.extract_strided_slice %50 {offsets = [1, 0], sizes = [1, 16], strides = [1, 1]} : vector<3x16xf32> to vector<1x16xf32>
    %73 = vector.broadcast %72 : vector<1x16xf32> to vector<2x16xf32>
    %74 = arith.mulf %71, %73 : vector<2x16xf32>
    %75 = vector.extract_strided_slice %50 {offsets = [2, 0], sizes = [1, 16], strides = [1, 1]} : vector<3x16xf32> to vector<1x16xf32>
    %76 = vector.broadcast %75 : vector<1x16xf32> to vector<2x16xf32>
    %77 = arith.addf %74, %76 : vector<2x16xf32>
    %c0_34 = arith.constant 0 : index
    %c0_35 = arith.constant 0 : index
    %78 = vector.load %arg11[%c0_34, %c0_35] : memref<2x16xf32, #tpu.memory_space<vmem>>, vector<2x16xf32>
    tpu.vector_store %arg11[%c0_34, %c0_35], %77 {strides = array<i32>} : memref<2x16xf32, #tpu.memory_space<vmem>>, vector<2x16xf32>,
    return
  }
  func.func @transform_0(%arg0: i32) -> (i32, i32) {
    %c0_i32 = arith.constant 0 : i32
    %c0_i32_0 = arith.constant 0 : i32
    %c0_i32_1 = arith.constant 0 : i32
    return %c0_i32, %c0_i32_0 : i32, i32
  }
  func.func @transform_1(%arg0: i32) -> (i32, i32) {
    %c0_i32 = arith.constant 0 : i32
    %c0_i32_0 = arith.constant 0 : i32
    %c0_i32_1 = arith.constant 0 : i32
    return %c0_i32, %c0_i32_0 : i32, i32
  }
  func.func @transform_2(%arg0: i32) -> (i32, i32) {
    %c0_i32 = arith.constant 0 : i32
    %c0_i32_0 = arith.constant 0 : i32
    return %arg0, %c0_i32 : i32, i32
  }
  func.func @transform_3(%arg0: i32) -> (i32, i32) {
    %c0_i32 = arith.constant 0 : i32
    %c0_i32_0 = arith.constant 0 : i32
    return %arg0, %c0_i32 : i32, i32
  }
  func.func @transform_4(%arg0: i32) -> (i32, i32) {
    %c0_i32 = arith.constant 0 : i32
    %c0_i32_0 = arith.constant 0 : i32
    %c0_i32_1 = arith.constant 0 : i32
    return %c0_i32, %c0_i32_0 : i32, i32
  }
  func.func @transform_5(%arg0: i32) -> (i32, i32) {
    %c0_i32 = arith.constant 0 : i32
    %c0_i32_0 = arith.constant 0 : i32
    %c0_i32_1 = arith.constant 0 : i32
    return %c0_i32, %c0_i32_0 : i32, i32
  }
  func.func @transform_6(%arg0: i32) -> (i32, i32) {
    %c0_i32 = arith.constant 0 : i32
    %c0_i32_0 = arith.constant 0 : i32
    %c0_i32_1 = arith.constant 0 : i32
    return %c0_i32, %c0_i32_0 : i32, i32
  }
  func.func @transform_7(%arg0: i32) -> (i32, i32) {
    %c0_i32 = arith.constant 0 : i32
    %c0_i32_0 = arith.constant 0 : i32
    %c0_i32_1 = arith.constant 0 : i32
    return %c0_i32, %c0_i32_0 : i32, i32
  }
  func.func @transform_8(%arg0: i32) -> (i32, i32) {
    %c0_i32 = arith.constant 0 : i32
    %c0_i32_0 = arith.constant 0 : i32
    %c0_i32_1 = arith.constant 0 : i32
    return %c0_i32, %c0_i32_0 : i32, i32
  }
  func.func @transform_9(%arg0: i32) -> (i32, i32) {
    %c0_i32 = arith.constant 0 : i32
    %c0_i32_0 = arith.constant 0 : i32
    %c0_i32_1 = arith.constant 0 : i32
    return %c0_i32, %c0_i32_0 : i32, i32
  }
  func.func @transform_10(%arg0: i32) -> (i32, i32) {
    %c0_i32 = arith.constant 0 : i32
    %c0_i32_0 = arith.constant 0 : i32
    return %arg0, %c0_i32 : i32, i32
  }
}

module attributes {stable_mosaic.version = 11 : i64} {
  func.func @_mlp_ln_kernel(%arg0: i32, %arg1: memref<8x16xf32, #tpu.memory_space<vmem>>, %arg2: memref<16x8xbf16, #tpu.memory_space<vmem>>, %arg3: memref<1x8xf32, #tpu.memory_space<vmem>>, %arg4: memref<8x8xbf16, #tpu.memory_space<vmem>>, %arg5: memref<3x8xf32, #tpu.memory_space<vmem>>, %arg6: memref<8x8xf32, #tpu.memory_space<vmem>>) attributes {dimension_semantics = [#tpu.dimension_semantics<parallel>], iteration_bounds = array<i64: 1>, scalar_prefetch = 0 : i64, scratch_operands = 0 : i64, tpu.core_type = #tpu.core_type<tc>, window_params = [{transform_indices = @transform_0, window_bounds = array<i64: 8, 16>}, {pipeline_mode = #tpu.pipeline_mode<synchronous>, transform_indices = @transform_1, window_bounds = array<i64: 16, 8>}, {pipeline_mode = #tpu.pipeline_mode<synchronous>, transform_indices = @transform_2, window_bounds = array<i64: 1, 8>}, {pipeline_mode = #tpu.pipeline_mode<synchronous>, transform_indices = @transform_3, window_bounds = array<i64: 8, 8>}, {pipeline_mode = #tpu.pipeline_mode<synchronous>, transform_indices = @transform_4, window_bounds = array<i64: 3, 8>}, {transform_indices = @transform_5, window_bounds = array<i64: 8, 8>}]} {
    %c0 = arith.constant 0 : index
    %c0_0 = arith.constant 0 : index
    %0 = vector.load %arg1[%c0, %c0_0] : memref<8x16xf32, #tpu.memory_space<vmem>>, vector<8x16xf32>
    %c0_1 = arith.constant 0 : index
    %c0_2 = arith.constant 0 : index
    %1 = vector.load %arg3[%c0_1, %c0_2] : memref<1x8xf32, #tpu.memory_space<vmem>>, vector<1x8xf32>
    %2 = arith.truncf %0 : vector<8x16xf32> to vector<8x16xbf16>
    %c0_3 = arith.constant 0 : index
    %c0_4 = arith.constant 0 : index
    %3 = vector.load %arg2[%c0_3, %c0_4] : memref<16x8xbf16, #tpu.memory_space<vmem>>, vector<16x8xbf16>
    %cst = arith.constant dense<0.000000e+00> : vector<8x8xf32>
    %4 = tpu.matmul %2, %3, %cst {dimension_numbers = #tpu.dot_dimension_numbers<[1], [0], [0], [1], [0, 0, 1, 1], [], []>} : vector<8x16xbf16>, vector<16x8xbf16>, vector<8x8xf32> -> vector<8x8xf32>
    %5 = vector.broadcast %1 : vector<1x8xf32> to vector<8x8xf32>
    %6 = arith.addf %5, %4 : vector<8x8xf32>
    %cst_5 = arith.constant 0.000000e+00 : f32
    %7 = vector.broadcast %cst_5 : f32 to vector<8x8xf32>
    %8 = arith.maximumf %6, %7 : vector<8x8xf32>
    %9 = arith.truncf %8 : vector<8x8xf32> to vector<8x8xbf16>
    %c0_6 = arith.constant 0 : index
    %c0_7 = arith.constant 0 : index
    %10 = vector.load %arg4[%c0_6, %c0_7] : memref<8x8xbf16, #tpu.memory_space<vmem>>, vector<8x8xbf16>
    %cst_8 = arith.constant dense<0.000000e+00> : vector<8x8xf32>
    %11 = tpu.matmul %9, %10, %cst_8 {dimension_numbers = #tpu.dot_dimension_numbers<[1], [0], [0], [1], [0, 0, 1, 1], [], []>} : vector<8x8xbf16>, vector<8x8xbf16>, vector<8x8xf32> -> vector<8x8xf32>
    %c0_9 = arith.constant 0 : index
    %c0_10 = arith.constant 0 : index
    %12 = vector.load %arg5[%c0_9, %c0_10] : memref<3x8xf32, #tpu.memory_space<vmem>>, vector<3x8xf32>
    %13 = vector.extract_strided_slice %12 {offsets = [0, 0], sizes = [1, 8], strides = [1, 1]} : vector<3x8xf32> to vector<1x8xf32>
    %14 = vector.broadcast %13 : vector<1x8xf32> to vector<8x8xf32>
    %15 = arith.addf %11, %14 : vector<8x8xf32>
    %cst_11 = arith.constant dense<0.000000e+00> : vector<8xf32>
    %16 = vector.multi_reduction <add>, %15, %cst_11 [1] : vector<8x8xf32> to vector<8xf32>
    %17 = vector.shape_cast %16 : vector<8xf32> to vector<8x1xf32>
    %cst_12 = arith.constant 8.000000e+00 : f32
    %18 = vector.broadcast %cst_12 : f32 to vector<8x1xf32>
    %19 = arith.divf %17, %18 : vector<8x1xf32>
    %20 = vector.broadcast %19 : vector<8x1xf32> to vector<8x8xf32>
    %21 = arith.subf %15, %20 : vector<8x8xf32>
    %22 = arith.mulf %21, %21 : vector<8x8xf32>
    %cst_13 = arith.constant dense<0.000000e+00> : vector<8xf32>
    %23 = vector.multi_reduction <add>, %22, %cst_13 [1] : vector<8x8xf32> to vector<8xf32>
    %24 = vector.shape_cast %23 : vector<8xf32> to vector<8x1xf32>
    %cst_14 = arith.constant 8.000000e+00 : f32
    %25 = vector.broadcast %cst_14 : f32 to vector<8x1xf32>
    %26 = arith.divf %24, %25 : vector<8x1xf32>
    %27 = vector.broadcast %19 : vector<8x1xf32> to vector<8x8xf32>
    %28 = arith.subf %15, %27 : vector<8x8xf32>
    %cst_15 = arith.constant 9.99999974E-6 : f32
    %29 = vector.broadcast %cst_15 : f32 to vector<8x1xf32>
    %30 = arith.addf %26, %29 : vector<8x1xf32>
    %31 = math.rsqrt %30 : vector<8x1xf32>
    %32 = vector.broadcast %31 : vector<8x1xf32> to vector<8x8xf32>
    %33 = arith.mulf %28, %32 : vector<8x8xf32>
    %34 = vector.extract_strided_slice %12 {offsets = [1, 0], sizes = [1, 8], strides = [1, 1]} : vector<3x8xf32> to vector<1x8xf32>
    %35 = vector.broadcast %34 : vector<1x8xf32> to vector<8x8xf32>
    %36 = arith.mulf %33, %35 : vector<8x8xf32>
    %37 = vector.extract_strided_slice %12 {offsets = [2, 0], sizes = [1, 8], strides = [1, 1]} : vector<3x8xf32> to vector<1x8xf32>
    %38 = vector.broadcast %37 : vector<1x8xf32> to vector<8x8xf32>
    %39 = arith.addf %36, %38 : vector<8x8xf32>
    %c0_16 = arith.constant 0 : index
    %c0_17 = arith.constant 0 : index
    %40 = vector.load %arg6[%c0_16, %c0_17] : memref<8x8xf32, #tpu.memory_space<vmem>>, vector<8x8xf32>
    tpu.vector_store %arg6[%c0_16, %c0_17], %39 {strides = array<i32>} : memref<8x8xf32, #tpu.memory_space<vmem>>, vector<8x8xf32>,
    return
  }
  func.func @transform_0(%arg0: i32) -> (i32, i32) {
    %c0_i32 = arith.constant 0 : i32
    %c0_i32_0 = arith.constant 0 : i32
    return %arg0, %c0_i32 : i32, i32
  }
  func.func @transform_1(%arg0: i32) -> (i32, i32) {
    %c0_i32 = arith.constant 0 : i32
    %c0_i32_0 = arith.constant 0 : i32
    %c0_i32_1 = arith.constant 0 : i32
    return %c0_i32, %c0_i32_0 : i32, i32
  }
  func.func @transform_2(%arg0: i32) -> (i32, i32) {
    %c0_i32 = arith.constant 0 : i32
    %c0_i32_0 = arith.constant 0 : i32
    %c0_i32_1 = arith.constant 0 : i32
    return %c0_i32, %c0_i32_0 : i32, i32
  }
  func.func @transform_3(%arg0: i32) -> (i32, i32) {
    %c0_i32 = arith.constant 0 : i32
    %c0_i32_0 = arith.constant 0 : i32
    %c0_i32_1 = arith.constant 0 : i32
    return %c0_i32, %c0_i32_0 : i32, i32
  }
  func.func @transform_4(%arg0: i32) -> (i32, i32) {
    %c0_i32 = arith.constant 0 : i32
    %c0_i32_0 = arith.constant 0 : i32
    %c0_i32_1 = arith.constant 0 : i32
    return %c0_i32, %c0_i32_0 : i32, i32
  }
  func.func @transform_5(%arg0: i32) -> (i32, i32) {
    %c0_i32 = arith.constant 0 : i32
    %c0_i32_0 = arith.constant 0 : i32
    return %arg0, %c0_i32 : i32, i32
  }
}

</mosaic_0001>

<bundles_post_ra>
// kernel: _epd_core_pallas.15
= control target key start
LH: loop header
LB: loop body
LE: loop exit
PB: predicated region body
PF: predicated region fallthrough
CT: control target
= control target key end

     0   :  { %10 = vsyncpa [#allocation3], 0  ;;  %s538_s0 = inlined_call_operand.hbm [shape: f32[8,6], index: 0, kind: input, shape index: {}]   ;;  %s539_s1 = inlined_call_operand.hbm [shape: bf16[6,16], index: 1, kind: input, shape index: {}]   ;;  %s540_s2 = inlined_call_operand.hbm [shape: f32[1,16], index: 2, kind: input, shape index: {}]   ;;  %s541_s3 = inlined_call_operand.hbm [shape: bf16[16,16], index: 3, kind: input, shape index: {}]   ;;  %s542_s4 = inlined_call_operand.hbm [shape: f32[3,16], index: 4, kind: input, shape index: {}]   ;;  %s543_s5 = inlined_call_operand.hbm [shape: f32[8,16], index: 5, kind: output, shape index: {}]  }
   0x1   :  { %11 = vsyncpa [#allocation6], 0 }
   0x2   :  { %12 = vsyncpa [#allocation9], 0 }
   0x3   :  { %13 = vsyncpa [#allocation4], 0  ;;  %s415_s18 = smov [#allocation5]   ;;  %s416_s20 = smov [#allocation8]  }
   0x4   :  { %s30_s19 = sshll.u32 %s415_s18, 4  ;;  %s49_s21 = sshll.u32 %s416_s20, 4  ;;  %s31_s19 = int_to_ptr.vmem [resolvable:$true] %s30_s19  ;;  %s455_s21 = int_to_ptr.vmem [resolvable:$true] %s49_s21 }
   0x5   :  { %s275_s24 = scalar_lea.hbm %s539_s1, 64 }
   0x6   :  { %p276_p0 = scmp.ne.s32.totalorder %s539_s1, %s275_s24  ;;  %p279_p1 = scmp.lt.u32.totalorder %s275_s24, %s539_s1 }
   0x8   :  { %p281_p2 = pnand %p279_p1, %p276_p0 }
   0xa   :  { %284 = shalt.err (!%p281_p2)
}
   0xb   :  { %s285_s29 = scalar_lea.vmem %s31_s19, 64  ;;  %p290_p4 = scmp.lt.s32.totalorder %s31_s19, %s31_s19 }
   0xc   :  { %p286_p3 = scmp.ne.s32.totalorder %s31_s19, %s285_s29  ;;  %p291_p5 = scmp.lt.s32.totalorder %s285_s29, %s285_s29 }
   0xe   :  { %p292_p6 = por %p291_p5, %p290_p4 }
  0x10   :  { %p293_p7 = pnand %p292_p6, %p286_p3 }
  0x12   :  { %296 = shalt.err (!%p293_p7)
}
  0x13   :  { %33 = dma.hbm_to_vmem [thread:$0]  %s539_s1, 64, %s31_s19, [#allocation6]  }
  0x14   :  { %s297_s9 = scalar_lea.hbm %s541_s3, 128 }
  0x15   :  { %p298_p8 = scmp.ne.s32.totalorder %s541_s3, %s297_s9  ;;  %p301_p9 = scmp.lt.u32.totalorder %s297_s9, %s541_s3 }
  0x17   :  { %p303_p10 = pnand %p301_p9, %p298_p8 }
  0x19   :  { %306 = shalt.err (!%p303_p10)
}
  0x1a   :  { %s307_s14 = scalar_lea.vmem %s455_s21, 128  ;;  %p312_p12 = scmp.lt.s32.totalorder %s455_s21, %s455_s21 }
  0x1b   :  { %p308_p11 = scmp.ne.s32.totalorder %s455_s21, %s307_s14  ;;  %p313_p13 = scmp.lt.s32.totalorder %s307_s14, %s307_s14 }
  0x1d   :  { %p314_p0 = por %p313_p13, %p312_p12 }
  0x1f   :  { %p315_p1 = pnand %p314_p0, %p308_p11 }
  0x21   :  { %318 = shalt.err (!%p315_p1)
}
  0x22   :  { %s417_s1 = smov 64   ;;  %s418_s15 = smov 4  }
  0x23   :  { %55 = dma.hbm_to_vmem [thread:$0]  %s541_s3, 128, %s455_s21, [#allocation9], %s417_s1, %s417_s1, %s418_s15  }
  0x24   :  { %s419_s18 = smov [#allocation2]   ;;  %s420_s20 = smov [#allocation7]  }
  0x25   :  { %s20_s19 = sshll.u32 %s419_s18, 4  ;;  %s40_s22 = sshll.u32 %s420_s20, 4  ;;  %s21_s19 = int_to_ptr.vmem [resolvable:$true] %s20_s19  ;;  %s41_s22 = int_to_ptr.vmem [resolvable:$true] %s40_s22 }
  0x26   :  { %s319_s25 = scalar_lea.hbm %s538_s0, 128 }
  0x27   :  { %p320_p2 = scmp.ne.s32.totalorder %s538_s0, %s319_s25  ;;  %p323_p3 = scmp.lt.u32.totalorder %s319_s25, %s538_s0 }
  0x29   :  { %p325_p4 = pnand %p323_p3, %p320_p2 }
  0x2b   :  { %328 = shalt.err (!%p325_p4)
}
  0x2c   :  { %s329_s3 = scalar_lea.vmem %s21_s19, 128  ;;  %p334_p6 = scmp.lt.s32.totalorder %s21_s19, %s21_s19 }
  0x2d   :  { %p330_p5 = scmp.ne.s32.totalorder %s21_s19, %s329_s3  ;;  %p335_p7 = scmp.lt.s32.totalorder %s329_s3, %s329_s3 }
  0x2f   :  { %p336_p8 = por %p335_p7, %p334_p6 }
  0x31   :  { %p337_p9 = pnand %p336_p8, %p330_p5 }
  0x33   :  { %340 = shalt.err (!%p337_p9)
}
  0x34   :  { %23 = dma.hbm_to_vmem [thread:$0]  %s538_s0, 128, %s21_s19, [#allocation3]  }
  0x35   :  { %s341_s8 = scalar_lea.hbm %s540_s2, 16 }
  0x36   :  { %p342_p10 = scmp.ne.s32.totalorder %s540_s2, %s341_s8  ;;  %p345_p11 = scmp.lt.u32.totalorder %s341_s8, %s540_s2 }
  0x38   :  { %p347_p12 = pnand %p345_p11, %p342_p10 }
  0x3a   :  { %350 = shalt.err (!%p347_p12)
}
  0x3b   :  { %s351_s13 = scalar_lea.vmem %s41_s22, 16  ;;  %s355_s14 = scalar_lea.vmem %s41_s22, 32 }
  0x3c   :  { %p352_p13 = scmp.ne.s32.totalorder %s41_s22, %s351_s13  ;;  %p356_p0 = scmp.lt.s32.totalorder %s41_s22, %s41_s22 }
  0x3d   :  { %p357_p1 = scmp.lt.s32.totalorder %s355_s14, %s351_s13 }
  0x3f   :  { %p358_p2 = por %p357_p1, %p356_p0 }
  0x41   :  { %p359_p3 = pnand %p358_p2, %p352_p13 }
  0x43   :  { %362 = shalt.err (!%p359_p3)
}
  0x44   :  { %43 = dma.hbm_to_vmem [thread:$0]  %s540_s2, 16, %s41_s22, [#allocation6]  }
  0x45   :  { %s421_s15 = smov [#allocation10]   ;;  %s363_s19 = scalar_lea.hbm %s542_s4, 64 }
  0x46   :  { %s62_s16 = sshll.u32 %s421_s15, 4  ;;  %p364_p4 = scmp.ne.s32.totalorder %s542_s4, %s363_s19  ;;  %s63_s16 = int_to_ptr.vmem [resolvable:$true] %s62_s16 }
  0x47   :  { %p367_p5 = scmp.lt.u32.totalorder %s363_s19, %s542_s4 }
  0x49   :  { %p369_p6 = pnand %p367_p5, %p364_p4 }
  0x4b   :  { %372 = shalt.err (!%p369_p6)
}
  0x4c   :  { %s373_s26 = scalar_lea.vmem %s63_s16, 64  ;;  %p378_p8 = scmp.lt.s32.totalorder %s63_s16, %s63_s16 }
  0x4d   :  { %p374_p7 = scmp.ne.s32.totalorder %s63_s16, %s373_s26  ;;  %p379_p9 = scmp.lt.s32.totalorder %s373_s26, %s373_s26 }
  0x4f   :  { %p380_p10 = por %p379_p9, %p378_p8 }
  0x51   :  { %p381_p11 = pnand %p380_p10, %p374_p7 }
  0x53   :  { %384 = shalt.err (!%p381_p11)
}
  0x54   :  { %65 = dma.hbm_to_vmem [thread:$0]  %s542_s4, 64, %s63_s16, [#allocation9]  }
  0x55   :  { %407 = dma.done.wait [#allocation3], 128  }
  0x56   :  { %408 = vsyncadd [#allocation3], 4294967168 }
  0x57   :  { %409 = dma.done.wait [#allocation6], 80  }
  0x58   :  { %410 = vsyncadd [#allocation6], 4294967216 }
  0x59   :  { %411 = dma.done.wait [#allocation9], 192  }
  0x5a   :  { %412 = vsyncadd [#allocation9], 4294967104  ;;  %v422_v0 = vmov 0.0   ;;  %vm423_vm0 = vmmov 0   ;;  %vm90_vm1 = vcmask 1042432   ;;  %v82_v2 = vld [vmem:[#allocation2] sm:$0xff]  ;;  %v146_v14 = vlaneseq }
  0x5b   :  { %250 = vmatprep.subr.bf16.mxu0 %v422_v0  ;;  %252 = vmatprep.mubr.msk.bf16.mxu0 %vm423_vm0, %v422_v0  ;;  %v85_v1 = vld [vmem:[#allocation5] sm:$0x7]  ;;  %v84_v4 = vpack.c.bf16 %v82_v2, %v82_v2  ;;  %vm86_vm2 = vcmask 48128   ;;  %v272_v5 = vld [vmem:[#allocation8] sm:$0xff]   ;;  %v243_v6 = vld [vmem:[#allocation7] ss:$0 sm:$0xff] }
  0x5c   :  { %256 = vmatprep.subr.bf16.mxu1 %v422_v0  ;;  %258 = vmatprep.mubr.msk.bf16.mxu1 %vm423_vm0, %v422_v0  ;;  %v92_v3 = vsel %vm90_vm1, %v85_v1, 0  ;;  %vm156_vm3 = vcmask 130048   ;;  %v147_v15 = vshrl.u32 %v146_v14, 7  ;;  %v145_v17 = vld [vmem:[#allocation10] sm:$0x7]  ;;  %s424_s4 = smov [#allocation11]  }
  0x5d   :  { %251 = vmatpush3.bf16.msra.mxu0 %v92_v3  ;;  %257 = vmatpush3.bf16.msra.mxu1 %v272_v5  ;;  %s231_s27 = sshll.u32 %s424_s4, 4  ;;  %s232_s27 = int_to_ptr.vmem [resolvable:$true] %s231_s27 }
  0x5e   :  { %v148_v16 = vsub.s32 0, %v147_v15  ;;  %v216_v33 = vsub.s32 1, %v147_v15  ;;  %v221_v34 = vsub.s32 2, %v147_v15  ;;  %s385_s28 = scalar_lea.vmem %s232_s27, 128  ;;  %p390_p13 = scmp.lt.s32.totalorder %s232_s27, %s232_s27 }
  0x5f   :  { %p386_p12 = scmp.ne.s32.totalorder %s232_s27, %s385_s28  ;;  %p391_p0 = scmp.lt.s32.totalorder %s385_s28, %s385_s28 }
  0x60   :  { %253 = vmatmul.mubr.msk.bf16.vlgmr.msra.gmra.mrb[0].mxu0 %vm86_vm2, %v84_v4  ;;  %v149_v18 = vrot.slane %v145_v17, %v148_v16  ;;  %v217_v35 = vrot.slane %v145_v17, %v216_v33  ;;  %v222_v37 = vrot.slane %v145_v17, %v221_v34 }
  0x61   :  { %p392_p1 = por %p391_p0, %p390_p13 }
  0x63   :  { %p393_p2 = pnand %p392_p1, %p386_p12 }
 0x133   :  { %v128_v7 = vpop.f32.mrb[0].mxu0 }
 0x134   :  { %v140_v8 = vadd.f32 %v243_v6, %v128_v7  ;;  %v254_v9 = vpop.f32.mrb[1].mxu0 }
 0x135   :  { %v131_v10 = vpop.f32.mrb[2].mxu0 }
 0x136   :  { %v141_v11 = vmax.f32 %v140_v8, 0.0  ;;  %v255_v12 = vpop.f32.mrb[3].mxu0 }
 0x138   :  { %v142_v13 = vpack.c.bf16 %v141_v11, %v141_v11 }
 0x13a   :  { %259 = vmatmul.mubr.msk.bf16.vlgmr.msra.gmra.mrb[0].mxu1 %vm156_vm3, %v142_v13 }
 0x20d   :  { %v194_v19 = vpop.f32.mrb[0].mxu1 }
 0x20e   :  { %v195_v20 = vadd.f32 %v194_v19, %v149_v18  ;;  %v260_v21 = vpop.f32.mrb[1].mxu1 }
 0x20f   :  { %v197_v22 = vpop.f32.mrb[2].mxu1 }
 0x210   :  { %v261_v23 = vpop.f32.mrb[3].mxu1  ;;  %v200_v24 = vsel %vm156_vm3, %v195_v20, 0.0 }
 0x211   :  { %201 = vadd.xlane.f32.xlu0 %v200_v24 }
 0x29e   :  { %v202_v25 = vpop.xlane.xlu0 %201 }
 0x29f   :  { %v204_v26 = vmul.f32 0.0625, %v202_v25 }
 0x2a1   :  { %v205_v27 = vsub.f32 %v195_v20, %v204_v26 }
 0x2a3   :  { %v206_v28 = vmul.f32 %v205_v27, %v205_v27 }
 0x2a5   :  { %v207_v29 = vsel %vm156_vm3, %v206_v28, 0.0 }
 0x2a6   :  { %208 = vadd.xlane.f32.xlu0 %v207_v29 }
 0x333   :  { %v209_v30 = vpop.xlane.xlu0 %208 }
 0x334   :  { %v210_v31 = vmul.f32 0.0625, %v209_v30 }
 0x336   :  { %v211_v32 = vadd.f32 1e-05, %v210_v31 }
 0x338   :  { %273 = vrsqrt.f32 %v211_v32 }
 0x342   :  { %v274_v36 = vpop.eup %273 }
 0x343   :  { %v213_v38 = vmul.f32 %v274_v36, %v205_v27 }
 0x345   :  { %v218_v39 = vmul.f32 %v217_v35, %v213_v38 }
 0x347   :  { %v223_v40 = vadd.f32 %v222_v37, %v218_v39 }
 0x349   :  { %224 = vst.msk [vmem:[#allocation11] sm:$0xff] %vm156_vm3, %v223_v40 }
 0x34a   :  { %396 = shalt.err (!%p393_p2)
}
 0x34b   :  { %s397_s21 = scalar_lea.hbm %s543_s5, 128 }
 0x34c   :  { %p398_p3 = scmp.ne.s32.totalorder %s543_s5, %s397_s21  ;;  %p401_p4 = scmp.lt.u32.totalorder %s397_s21, %s543_s5 }
 0x34e   :  { %p403_p5 = pnand %p401_p4, %p398_p3 }
 0x350   :  { %406 = shalt.err (!%p403_p5)
}
 0x351   :  { %234 = dma.vmem_to_hbm [thread:$0]  %s232_s27, 128, %s543_s5, [#allocation4]  }
 0x352   :  { %413 = dma.done.wait [#allocation4], 128  }
 0x353   :  { %414 = vsyncadd [#allocation4], 4294967168 }
 0x354   :  { %238 = vsyncpa [#allocation3], 1 }
 0x355   :  { %239 = vsyncpa [#allocation6], 1 }
 0x356   :  { %240 = vsyncpa [#allocation9], 1 }
 0x357   :  { %241 = vsyncpa [#allocation4], 1 }

// kernel: _epd_core_pallas.17
= control target key start
LH: loop header
LB: loop body
LE: loop exit
PB: predicated region body
PF: predicated region fallthrough
CT: control target
= control target key end

     0   :  { %10 = vsyncpa [#allocation3], 0  ;;  %s543_s0 = inlined_call_operand.hbm [shape: f32[2,3], index: 0, kind: input, shape index: {}]   ;;  %s544_s1 = inlined_call_operand.hbm [shape: bf16[3,16], index: 1, kind: input, shape index: {}]   ;;  %s545_s2 = inlined_call_operand.hbm [shape: f32[1,16], index: 2, kind: input, shape index: {}]   ;;  %s546_s3 = inlined_call_operand.hbm [shape: bf16[16,16], index: 3, kind: input, shape index: {}]   ;;  %s547_s4 = inlined_call_operand.hbm [shape: f32[3,16], index: 4, kind: input, shape index: {}]   ;;  %s548_s5 = inlined_call_operand.hbm [shape: f32[2,16], index: 5, kind: output, shape index: {}]  }
   0x1   :  { %11 = vsyncpa [#allocation6], 0 }
   0x2   :  { %12 = vsyncpa [#allocation9], 0 }
   0x3   :  { %13 = vsyncpa [#allocation4], 0  ;;  %s420_s18 = smov [#allocation5]   ;;  %s421_s20 = smov [#allocation8]  }
   0x4   :  { %s30_s19 = sshll.u32 %s420_s18, 4  ;;  %s49_s21 = sshll.u32 %s421_s20, 4  ;;  %s31_s19 = int_to_ptr.vmem [resolvable:$true] %s30_s19  ;;  %s461_s21 = int_to_ptr.vmem [resolvable:$true] %s49_s21 }
   0x5   :  { %s280_s24 = scalar_lea.hbm %s544_s1, 32 }
   0x6   :  { %p281_p0 = scmp.ne.s32.totalorder %s544_s1, %s280_s24  ;;  %p284_p1 = scmp.lt.u32.totalorder %s280_s24, %s544_s1 }
   0x8   :  { %p286_p2 = pnand %p284_p1, %p281_p0 }
   0xa   :  { %289 = shalt.err (!%p286_p2)
}
   0xb   :  { %s290_s29 = scalar_lea.vmem %s31_s19, 32  ;;  %p295_p4 = scmp.lt.s32.totalorder %s31_s19, %s31_s19 }
   0xc   :  { %p291_p3 = scmp.ne.s32.totalorder %s31_s19, %s290_s29  ;;  %p296_p5 = scmp.lt.s32.totalorder %s290_s29, %s290_s29 }
   0xe   :  { %p297_p6 = por %p296_p5, %p295_p4 }
  0x10   :  { %p298_p7 = pnand %p297_p6, %p291_p3 }
  0x12   :  { %301 = shalt.err (!%p298_p7)
}
  0x13   :  { %33 = dma.hbm_to_vmem [thread:$0]  %s544_s1, 32, %s31_s19, [#allocation6]  }
  0x14   :  { %s302_s9 = scalar_lea.hbm %s546_s3, 128 }
  0x15   :  { %p303_p8 = scmp.ne.s32.totalorder %s546_s3, %s302_s9  ;;  %p306_p9 = scmp.lt.u32.totalorder %s302_s9, %s546_s3 }
  0x17   :  { %p308_p10 = pnand %p306_p9, %p303_p8 }
  0x19   :  { %311 = shalt.err (!%p308_p10)
}
  0x1a   :  { %s312_s14 = scalar_lea.vmem %s461_s21, 128  ;;  %p317_p12 = scmp.lt.s32.totalorder %s461_s21, %s461_s21 }
  0x1b   :  { %p313_p11 = scmp.ne.s32.totalorder %s461_s21, %s312_s14  ;;  %p318_p13 = scmp.lt.s32.totalorder %s312_s14, %s312_s14 }
  0x1d   :  { %p319_p0 = por %p318_p13, %p317_p12 }
  0x1f   :  { %p320_p1 = pnand %p319_p0, %p313_p11 }
  0x21   :  { %323 = shalt.err (!%p320_p1)
}
  0x22   :  { %s422_s1 = smov 64   ;;  %s423_s15 = smov 4  }
  0x23   :  { %55 = dma.hbm_to_vmem [thread:$0]  %s546_s3, 128, %s461_s21, [#allocation9], %s422_s1, %s422_s1, %s423_s15  }
  0x24   :  { %s424_s18 = smov [#allocation2]   ;;  %s425_s20 = smov [#allocation7]  }
  0x25   :  { %s20_s19 = sshll.u32 %s424_s18, 4  ;;  %s40_s22 = sshll.u32 %s425_s20, 4  ;;  %s21_s19 = int_to_ptr.vmem [resolvable:$true] %s20_s19  ;;  %s41_s22 = int_to_ptr.vmem [resolvable:$true] %s40_s22 }
  0x26   :  { %s324_s25 = scalar_lea.hbm %s543_s0, 32 }
  0x27   :  { %p325_p2 = scmp.ne.s32.totalorder %s543_s0, %s324_s25  ;;  %p328_p3 = scmp.lt.u32.totalorder %s324_s25, %s543_s0 }
  0x29   :  { %p330_p4 = pnand %p328_p3, %p325_p2 }
  0x2b   :  { %333 = shalt.err (!%p330_p4)
}
  0x2c   :  { %s334_s3 = scalar_lea.vmem %s21_s19, 32  ;;  %p339_p6 = scmp.lt.s32.totalorder %s21_s19, %s21_s19 }
  0x2d   :  { %p335_p5 = scmp.ne.s32.totalorder %s21_s19, %s334_s3  ;;  %p340_p7 = scmp.lt.s32.totalorder %s334_s3, %s334_s3 }
  0x2f   :  { %p341_p8 = por %p340_p7, %p339_p6 }
  0x31   :  { %p342_p9 = pnand %p341_p8, %p335_p5 }
  0x33   :  { %345 = shalt.err (!%p342_p9)
}
  0x34   :  { %23 = dma.hbm_to_vmem [thread:$0]  %s543_s0, 32, %s21_s19, [#allocation3]  }
  0x35   :  { %s346_s8 = scalar_lea.hbm %s545_s2, 16 }
  0x36   :  { %p347_p10 = scmp.ne.s32.totalorder %s545_s2, %s346_s8  ;;  %p350_p11 = scmp.lt.u32.totalorder %s346_s8, %s545_s2 }
  0x38   :  { %p352_p12 = pnand %p350_p11, %p347_p10 }
  0x3a   :  { %355 = shalt.err (!%p352_p12)
}
  0x3b   :  { %s356_s13 = scalar_lea.vmem %s41_s22, 16  ;;  %s360_s14 = scalar_lea.vmem %s41_s22, 32 }
  0x3c   :  { %p357_p13 = scmp.ne.s32.totalorder %s41_s22, %s356_s13  ;;  %p361_p0 = scmp.lt.s32.totalorder %s41_s22, %s41_s22 }
  0x3d   :  { %p362_p1 = scmp.lt.s32.totalorder %s360_s14, %s356_s13 }
  0x3f   :  { %p363_p2 = por %p362_p1, %p361_p0 }
  0x41   :  { %p364_p3 = pnand %p363_p2, %p357_p13 }
  0x43   :  { %367 = shalt.err (!%p364_p3)
}
  0x44   :  { %43 = dma.hbm_to_vmem [thread:$0]  %s545_s2, 16, %s41_s22, [#allocation6]  }
  0x45   :  { %s426_s15 = smov [#allocation10]   ;;  %s368_s19 = scalar_lea.hbm %s547_s4, 64 }
  0x46   :  { %s62_s16 = sshll.u32 %s426_s15, 4  ;;  %p369_p4 = scmp.ne.s32.totalorder %s547_s4, %s368_s19  ;;  %s63_s16 = int_to_ptr.vmem [resolvable:$true] %s62_s16 }
  0x47   :  { %p372_p5 = scmp.lt.u32.totalorder %s368_s19, %s547_s4 }
  0x49   :  { %p374_p6 = pnand %p372_p5, %p369_p4 }
  0x4b   :  { %377 = shalt.err (!%p374_p6)
}
  0x4c   :  { %s378_s26 = scalar_lea.vmem %s63_s16, 64  ;;  %p383_p8 = scmp.lt.s32.totalorder %s63_s16, %s63_s16 }
  0x4d   :  { %p379_p7 = scmp.ne.s32.totalorder %s63_s16, %s378_s26  ;;  %p384_p9 = scmp.lt.s32.totalorder %s378_s26, %s378_s26 }
  0x4f   :  { %p385_p10 = por %p384_p9, %p383_p8 }
  0x51   :  { %p386_p11 = pnand %p385_p10, %p379_p7 }
  0x53   :  { %389 = shalt.err (!%p386_p11)
}
  0x54   :  { %65 = dma.hbm_to_vmem [thread:$0]  %s547_s4, 64, %s63_s16, [#allocation9]  }
  0x55   :  { %412 = dma.done.wait [#allocation3], 32  }
  0x56   :  { %413 = vsyncadd [#allocation3], 4294967264 }
  0x57   :  { %414 = dma.done.wait [#allocation6], 48  }
  0x58   :  { %415 = vsyncadd [#allocation6], 4294967248 }
  0x59   :  { %416 = dma.done.wait [#allocation9], 192  }
  0x5a   :  { %417 = vsyncadd [#allocation9], 4294967104  ;;  %vm90_vm0 = vcmask 1040384   ;;  %v427_v0 = vmov 0.0   ;;  %vm91_vm1 = vcmask 1041408   ;;  %v428_v1 = vmov 65535  }
  0x5b   :  { %254 = vmatprep.subr.bf16.mxu0 %v427_v0  ;;  %260 = vmatprep.subr.bf16.mxu1 %v427_v0  ;;  %v92_v2 = vsel %vm90_vm0, 4294967295, %v428_v1  ;;  %vm429_vm2 = vmmov 0   ;;  %v85_v4 = vld [vmem:[#allocation5] sm:$0x3]  ;;  %v82_v5 = vld [vmem:[#allocation2] sm:$0x3]  ;;  %v149_v17 = vlaneseq }
  0x5c   :  { %256 = vmatprep.mubr.msk.bf16.mxu0 %vm429_vm2, %v427_v0  ;;  %262 = vmatprep.mubr.msk.bf16.mxu1 %vm429_vm2, %v427_v0  ;;  %v93_v3 = vsel %vm91_vm1, %v92_v2, 0  ;;  %v84_v7 = vpack.c.bf16 %v82_v5, %v82_v5  ;;  %vm86_vm3 = vcmask 23552   ;;  %v277_v8 = vld [vmem:[#allocation8] sm:$0xff]   ;;  %v247_v9 = vld [vmem:[#allocation7] ss:$0 sm:$0xff]  ;;  %vm159_vm4 = vcmask 130048  }
  0x5d   :  { %v95_v6 = vand.u32 %v93_v3, %v85_v4  ;;  %261 = vmatpush3.bf16.msra.mxu1 %v277_v8  ;;  %v150_v18 = vshrl.u32 %v149_v17, 7  ;;  %v148_v20 = vld [vmem:[#allocation10] sm:$0x7]  ;;  %vm203_vm5 = vcmask 123904   ;;  %s430_s4 = smov [#allocation11]  }
  0x5e   :  { %s235_s27 = sshll.u32 %s430_s4, 4  ;;  %s236_s27 = int_to_ptr.vmem [resolvable:$true] %s235_s27 }
  0x5f   :  { %255 = vmatpush3.bf16.msra.mxu0 %v95_v6  ;;  %v151_v19 = vsub.s32 0, %v150_v18  ;;  %v220_v36 = vsub.s32 1, %v150_v18  ;;  %v225_v37 = vsub.s32 2, %v150_v18  ;;  %s390_s28 = scalar_lea.vmem %s236_s27, 32  ;;  %p395_p13 = scmp.lt.s32.totalorder %s236_s27, %s236_s27 }
  0x60   :  { %p391_p12 = scmp.ne.s32.totalorder %s236_s27, %s390_s28  ;;  %p396_p0 = scmp.lt.s32.totalorder %s390_s28, %s390_s28 }
  0x61   :  { %v152_v21 = vrot.slane %v148_v20, %v151_v19  ;;  %v221_v38 = vrot.slane %v148_v20, %v220_v36  ;;  %v226_v40 = vrot.slane %v148_v20, %v225_v37 }
  0x62   :  { %257 = vmatmul.mubr.msk.bf16.vlgmr.msra.gmra.mrb[0].mxu0 %vm86_vm3, %v84_v7  ;;  %p397_p1 = por %p396_p0, %p395_p13 }
  0x64   :  { %p398_p2 = pnand %p397_p1, %p391_p12 }
 0x135   :  { %v131_v10 = vpop.f32.mrb[0].mxu0 }
 0x136   :  { %v143_v11 = vadd.f32 %v247_v9, %v131_v10  ;;  %v258_v12 = vpop.f32.mrb[1].mxu0 }
 0x137   :  { %v134_v13 = vpop.f32.mrb[2].mxu0 }
 0x138   :  { %v144_v14 = vmax.f32 %v143_v11, 0.0  ;;  %v259_v15 = vpop.f32.mrb[3].mxu0 }
 0x13a   :  { %v145_v16 = vpack.c.bf16 %v144_v14, %v144_v14 }
 0x13c   :  { %263 = vmatmul.mubr.msk.bf16.vlgmr.msra.gmra.mrb[0].mxu1 %vm159_vm4, %v145_v16 }
 0x20f   :  { %v197_v22 = vpop.f32.mrb[0].mxu1 }
 0x210   :  { %v198_v23 = vadd.f32 %v197_v22, %v152_v21  ;;  %v264_v24 = vpop.f32.mrb[1].mxu1 }
 0x211   :  { %v200_v25 = vpop.f32.mrb[2].mxu1 }
 0x212   :  { %v265_v26 = vpop.f32.mrb[3].mxu1  ;;  %v204_v27 = vsel %vm203_vm5, %v198_v23, 0.0 }
 0x213   :  { %205 = vadd.xlane.f32.xlu0 %v204_v27 }
 0x2a0   :  { %v206_v28 = vpop.xlane.xlu0 %205 }
 0x2a1   :  { %v208_v29 = vmul.f32 0.0625, %v206_v28 }
 0x2a3   :  { %v209_v30 = vsub.f32 %v198_v23, %v208_v29 }
 0x2a5   :  { %v210_v31 = vmul.f32 %v209_v30, %v209_v30 }
 0x2a7   :  { %v211_v32 = vsel %vm203_vm5, %v210_v31, 0.0 }
 0x2a8   :  { %212 = vadd.xlane.f32.xlu0 %v211_v32 }
 0x335   :  { %v213_v33 = vpop.xlane.xlu0 %212 }
 0x336   :  { %v214_v34 = vmul.f32 0.0625, %v213_v33 }
 0x338   :  { %v215_v35 = vadd.f32 1e-05, %v214_v34 }
 0x33a   :  { %278 = vrsqrt.f32 %v215_v35 }
 0x344   :  { %v279_v39 = vpop.eup %278 }
 0x345   :  { %v217_v41 = vmul.f32 %v279_v39, %v209_v30 }
 0x347   :  { %v222_v42 = vmul.f32 %v221_v38, %v217_v41 }
 0x349   :  { %v227_v43 = vadd.f32 %v226_v40, %v222_v42 }
 0x34b   :  { %228 = vst.msk [vmem:[#allocation11] sm:$0x3] %vm203_vm5, %v227_v43 }
 0x34c   :  { %401 = shalt.err (!%p398_p2)
}
 0x34d   :  { %s402_s21 = scalar_lea.hbm %s548_s5, 32 }
 0x34e   :  { %p403_p3 = scmp.ne.s32.totalorder %s548_s5, %s402_s21  ;;  %p406_p4 = scmp.lt.u32.totalorder %s402_s21, %s548_s5 }
 0x350   :  { %p408_p5 = pnand %p406_p4, %p403_p3 }
 0x352   :  { %411 = shalt.err (!%p408_p5)
}
 0x353   :  { %238 = dma.vmem_to_hbm [thread:$0]  %s236_s27, 32, %s548_s5, [#allocation4]  }
 0x354   :  { %418 = dma.done.wait [#allocation4], 32  }
 0x355   :  { %419 = vsyncadd [#allocation4], 4294967264 }
 0x356   :  { %242 = vsyncpa [#allocation3], 1 }
 0x357   :  { %243 = vsyncpa [#allocation6], 1 }
 0x358   :  { %244 = vsyncpa [#allocation9], 1 }
 0x359   :  { %245 = vsyncpa [#allocation4], 1 }

// kernel: _epd_core_pallas.16
= control target key start
LH: loop header
LB: loop body
LE: loop exit
PB: predicated region body
PF: predicated region fallthrough
CT: control target
= control target key end

     0   :  { %10 = vsyncpa [#allocation3], 0  ;;  %s538_s0 = inlined_call_operand.hbm [shape: f32[8,4], index: 0, kind: input, shape index: {}]   ;;  %s539_s1 = inlined_call_operand.hbm [shape: bf16[4,16], index: 1, kind: input, shape index: {}]   ;;  %s540_s2 = inlined_call_operand.hbm [shape: f32[1,16], index: 2, kind: input, shape index: {}]   ;;  %s541_s3 = inlined_call_operand.hbm [shape: bf16[16,16], index: 3, kind: input, shape index: {}]   ;;  %s542_s4 = inlined_call_operand.hbm [shape: f32[3,16], index: 4, kind: input, shape index: {}]   ;;  %s543_s5 = inlined_call_operand.hbm [shape: f32[8,16], index: 5, kind: output, shape index: {}]  }
   0x1   :  { %11 = vsyncpa [#allocation6], 0 }
   0x2   :  { %12 = vsyncpa [#allocation9], 0 }
   0x3   :  { %13 = vsyncpa [#allocation4], 0  ;;  %s415_s18 = smov [#allocation5]   ;;  %s416_s20 = smov [#allocation8]  }
   0x4   :  { %s30_s19 = sshll.u32 %s415_s18, 4  ;;  %s49_s21 = sshll.u32 %s416_s20, 4  ;;  %s31_s19 = int_to_ptr.vmem [resolvable:$true] %s30_s19  ;;  %s455_s21 = int_to_ptr.vmem [resolvable:$true] %s49_s21 }
   0x5   :  { %s275_s24 = scalar_lea.hbm %s539_s1, 32 }
   0x6   :  { %p276_p0 = scmp.ne.s32.totalorder %s539_s1, %s275_s24  ;;  %p279_p1 = scmp.lt.u32.totalorder %s275_s24, %s539_s1 }
   0x8   :  { %p281_p2 = pnand %p279_p1, %p276_p0 }
   0xa   :  { %284 = shalt.err (!%p281_p2)
}
   0xb   :  { %s285_s29 = scalar_lea.vmem %s31_s19, 32  ;;  %p290_p4 = scmp.lt.s32.totalorder %s31_s19, %s31_s19 }
   0xc   :  { %p286_p3 = scmp.ne.s32.totalorder %s31_s19, %s285_s29  ;;  %p291_p5 = scmp.lt.s32.totalorder %s285_s29, %s285_s29 }
   0xe   :  { %p292_p6 = por %p291_p5, %p290_p4 }
  0x10   :  { %p293_p7 = pnand %p292_p6, %p286_p3 }
  0x12   :  { %296 = shalt.err (!%p293_p7)
}
  0x13   :  { %33 = dma.hbm_to_vmem [thread:$0]  %s539_s1, 32, %s31_s19, [#allocation6]  }
  0x14   :  { %s297_s9 = scalar_lea.hbm %s541_s3, 128 }
  0x15   :  { %p298_p8 = scmp.ne.s32.totalorder %s541_s3, %s297_s9  ;;  %p301_p9 = scmp.lt.u32.totalorder %s297_s9, %s541_s3 }
  0x17   :  { %p303_p10 = pnand %p301_p9, %p298_p8 }
  0x19   :  { %306 = shalt.err (!%p303_p10)
}
  0x1a   :  { %s307_s14 = scalar_lea.vmem %s455_s21, 128  ;;  %p312_p12 = scmp.lt.s32.totalorder %s455_s21, %s455_s21 }
  0x1b   :  { %p308_p11 = scmp.ne.s32.totalorder %s455_s21, %s307_s14  ;;  %p313_p13 = scmp.lt.s32.totalorder %s307_s14, %s307_s14 }
  0x1d   :  { %p314_p0 = por %p313_p13, %p312_p12 }
  0x1f   :  { %p315_p1 = pnand %p314_p0, %p308_p11 }
  0x21   :  { %318 = shalt.err (!%p315_p1)
}
  0x22   :  { %s417_s1 = smov 64   ;;  %s418_s15 = smov 4  }
  0x23   :  { %55 = dma.hbm_to_vmem [thread:$0]  %s541_s3, 128, %s455_s21, [#allocation9], %s417_s1, %s417_s1, %s418_s15  }
  0x24   :  { %s419_s18 = smov [#allocation2]   ;;  %s420_s20 = smov [#allocation7]  }
  0x25   :  { %s20_s19 = sshll.u32 %s419_s18, 4  ;;  %s40_s22 = sshll.u32 %s420_s20, 4  ;;  %s21_s19 = int_to_ptr.vmem [resolvable:$true] %s20_s19  ;;  %s41_s22 = int_to_ptr.vmem [resolvable:$true] %s40_s22 }
  0x26   :  { %s319_s25 = scalar_lea.hbm %s538_s0, 128 }
  0x27   :  { %p320_p2 = scmp.ne.s32.totalorder %s538_s0, %s319_s25  ;;  %p323_p3 = scmp.lt.u32.totalorder %s319_s25, %s538_s0 }
  0x29   :  { %p325_p4 = pnand %p323_p3, %p320_p2 }
  0x2b   :  { %328 = shalt.err (!%p325_p4)
}
  0x2c   :  { %s329_s3 = scalar_lea.vmem %s21_s19, 128  ;;  %p334_p6 = scmp.lt.s32.totalorder %s21_s19, %s21_s19 }
  0x2d   :  { %p330_p5 = scmp.ne.s32.totalorder %s21_s19, %s329_s3  ;;  %p335_p7 = scmp.lt.s32.totalorder %s329_s3, %s329_s3 }
  0x2f   :  { %p336_p8 = por %p335_p7, %p334_p6 }
  0x31   :  { %p337_p9 = pnand %p336_p8, %p330_p5 }
  0x33   :  { %340 = shalt.err (!%p337_p9)
}
  0x34   :  { %23 = dma.hbm_to_vmem [thread:$0]  %s538_s0, 128, %s21_s19, [#allocation3]  }
  0x35   :  { %s341_s8 = scalar_lea.hbm %s540_s2, 16 }
  0x36   :  { %p342_p10 = scmp.ne.s32.totalorder %s540_s2, %s341_s8  ;;  %p345_p11 = scmp.lt.u32.totalorder %s341_s8, %s540_s2 }
  0x38   :  { %p347_p12 = pnand %p345_p11, %p342_p10 }
  0x3a   :  { %350 = shalt.err (!%p347_p12)
}
  0x3b   :  { %s351_s13 = scalar_lea.vmem %s41_s22, 16  ;;  %s355_s14 = scalar_lea.vmem %s41_s22, 32 }
  0x3c   :  { %p352_p13 = scmp.ne.s32.totalorder %s41_s22, %s351_s13  ;;  %p356_p0 = scmp.lt.s32.totalorder %s41_s22, %s41_s22 }
  0x3d   :  { %p357_p1 = scmp.lt.s32.totalorder %s355_s14, %s351_s13 }
  0x3f   :  { %p358_p2 = por %p357_p1, %p356_p0 }
  0x41   :  { %p359_p3 = pnand %p358_p2, %p352_p13 }
  0x43   :  { %362 = shalt.err (!%p359_p3)
}
  0x44   :  { %43 = dma.hbm_to_vmem [thread:$0]  %s540_s2, 16, %s41_s22, [#allocation6]  }
  0x45   :  { %s421_s15 = smov [#allocation10]   ;;  %s363_s19 = scalar_lea.hbm %s542_s4, 64 }
  0x46   :  { %s62_s16 = sshll.u32 %s421_s15, 4  ;;  %p364_p4 = scmp.ne.s32.totalorder %s542_s4, %s363_s19  ;;  %s63_s16 = int_to_ptr.vmem [resolvable:$true] %s62_s16 }
  0x47   :  { %p367_p5 = scmp.lt.u32.totalorder %s363_s19, %s542_s4 }
  0x49   :  { %p369_p6 = pnand %p367_p5, %p364_p4 }
  0x4b   :  { %372 = shalt.err (!%p369_p6)
}
  0x4c   :  { %s373_s26 = scalar_lea.vmem %s63_s16, 64  ;;  %p378_p8 = scmp.lt.s32.totalorder %s63_s16, %s63_s16 }
  0x4d   :  { %p374_p7 = scmp.ne.s32.totalorder %s63_s16, %s373_s26  ;;  %p379_p9 = scmp.lt.s32.totalorder %s373_s26, %s373_s26 }
  0x4f   :  { %p380_p10 = por %p379_p9, %p378_p8 }
  0x51   :  { %p381_p11 = pnand %p380_p10, %p374_p7 }
  0x53   :  { %384 = shalt.err (!%p381_p11)
}
  0x54   :  { %65 = dma.hbm_to_vmem [thread:$0]  %s542_s4, 64, %s63_s16, [#allocation9]  }
  0x55   :  { %407 = dma.done.wait [#allocation3], 128  }
  0x56   :  { %408 = vsyncadd [#allocation3], 4294967168 }
  0x57   :  { %409 = dma.done.wait [#allocation6], 48  }
  0x58   :  { %410 = vsyncadd [#allocation6], 4294967248 }
  0x59   :  { %411 = dma.done.wait [#allocation9], 192  }
  0x5a   :  { %412 = vsyncadd [#allocation9], 4294967104  ;;  %v422_v0 = vmov 0.0   ;;  %vm423_vm0 = vmmov 0   ;;  %vm90_vm1 = vcmask 1041408   ;;  %v82_v2 = vld [vmem:[#allocation2] sm:$0xff]  ;;  %v146_v14 = vlaneseq }
  0x5b   :  { %250 = vmatprep.subr.bf16.mxu0 %v422_v0  ;;  %252 = vmatprep.mubr.msk.bf16.mxu0 %vm423_vm0, %v422_v0  ;;  %v85_v1 = vld [vmem:[#allocation5] sm:$0x3]  ;;  %v84_v4 = vpack.c.bf16 %v82_v2, %v82_v2  ;;  %vm86_vm2 = vcmask 31744   ;;  %v272_v5 = vld [vmem:[#allocation8] sm:$0xff]   ;;  %v243_v6 = vld [vmem:[#allocation7] ss:$0 sm:$0xff] }
  0x5c   :  { %256 = vmatprep.subr.bf16.mxu1 %v422_v0  ;;  %258 = vmatprep.mubr.msk.bf16.mxu1 %vm423_vm0, %v422_v0  ;;  %v92_v3 = vsel %vm90_vm1, %v85_v1, 0  ;;  %vm156_vm3 = vcmask 130048   ;;  %v147_v15 = vshrl.u32 %v146_v14, 7  ;;  %v145_v17 = vld [vmem:[#allocation10] sm:$0x7]  ;;  %s424_s4 = smov [#allocation11]  }
  0x5d   :  { %251 = vmatpush3.bf16.msra.mxu0 %v92_v3  ;;  %257 = vmatpush3.bf16.msra.mxu1 %v272_v5  ;;  %s231_s27 = sshll.u32 %s424_s4, 4  ;;  %s232_s27 = int_to_ptr.vmem [resolvable:$true] %s231_s27 }
  0x5e   :  { %v148_v16 = vsub.s32 0, %v147_v15  ;;  %v216_v33 = vsub.s32 1, %v147_v15  ;;  %v221_v34 = vsub.s32 2, %v147_v15  ;;  %s385_s28 = scalar_lea.vmem %s232_s27, 128  ;;  %p390_p13 = scmp.lt.s32.totalorder %s232_s27, %s232_s27 }
  0x5f   :  { %p386_p12 = scmp.ne.s32.totalorder %s232_s27, %s385_s28  ;;  %p391_p0 = scmp.lt.s32.totalorder %s385_s28, %s385_s28 }
  0x60   :  { %253 = vmatmul.mubr.msk.bf16.vlgmr.msra.gmra.mrb[0].mxu0 %vm86_vm2, %v84_v4  ;;  %v149_v18 = vrot.slane %v145_v17, %v148_v16  ;;  %v217_v35 = vrot.slane %v145_v17, %v216_v33  ;;  %v222_v37 = vrot.slane %v145_v17, %v221_v34 }
  0x61   :  { %p392_p1 = por %p391_p0, %p390_p13 }
  0x63   :  { %p393_p2 = pnand %p392_p1, %p386_p12 }
 0x133   :  { %v128_v7 = vpop.f32.mrb[0].mxu0 }
 0x134   :  { %v140_v8 = vadd.f32 %v243_v6, %v128_v7  ;;  %v254_v9 = vpop.f32.mrb[1].mxu0 }
 0x135   :  { %v131_v10 = vpop.f32.mrb[2].mxu0 }
 0x136   :  { %v141_v11 = vmax.f32 %v140_v8, 0.0  ;;  %v255_v12 = vpop.f32.mrb[3].mxu0 }
 0x138   :  { %v142_v13 = vpack.c.bf16 %v141_v11, %v141_v11 }
 0x13a   :  { %259 = vmatmul.mubr.msk.bf16.vlgmr.msra.gmra.mrb[0].mxu1 %vm156_vm3, %v142_v13 }
 0x20d   :  { %v194_v19 = vpop.f32.mrb[0].mxu1 }
 0x20e   :  { %v195_v20 = vadd.f32 %v194_v19, %v149_v18  ;;  %v260_v21 = vpop.f32.mrb[1].mxu1 }
 0x20f   :  { %v197_v22 = vpop.f32.mrb[2].mxu1 }
 0x210   :  { %v261_v23 = vpop.f32.mrb[3].mxu1  ;;  %v200_v24 = vsel %vm156_vm3, %v195_v20, 0.0 }
 0x211   :  { %201 = vadd.xlane.f32.xlu0 %v200_v24 }
 0x29e   :  { %v202_v25 = vpop.xlane.xlu0 %201 }
 0x29f   :  { %v204_v26 = vmul.f32 0.0625, %v202_v25 }
 0x2a1   :  { %v205_v27 = vsub.f32 %v195_v20, %v204_v26 }
 0x2a3   :  { %v206_v28 = vmul.f32 %v205_v27, %v205_v27 }
 0x2a5   :  { %v207_v29 = vsel %vm156_vm3, %v206_v28, 0.0 }
 0x2a6   :  { %208 = vadd.xlane.f32.xlu0 %v207_v29 }
 0x333   :  { %v209_v30 = vpop.xlane.xlu0 %208 }
 0x334   :  { %v210_v31 = vmul.f32 0.0625, %v209_v30 }
 0x336   :  { %v211_v32 = vadd.f32 1e-05, %v210_v31 }
 0x338   :  { %273 = vrsqrt.f32 %v211_v32 }
 0x342   :  { %v274_v36 = vpop.eup %273 }
 0x343   :  { %v213_v38 = vmul.f32 %v274_v36, %v205_v27 }
 0x345   :  { %v218_v39 = vmul.f32 %v217_v35, %v213_v38 }
 0x347   :  { %v223_v40 = vadd.f32 %v222_v37, %v218_v39 }
 0x349   :  { %224 = vst.msk [vmem:[#allocation11] sm:$0xff] %vm156_vm3, %v223_v40 }
 0x34a   :  { %396 = shalt.err (!%p393_p2)
}
 0x34b   :  { %s397_s21 = scalar_lea.hbm %s543_s5, 128 }
 0x34c   :  { %p398_p3 = scmp.ne.s32.totalorder %s543_s5, %s397_s21  ;;  %p401_p4 = scmp.lt.u32.totalorder %s397_s21, %s543_s5 }
 0x34e   :  { %p403_p5 = pnand %p401_p4, %p398_p3 }
 0x350   :  { %406 = shalt.err (!%p403_p5)
}
 0x351   :  { %234 = dma.vmem_to_hbm [thread:$0]  %s232_s27, 128, %s543_s5, [#allocation4]  }
 0x352   :  { %413 = dma.done.wait [#allocation4], 128  }
 0x353   :  { %414 = vsyncadd [#allocation4], 4294967168 }
 0x354   :  { %238 = vsyncpa [#allocation3], 1 }
 0x355   :  { %239 = vsyncpa [#allocation6], 1 }
 0x356   :  { %240 = vsyncpa [#allocation9], 1 }
 0x357   :  { %241 = vsyncpa [#allocation4], 1 }

// kernel: _epd_core_pallas.18
= control target key start
LH: loop header
LB: loop body
LE: loop exit
PB: predicated region body
PF: predicated region fallthrough
CT: control target
= control target key end

     0   :  { %18 = vsyncpa [#allocation3], 0  ;;  %s1952_s0 = inlined_call_operand.hbm [shape: s32[1,8], index: 0, kind: input, shape index: {}]   ;;  %s1953_s1 = inlined_call_operand.hbm [shape: s32[1,8], index: 1, kind: input, shape index: {}]   ;;  %s1954_s2 = inlined_call_operand.hbm [shape: s32[1,8], index: 2, kind: input, shape index: {}]   ;;  %s1955_s3 = inlined_call_operand.hbm [shape: f32[8,16], index: 3, kind: input, shape index: {}, may-alias: {3,4}]   ;;  %s1956_s4 = inlined_call_operand.hbm [shape: f32[8,16], index: 4, kind: input, shape index: {}, may-alias: {3,4}]   ;;  %s1957_s5 = inlined_call_operand.hbm [shape: f32[8,16], index: 5, kind: input, shape index: {}, may-alias: {5,6}]   ;;  %s1958_s6 = inlined_call_operand.hbm [shape: f32[8,16], index: 6, kind: input, shape index: {}, may-alias: {5,6}]   ;;  %s1959_s7 = inlined_call_operand.hbm [shape: f32[2,16], index: 7, kind: input, shape index: {}, may-alias: {7,8}]   ;;  %s1960_s8 = inlined_call_operand.hbm [shape: f32[2,16], index: 8, kind: input, shape index: {}, may-alias: {7,8}]   ;;  %s1961_s9 = inlined_call_operand.hbm [shape: bf16[128,16], index: 9, kind: input, shape index: {}]   ;;  %s1962_s10 = inlined_call_operand.hbm [shape: f32[1,16], index: 10, kind: input, shape index: {}]   ;;  %s1963_s11 = inlined_call_operand.hbm [shape: bf16[16,16], index: 11, kind: input, shape index: {}]   ;;  %s1964_s12 = inlined_call_operand.hbm [shape: f32[3,16], index: 12, kind: input, shape index: {}]   ;;  %s1965_s13 = inlined_call_operand.hbm [shape: f32[8,16], index: 13, kind: output, shape index: {}]  }
   0x1   :  { %19 = vsyncpa [#allocation6], 0 }
   0x2   :  { %20 = vsyncpa [#allocation9], 0 }
   0x3   :  { %21 = vsyncpa [#allocation12], 0 }
   0x4   :  { %22 = vsyncpa [#allocation15], 0 }
   0x5   :  { %23 = vsyncpa [#allocation18], 0 }
   0x6   :  { %24 = vsyncpa [#allocation21], 0 }
   0x7   :  { %25 = vsyncpa [#allocation4], 0  ;;  %s1622_s25 = smov [#allocation5]   ;;  %s1623_s27 = smov [#allocation8]  }
   0x8   :  { %s42_s26 = sshll.u32 %s1622_s25, 4  ;;  %s62_s28 = sshll.u32 %s1623_s27, 4  ;;  %s43_s26 = int_to_ptr.vmem [resolvable:$true] %s42_s26  ;;  %s63_s28 = int_to_ptr.vmem [resolvable:$true] %s62_s28 }
   0x9   :  { %s1298_s14 = scalar_lea.hbm %s1953_s1, 16 }
   0xa   :  { %p1299_p0 = scmp.ne.s32.totalorder %s1953_s1, %s1298_s14  ;;  %p1302_p1 = scmp.lt.u32.totalorder %s1298_s14, %s1953_s1 }
   0xc   :  { %p1304_p2 = pnand %p1302_p1, %p1299_p0 }
   0xe   :  { %1307 = shalt.err (!%p1304_p2)
}
   0xf   :  { %s1308_s19 = scalar_lea.vmem %s43_s26, 16  ;;  %s1312_s20 = scalar_lea.vmem %s43_s26, 32 }
  0x10   :  { %p1309_p3 = scmp.ne.s32.totalorder %s43_s26, %s1308_s19  ;;  %p1313_p4 = scmp.lt.s32.totalorder %s43_s26, %s43_s26 }
  0x11   :  { %p1314_p5 = scmp.lt.s32.totalorder %s1312_s20, %s1308_s19 }
  0x13   :  { %p1315_p6 = por %p1314_p5, %p1313_p4 }
  0x15   :  { %p1316_p7 = pnand %p1315_p6, %p1309_p3 }
  0x17   :  { %1319 = shalt.err (!%p1316_p7)
}
  0x18   :  { %45 = dma.hbm_to_vmem [thread:$0]  %s1953_s1, 16, %s43_s26, [#allocation6]  }
  0x19   :  { %s1320_s25 = scalar_lea.hbm %s1955_s3, 128 }
  0x1a   :  { %p1321_p8 = scmp.ne.s32.totalorder %s1955_s3, %s1320_s25  ;;  %p1324_p9 = scmp.lt.u32.totalorder %s1320_s25, %s1955_s3 }
  0x1c   :  { %p1326_p10 = pnand %p1324_p9, %p1321_p8 }
  0x1e   :  { %1329 = shalt.err (!%p1326_p10)
}
  0x1f   :  { %s1330_s15 = scalar_lea.vmem %s63_s28, 128  ;;  %p1335_p12 = scmp.lt.s32.totalorder %s63_s28, %s63_s28 }
  0x20   :  { %p1331_p11 = scmp.ne.s32.totalorder %s63_s28, %s1330_s15  ;;  %p1336_p13 = scmp.lt.s32.totalorder %s1330_s15, %s1330_s15 }
  0x22   :  { %p1337_p0 = por %p1336_p13, %p1335_p12 }
  0x24   :  { %p1338_p1 = pnand %p1337_p0, %p1331_p11 }
  0x26   :  { %1341 = shalt.err (!%p1338_p1)
}
  0x27   :  { %65 = dma.hbm_to_vmem [thread:$0]  %s1955_s3, 128, %s63_s28, [#allocation9]  }
  0x28   :  { %s1624_s16 = smov [#allocation11]   ;;  %s1625_s18 = smov [#allocation14]  }
  0x29   :  { %s82_s17 = sshll.u32 %s1624_s16, 4  ;;  %s102_s19 = sshll.u32 %s1625_s18, 4  ;;  %s83_s17 = int_to_ptr.vmem [resolvable:$true] %s82_s17  ;;  %s103_s19 = int_to_ptr.vmem [resolvable:$true] %s102_s19 }
  0x2a   :  { %s1342_s22 = scalar_lea.hbm %s1957_s5, 128 }
  0x2b   :  { %p1343_p2 = scmp.ne.s32.totalorder %s1957_s5, %s1342_s22  ;;  %p1346_p3 = scmp.lt.u32.totalorder %s1342_s22, %s1957_s5 }
  0x2d   :  { %p1348_p4 = pnand %p1346_p3, %p1343_p2 }
  0x2f   :  { %1351 = shalt.err (!%p1348_p4)
}
  0x30   :  { %s1352_s3 = scalar_lea.vmem %s83_s17, 128  ;;  %p1357_p6 = scmp.lt.s32.totalorder %s83_s17, %s83_s17 }
  0x31   :  { %p1353_p5 = scmp.ne.s32.totalorder %s83_s17, %s1352_s3  ;;  %p1358_p7 = scmp.lt.s32.totalorder %s1352_s3, %s1352_s3 }
  0x33   :  { %p1359_p8 = por %p1358_p7, %p1357_p6 }
  0x35   :  { %p1360_p9 = pnand %p1359_p8, %p1353_p5 }
  0x37   :  { %1363 = shalt.err (!%p1360_p9)
}
  0x38   :  { %85 = dma.hbm_to_vmem [thread:$0]  %s1957_s5, 128, %s83_s17, [#allocation12]  }
  0x39   :  { %s1364_s15 = scalar_lea.hbm %s1959_s7, 32 }
  0x3a   :  { %p1365_p10 = scmp.ne.s32.totalorder %s1959_s7, %s1364_s15  ;;  %p1368_p11 = scmp.lt.u32.totalorder %s1364_s15, %s1959_s7 }
  0x3c   :  { %p1370_p12 = pnand %p1368_p11, %p1365_p10 }
  0x3e   :  { %1373 = shalt.err (!%p1370_p12)
}
  0x3f   :  { %s1374_s20 = scalar_lea.vmem %s103_s19, 32  ;;  %p1379_p0 = scmp.lt.s32.totalorder %s103_s19, %s103_s19 }
  0x40   :  { %p1375_p13 = scmp.ne.s32.totalorder %s103_s19, %s1374_s20  ;;  %p1380_p1 = scmp.lt.s32.totalorder %s1374_s20, %s1374_s20 }
  0x42   :  { %p1381_p2 = por %p1380_p1, %p1379_p0 }
  0x44   :  { %p1382_p3 = pnand %p1381_p2, %p1375_p13 }
  0x46   :  { %1385 = shalt.err (!%p1382_p3)
}
  0x47   :  { %105 = dma.hbm_to_vmem [thread:$0]  %s1959_s7, 32, %s103_s19, [#allocation15]  }
  0x48   :  { %s1626_s21 = smov [#allocation17]   ;;  %s1386_s25 = scalar_lea.hbm %s1961_s9, 1024 }
  0x49   :  { %s121_s22 = sshll.u32 %s1626_s21, 4  ;;  %p1387_p4 = scmp.ne.s32.totalorder %s1961_s9, %s1386_s25  ;;  %s122_s22 = int_to_ptr.vmem [resolvable:$true] %s121_s22 }
  0x4a   :  { %p1390_p5 = scmp.lt.u32.totalorder %s1386_s25, %s1961_s9 }
  0x4c   :  { %p1392_p6 = pnand %p1390_p5, %p1387_p4 }
  0x4e   :  { %1395 = shalt.err (!%p1392_p6)
}
  0x4f   :  { %s1396_s30 = scalar_lea.vmem %s122_s22, 1024  ;;  %p1401_p8 = scmp.lt.s32.totalorder %s122_s22, %s122_s22 }
  0x50   :  { %p1397_p7 = scmp.ne.s32.totalorder %s122_s22, %s1396_s30  ;;  %p1402_p9 = scmp.lt.s32.totalorder %s1396_s30, %s1396_s30 }
  0x52   :  { %p1403_p10 = por %p1402_p9, %p1401_p8 }
  0x54   :  { %p1404_p11 = pnand %p1403_p10, %p1397_p7 }
  0x56   :  { %1407 = shalt.err (!%p1404_p11)
}
  0x57   :  { %s1627_s7 = smov 64   ;;  %s1628_s19 = smov 4  }
  0x58   :  { %127 = dma.hbm_to_vmem [thread:$0]  %s1961_s9, 1024, %s122_s22, [#allocation18], %s1627_s7, %s1627_s7, %s1628_s19  }
  0x59   :  { %s1629_s1 = smov [#allocation20]   ;;  %s1630_s16 = smov [#allocation2]  }
  0x5a   :  { %s143_s26 = sshll.u32 %s1629_s1, 4  ;;  %s32_s18 = sshll.u32 %s1630_s16, 4  ;;  %s144_s26 = int_to_ptr.vmem [resolvable:$true] %s143_s26  ;;  %s33_s18 = int_to_ptr.vmem [resolvable:$true] %s32_s18 }
  0x5b   :  { %s1408_s17 = scalar_lea.hbm %s1963_s11, 128 }
  0x5c   :  { %p1409_p12 = scmp.ne.s32.totalorder %s1963_s11, %s1408_s17  ;;  %p1412_p13 = scmp.lt.u32.totalorder %s1408_s17, %s1963_s11 }
  0x5e   :  { %p1414_p0 = pnand %p1412_p13, %p1409_p12 }
  0x60   :  { %1417 = shalt.err (!%p1414_p0)
}
  0x61   :  { %s1418_s9 = scalar_lea.vmem %s144_s26, 128  ;;  %p1423_p2 = scmp.lt.s32.totalorder %s144_s26, %s144_s26 }
  0x62   :  { %p1419_p1 = scmp.ne.s32.totalorder %s144_s26, %s1418_s9  ;;  %p1424_p3 = scmp.lt.s32.totalorder %s1418_s9, %s1418_s9 }
  0x64   :  { %p1425_p4 = por %p1424_p3, %p1423_p2 }
  0x66   :  { %p1426_p5 = pnand %p1425_p4, %p1419_p1 }
  0x68   :  { %1429 = shalt.err (!%p1426_p5)
}
  0x69   :  { %149 = dma.hbm_to_vmem [thread:$0]  %s1963_s11, 128, %s144_s26, [#allocation21], %s1627_s7, %s1627_s7, %s1628_s19  }
  0x6a   :  { %s1430_s29 = scalar_lea.hbm %s1952_s0, 16 }
  0x6b   :  { %p1431_p6 = scmp.ne.s32.totalorder %s1952_s0, %s1430_s29  ;;  %p1434_p7 = scmp.lt.u32.totalorder %s1430_s29, %s1952_s0 }
  0x6d   :  { %p1436_p8 = pnand %p1434_p7, %p1431_p6 }
  0x6f   :  { %1439 = shalt.err (!%p1436_p8)
}
  0x70   :  { %s1440_s16 = scalar_lea.vmem %s33_s18, 16  ;;  %s1444_s20 = scalar_lea.vmem %s33_s18, 32 }
  0x71   :  { %p1441_p9 = scmp.ne.s32.totalorder %s33_s18, %s1440_s16  ;;  %p1445_p10 = scmp.lt.s32.totalorder %s33_s18, %s33_s18 }
  0x72   :  { %p1446_p11 = scmp.lt.s32.totalorder %s1444_s20, %s1440_s16 }
  0x74   :  { %p1447_p12 = por %p1446_p11, %p1445_p10 }
  0x76   :  { %p1448_p13 = pnand %p1447_p12, %p1441_p9 }
  0x78   :  { %1451 = shalt.err (!%p1448_p13)
}
  0x79   :  { %35 = dma.hbm_to_vmem [thread:$0]  %s1952_s0, 16, %s33_s18, [#allocation3]  }
  0x7a   :  { %s1631_s19 = smov [#allocation7]   ;;  %s1632_s5 = smov [#allocation10]  }
  0x7b   :  { %s52_s26 = sshll.u32 %s1631_s19, 4  ;;  %s72_s17 = sshll.u32 %s1632_s5, 4  ;;  %s53_s26 = int_to_ptr.vmem [resolvable:$true] %s52_s26  ;;  %s73_s17 = int_to_ptr.vmem [resolvable:$true] %s72_s17 }
  0x7c   :  { %s1452_s24 = scalar_lea.hbm %s1954_s2, 16 }
  0x7d   :  { %p1453_p0 = scmp.ne.s32.totalorder %s1954_s2, %s1452_s24  ;;  %p1456_p1 = scmp.lt.u32.totalorder %s1452_s24, %s1954_s2 }
  0x7f   :  { %p1458_p2 = pnand %p1456_p1, %p1453_p0 }
  0x81   :  { %1461 = shalt.err (!%p1458_p2)
}
  0x82   :  { %s1462_s0 = scalar_lea.vmem %s53_s26, 16  ;;  %s1466_s18 = scalar_lea.vmem %s53_s26, 32 }
  0x83   :  { %p1463_p3 = scmp.ne.s32.totalorder %s53_s26, %s1462_s0  ;;  %p1467_p4 = scmp.lt.s32.totalorder %s53_s26, %s53_s26 }
  0x84   :  { %p1468_p5 = scmp.lt.s32.totalorder %s1466_s18, %s1462_s0 }
  0x86   :  { %p1469_p6 = por %p1468_p5, %p1467_p4 }
  0x88   :  { %p1470_p7 = pnand %p1469_p6, %p1463_p3 }
  0x8a   :  { %1473 = shalt.err (!%p1470_p7)
}
  0x8b   :  { %55 = dma.hbm_to_vmem [thread:$0]  %s1954_s2, 16, %s53_s26, [#allocation6]  }
  0x8c   :  { %s1474_s14 = scalar_lea.hbm %s1956_s4, 128 }
  0x8d   :  { %p1475_p8 = scmp.ne.s32.totalorder %s1956_s4, %s1474_s14  ;;  %p1478_p9 = scmp.lt.u32.totalorder %s1474_s14, %s1956_s4 }
  0x8f   :  { %p1480_p10 = pnand %p1478_p9, %p1475_p8 }
  0x91   :  { %1483 = shalt.err (!%p1480_p10)
}
  0x92   :  { %s1484_s11 = scalar_lea.vmem %s73_s17, 128  ;;  %p1489_p12 = scmp.lt.s32.totalorder %s73_s17, %s73_s17 }
  0x93   :  { %p1485_p11 = scmp.ne.s32.totalorder %s73_s17, %s1484_s11  ;;  %p1490_p13 = scmp.lt.s32.totalorder %s1484_s11, %s1484_s11 }
  0x95   :  { %p1491_p0 = por %p1490_p13, %p1489_p12 }
  0x97   :  { %p1492_p1 = pnand %p1491_p0, %p1485_p11 }
  0x99   :  { %1495 = shalt.err (!%p1492_p1)
}
  0x9a   :  { %75 = dma.hbm_to_vmem [thread:$0]  %s1956_s4, 128, %s73_s17, [#allocation9]  }
  0x9b   :  { %s1633_s19 = smov [#allocation13]   ;;  %s1634_s5 = smov [#allocation16]  }
  0x9c   :  { %s92_s26 = sshll.u32 %s1633_s19, 4  ;;  %s112_s21 = sshll.u32 %s1634_s5, 4  ;;  %s93_s26 = int_to_ptr.vmem [resolvable:$true] %s92_s26  ;;  %s113_s21 = int_to_ptr.vmem [resolvable:$true] %s112_s21 }
  0x9d   :  { %s1496_s25 = scalar_lea.hbm %s1958_s6, 128 }
  0x9e   :  { %p1497_p2 = scmp.ne.s32.totalorder %s1958_s6, %s1496_s25  ;;  %p1500_p3 = scmp.lt.u32.totalorder %s1496_s25, %s1958_s6 }
  0xa0   :  { %p1502_p4 = pnand %p1500_p3, %p1497_p2 }
  0xa2   :  { %1505 = shalt.err (!%p1502_p4)
}
  0xa3   :  { %s1506_s4 = scalar_lea.vmem %s93_s26, 128  ;;  %p1511_p6 = scmp.lt.s32.totalorder %s93_s26, %s93_s26 }
  0xa4   :  { %p1507_p5 = scmp.ne.s32.totalorder %s93_s26, %s1506_s4  ;;  %p1512_p7 = scmp.lt.s32.totalorder %s1506_s4, %s1506_s4 }
  0xa6   :  { %p1513_p8 = por %p1512_p7, %p1511_p6 }
  0xa8   :  { %p1514_p9 = pnand %p1513_p8, %p1507_p5 }
  0xaa   :  { %1517 = shalt.err (!%p1514_p9)
}
  0xab   :  { %95 = dma.hbm_to_vmem [thread:$0]  %s1958_s6, 128, %s93_s26, [#allocation12]  }
  0xac   :  { %s1518_s29 = scalar_lea.hbm %s1960_s8, 32 }
  0xad   :  { %p1519_p10 = scmp.ne.s32.totalorder %s1960_s8, %s1518_s29  ;;  %p1522_p11 = scmp.lt.u32.totalorder %s1518_s29, %s1960_s8 }
  0xaf   :  { %p1524_p12 = pnand %p1522_p11, %p1519_p10 }
  0xb1   :  { %1527 = shalt.err (!%p1524_p12)
}
  0xb2   :  { %s1528_s16 = scalar_lea.vmem %s113_s21, 32  ;;  %p1533_p0 = scmp.lt.s32.totalorder %s113_s21, %s113_s21 }
  0xb3   :  { %p1529_p13 = scmp.ne.s32.totalorder %s113_s21, %s1528_s16  ;;  %p1534_p1 = scmp.lt.s32.totalorder %s1528_s16, %s1528_s16 }
  0xb5   :  { %p1535_p2 = por %p1534_p1, %p1533_p0 }
  0xb7   :  { %p1536_p3 = pnand %p1535_p2, %p1529_p13 }
  0xb9   :  { %1539 = shalt.err (!%p1536_p3)
}
  0xba   :  { %115 = dma.hbm_to_vmem [thread:$0]  %s1960_s8, 32, %s113_s21, [#allocation15]  }
  0xbb   :  { %s1635_s11 = smov [#allocation19]   ;;  %s1636_s7 = smov [#allocation22]  }
  0xbc   :  { %s134_s2 = sshll.u32 %s1635_s11, 4  ;;  %s156_s19 = sshll.u32 %s1636_s7, 4  ;;  %s135_s2 = int_to_ptr.vmem [resolvable:$true] %s134_s2  ;;  %s157_s19 = int_to_ptr.vmem [resolvable:$true] %s156_s19 }
  0xbd   :  { %s1540_s23 = scalar_lea.hbm %s1962_s10, 16 }
  0xbe   :  { %p1541_p4 = scmp.ne.s32.totalorder %s1962_s10, %s1540_s23  ;;  %p1544_p5 = scmp.lt.u32.totalorder %s1540_s23, %s1962_s10 }
  0xc0   :  { %p1546_p6 = pnand %p1544_p5, %p1541_p4 }
  0xc2   :  { %1549 = shalt.err (!%p1546_p6)
}
  0xc3   :  { %s1550_s8 = scalar_lea.vmem %s135_s2, 16  ;;  %s1554_s21 = scalar_lea.vmem %s135_s2, 32 }
  0xc4   :  { %p1551_p7 = scmp.ne.s32.totalorder %s135_s2, %s1550_s8  ;;  %p1555_p8 = scmp.lt.s32.totalorder %s135_s2, %s135_s2 }
  0xc5   :  { %p1556_p9 = scmp.lt.s32.totalorder %s1554_s21, %s1550_s8 }
  0xc7   :  { %p1557_p10 = por %p1556_p9, %p1555_p8 }
  0xc9   :  { %p1558_p11 = pnand %p1557_p10, %p1551_p7 }
  0xcb   :  { %1561 = shalt.err (!%p1558_p11)
}
  0xcc   :  { %137 = dma.hbm_to_vmem [thread:$0]  %s1962_s10, 16, %s135_s2, [#allocation18]  }
  0xcd   :  { %s1562_s18 = scalar_lea.hbm %s1964_s12, 64 }
  0xce   :  { %p1563_p12 = scmp.ne.s32.totalorder %s1964_s12, %s1562_s18  ;;  %p1566_p13 = scmp.lt.u32.totalorder %s1562_s18, %s1964_s12 }
  0xd0   :  { %p1568_p0 = pnand %p1566_p13, %p1563_p12 }
  0xd2   :  { %1571 = shalt.err (!%p1568_p0)
}
  0xd3   :  { %s1572_s14 = scalar_lea.vmem %s157_s19, 64  ;;  %p1577_p2 = scmp.lt.s32.totalorder %s157_s19, %s157_s19 }
  0xd4   :  { %p1573_p1 = scmp.ne.s32.totalorder %s157_s19, %s1572_s14  ;;  %p1578_p3 = scmp.lt.s32.totalorder %s1572_s14, %s1572_s14 }
  0xd6   :  { %p1579_p4 = por %p1578_p3, %p1577_p2 }
  0xd8   :  { %p1580_p5 = pnand %p1579_p4, %p1573_p1 }
  0xda   :  { %1583 = shalt.err (!%p1580_p5)
}
  0xdb   :  { %159 = dma.hbm_to_vmem [thread:$0]  %s1964_s12, 64, %s157_s19, [#allocation21]  }
  0xdc   :  { %1606 = dma.done.wait [#allocation3], 16  }
  0xdd   :  { %1607 = vsyncadd [#allocation3], 4294967280 }
  0xde   :  { %1608 = dma.done.wait [#allocation6], 32  }
  0xdf   :  { %1609 = vsyncadd [#allocation6], 4294967264 }
  0xe0   :  { %1610 = dma.done.wait [#allocation9], 256  }
  0xe1   :  { %1611 = vsyncadd [#allocation9], 4294967040 }
  0xe2   :  { %1612 = dma.done.wait [#allocation12], 256  }
  0xe3   :  { %1613 = vsyncadd [#allocation12], 4294967040 }
  0xe4   :  { %1614 = dma.done.wait [#allocation15], 64  }
  0xe5   :  { %1615 = vsyncadd [#allocation15], 4294967232 }
  0xe6   :  { %1616 = dma.done.wait [#allocation18], 1040  }
  0xe7   :  { %1617 = vsyncadd [#allocation18], 4294966256 }
  0xe8   :  { %1618 = dma.done.wait [#allocation21], 192  }
  0xe9   :  { %1619 = vsyncadd [#allocation21], 4294967104  ;;  %v200_v0 = vlaneseq  ;;  %v1637_v1 = vmov 0.0   ;;  %vm1638_vm0 = vmmov 0   ;;  %v1088_v3 = vld [vmem:[#allocation2] ss:$0 sm:$0xff] }
  0xea   :  { %1149 = vmatprep.subr.bf16.mxu1 %v1637_v1  ;;  %1185 = vmatprep.subr.bf16.mxu0 %v1637_v1  ;;  %v1090_v4 = vld [vmem:[#allocation5] ss:$0 sm:$0xff]  ;;  %v1092_v5 = vld [vmem:[#allocation7] ss:$0 sm:$0xff]  ;;  %v229_v6 = vld [vmem:[#allocation8] sm:$0xff]  ;;  %vm251_vm4 = vcmask 1043456  }
  0xeb   :  { %1151 = vmatprep.mubr.msk.bf16.mxu1 %vm1638_vm0, %v1637_v1  ;;  %1187 = vmatprep.mubr.msk.bf16.mxu0 %vm1638_vm0, %v1637_v1  ;;  %v1872_v2 = vshrl.u32 %v200_v0, 7  ;;  %v230_v10 = vpack.c.bf16 %v229_v6, %v229_v6  ;;  %v1287_v15 = vld [vmem:[#allocation17] sm:$0xff]   ;;  %vm247_vm5 = vcmask 64512   ;;  %v441_v21 = vld [vmem:[#allocation14] sm:$0x3]  ;;  %vm463_vm6 = vcmask 1040384  }
  0xec   :  { %1186 = vmatpush3.bf16.msra.mxu0 %v1287_v15  ;;  %v295_v16 = vld [vmem:[#allocation10] sm:$0xff]  ;;  %v442_v22 = vpack.c.bf16 %v441_v21, %v441_v21  ;;  %v507_v24 = vld [vmem:[#allocation16] sm:$0x3]  ;;  %vm459_vm7 = vcmask 15360   ;;  %vm562_vm8 = vcmask 130048   ;;  %v1289_v39 = vld [vmem:[#allocation17 + $0x10] sm:$0xff]  }
  0xed   :  { %vm207_vm1 = vcmp.eq.s32.totalorder %v1872_v2, %v1088_v3  ;;  %vm216_vm2 = vcmp.eq.s32.totalorder %v1872_v2, %v1090_v4  ;;  %vm225_vm3 = vcmp.eq.s32.totalorder %v1872_v2, %v1092_v5  ;;  %v253_v13 = vsel %vm251_vm4, %v230_v10, 0  ;;  %1191 = vmatprep.subr.bf16.mxu0 %v1637_v1  ;;  %v1295_v28 = vld [vmem:[#allocation20] sm:$0xff]   ;;  %v1290_v47 = vld [vmem:[#allocation17 + $0x18] sm:$0xff]   ;;  %v439_v61 = vld [vmem:[#allocation11] sm:$0xff]  ;;  %s1639_s12 = smov [#allocation23]  }
  0xee   :  { %v1089_v7 = vsel %vm207_vm1, 1.0, %v1637_v1  ;;  %v1091_v8 = vsel %vm216_vm2, 1.0, %v1637_v1  ;;  %v1093_v9 = vsel %vm225_vm3, 1.0, %v1637_v1  ;;  %1150 = vmatpush3.bf16.msra.mxu1 %v253_v13  ;;  %v296_v17 = vpack.c.bf16 %v295_v16, %v295_v16  ;;  %v1288_v30 = vld [vmem:[#allocation17 + $0x8] sm:$0xff]   ;;  %v1291_v55 = vld [vmem:[#allocation17 + $0x20] sm:$0xff]   ;;  %v440_v0 = vld [vmem:[#allocation13] sm:$0xff] }
  0xef   :  { %v210_v11 = vpack.c.bf16 %v1089_v7, %v1089_v7  ;;  %v228_v12 = vpack.c.bf16 %v1093_v9, %v1093_v9  ;;  %v219_v14 = vpack.c.bf16 %v1091_v8, %v1091_v8  ;;  %1155 = vmatprep.subr.bf16.mxu1 %v1637_v1  ;;  %v465_v23 = vsel %vm463_vm6, %v442_v22, 0  ;;  %v1292_v63 = vld [vmem:[#allocation17 + $0x28] sm:$0xff]   ;;  %v1293_v4 = vld [vmem:[#allocation17 + $0x30] sm:$0xff]   ;;  %v1294_v6 = vld [vmem:[#allocation17 + $0x38] sm:$0xff]   ;;  %s1073_s1 = sshll.u32 %s1639_s12, 4  ;;  %s1074_s1 = int_to_ptr.vmem [resolvable:$true] %s1073_s1 }
  0xf0   :  { %v298_v18 = vsel %vm251_vm4, %v296_v17, 0  ;;  %v508_v25 = vpack.c.bf16 %v507_v24, %v507_v24  ;;  %v772_v62 = vpack.c.bf16 %v439_v61, %v439_v61  ;;  %v825_v3 = vpack.c.bf16 %v440_v0, %v440_v0  ;;  %v1102_v8 = vld [vmem:[#allocation19] ss:$0 sm:$0xff]  ;;  %v988_v17 = vld [vmem:[#allocation22] sm:$0x7]  ;;  %s1584_s16 = scalar_lea.vmem %s1074_s1, 128  ;;  %p1589_p7 = scmp.lt.s32.totalorder %s1074_s1, %s1074_s1 }
  0xf1   :  { %231 = vxpose.xlu0.c.b16.start.end [1/1] (short) (narrow) %v210_v11, 16  ;;  %443 = vxpose.xlu1.c.b16.start.end [1/1] (short) (narrow) %v228_v12, 16  ;;  %v991_v16 = vsub.s32 0, %v1872_v2  ;;  %p1585_p6 = scmp.ne.s32.totalorder %s1074_s1, %s1584_s16  ;;  %p1590_p8 = scmp.lt.s32.totalorder %s1584_s16, %s1584_s16 }
  0xf2   :  { %v510_v27 = vsel %vm463_vm6, %v508_v25, 0 }
  0xf3   :  { %p1591_p9 = por %p1590_p8, %p1589_p7 }
  0xf5   :  { %340 = vxpose.xlu0.c.b16.start.end [1/1] (short) (narrow) %v219_v14, 16  ;;  %p1592_p10 = pnand %p1591_p9, %p1585_p6 }
 0x157   :  { %v239_v19 = vpop.trf.xlu0  ;;  %v451_v26 = vpop.trf.xlu1 }
 0x158   :  { %1152 = vmatmul.mubr.msk.bf16.vlgmr.msra.gmra.mrb[0].mxu1 %vm247_vm5, %v239_v19 }
 0x159   :  { %1156 = vmatpush3.bf16.msra.mxu1 %v298_v18  ;;  %1157 = vmatprep.mubr.msk.bf16.mxu1 %vm1638_vm0, %v1637_v1 }
 0x15a   :  { %1161 = vmatprep.subr.bf16.mxu1 %v1637_v1 }
 0x15b   :  { %v348_v20 = vpop.trf.xlu0 }
 0x160   :  { %1158 = vmatmul.mubr.msk.bf16.vlgmr.msra.gmra.mrb[4].mxu1 %vm247_vm5, %v239_v19 }
 0x161   :  { %1162 = vmatpush3.bf16.msra.mxu1 %v253_v13  ;;  %1163 = vmatprep.mubr.msk.bf16.mxu1 %vm1638_vm0, %v1637_v1 }
 0x162   :  { %1167 = vmatprep.subr.bf16.mxu1 %v1637_v1 }
 0x168   :  { %1164 = vmatmul.mubr.msk.bf16.vlgmr.msra.gmra.mrb[8].mxu1 %vm247_vm5, %v348_v20 }
 0x169   :  { %1168 = vmatpush3.bf16.msra.mxu1 %v298_v18  ;;  %1169 = vmatprep.mubr.msk.bf16.mxu1 %vm1638_vm0, %v1637_v1  ;;  %v992_v18 = vrot.slane %v988_v17, %v991_v16 }
 0x16a   :  { %1173 = vmatprep.subr.bf16.mxu1 %v1637_v1 }
 0x170   :  { %1170 = vmatmul.mubr.msk.bf16.vlgmr.msra.gmra.mrb[12].mxu1 %vm247_vm5, %v348_v20 }
 0x171   :  { %1174 = vmatpush3.bf16.msra.mxu1 %v465_v23  ;;  %1175 = vmatprep.mubr.msk.bf16.mxu1 %vm1638_vm0, %v1637_v1 }
 0x172   :  { %1179 = vmatprep.subr.bf16.mxu1 %v1637_v1 }
 0x178   :  { %1176 = vmatmul.mubr.msk.bf16.vlgmr.msra.gmra.mrb[16].mxu1 %vm459_vm7, %v451_v26 }
 0x179   :  { %1180 = vmatpush3.bf16.msra.mxu1 %v510_v27  ;;  %1181 = vmatprep.mubr.msk.bf16.mxu1 %vm1638_vm0, %v1637_v1 }
 0x17a   :  { %1233 = vmatprep.subr.bf16.mxu1 %v1637_v1 }
 0x180   :  { %1182 = vmatmul.mubr.msk.bf16.vlgmr.msra.gmra.mrb[20].mxu1 %vm459_vm7, %v451_v26 }
 0x181   :  { %1235 = vmatprep.mubr.msk.bf16.mxu1 %vm1638_vm0, %v1637_v1  ;;  %1234 = vmatpush3.bf16.msra.mxu1 %v1295_v28 }
 0x22b   :  { %v289_v29 = vpop.f32.mrb[0].mxu1 }
 0x22c   :  { %v553_v31 = vpack.c.bf16 %v289_v29, %v289_v29  ;;  %v1153_v32 = vpop.f32.mrb[1].mxu1 }
 0x22d   :  { %v292_v33 = vpop.f32.mrb[2].mxu1  ;;  %v1058_v32 = vsub.s32 1, %v1872_v2 }
 0x22e   :  { %v1154_v34 = vpop.f32.mrb[3].mxu1  ;;  %1188 = vmatmul.mubr.msk.bf16.vlgmr.msra.gmra.mrb[0].mxu0 %vm562_vm8, %v553_v31  ;;  %v1063_v33 = vsub.s32 2, %v1872_v2 }
 0x22f   :  { %1192 = vmatpush3.bf16.msra.mxu0 %v1288_v30  ;;  %1193 = vmatprep.mubr.msk.bf16.mxu0 %vm1638_vm0, %v1637_v1  ;;  %v1059_v34 = vrot.slane %v988_v17, %v1058_v32 }
 0x230   :  { %1197 = vmatprep.subr.bf16.mxu0 %v1637_v1 }
 0x233   :  { %v334_v35 = vpop.f32.mrb[4].mxu1 }
 0x234   :  { %v1159_v36 = vpop.f32.mrb[5].mxu1  ;;  %v613_v40 = vpack.c.bf16 %v334_v35, %v334_v35 }
 0x235   :  { %v337_v37 = vpop.f32.mrb[6].mxu1  ;;  %v1064_v36 = vrot.slane %v988_v17, %v1063_v33 }
 0x236   :  { %v1160_v38 = vpop.f32.mrb[7].mxu1 }
 0x23a   :  { %1194 = vmatmul.mubr.msk.bf16.vlgmr.msra.gmra.mrb[0].mxu0 %vm562_vm8, %v613_v40 }
 0x23b   :  { %1198 = vmatpush3.bf16.msra.mxu0 %v1289_v39  ;;  %v393_v41 = vpop.f32.mrb[8].mxu1  ;;  %1199 = vmatprep.mubr.msk.bf16.mxu0 %vm1638_vm0, %v1637_v1 }
 0x23c   :  { %v1165_v42 = vpop.f32.mrb[9].mxu1  ;;  %1203 = vmatprep.subr.bf16.mxu0 %v1637_v1  ;;  %v666_v45 = vpack.c.bf16 %v393_v41, %v393_v41 }
 0x23d   :  { %v396_v43 = vpop.f32.mrb[10].mxu1 }
 0x23e   :  { %v1166_v44 = vpop.f32.mrb[11].mxu1 }
 0x243   :  { %v433_v46 = vpop.f32.mrb[12].mxu1 }
 0x244   :  { %v1171_v48 = vpop.f32.mrb[13].mxu1  ;;  %v719_v56 = vpack.c.bf16 %v433_v46, %v433_v46 }
 0x245   :  { %v436_v49 = vpop.f32.mrb[14].mxu1 }
 0x246   :  { %v1172_v50 = vpop.f32.mrb[15].mxu1  ;;  %1200 = vmatmul.mubr.msk.bf16.vlgmr.msra.gmra.mrb[0].mxu0 %vm562_vm8, %v666_v45 }
 0x247   :  { %1204 = vmatpush3.bf16.msra.mxu0 %v1290_v47  ;;  %1205 = vmatprep.mubr.msk.bf16.mxu0 %vm1638_vm0, %v1637_v1 }
 0x248   :  { %1209 = vmatprep.subr.bf16.mxu0 %v1637_v1 }
 0x24b   :  { %v501_v51 = vpop.f32.mrb[16].mxu1 }
 0x24c   :  { %v1177_v52 = vpop.f32.mrb[17].mxu1  ;;  %v878_v5 = vpack.c.bf16 %v501_v51, %v501_v51 }
 0x24d   :  { %v504_v53 = vpop.f32.mrb[18].mxu1 }
 0x24e   :  { %v1178_v54 = vpop.f32.mrb[19].mxu1 }
 0x252   :  { %1206 = vmatmul.mubr.msk.bf16.vlgmr.msra.gmra.mrb[0].mxu0 %vm562_vm8, %v719_v56 }
 0x253   :  { %1210 = vmatpush3.bf16.msra.mxu0 %v1291_v55  ;;  %1211 = vmatprep.mubr.msk.bf16.mxu0 %vm1638_vm0, %v1637_v1  ;;  %v546_v57 = vpop.f32.mrb[20].mxu1 }
 0x254   :  { %1215 = vmatprep.subr.bf16.mxu0 %v1637_v1  ;;  %v1183_v58 = vpop.f32.mrb[21].mxu1  ;;  %v931_v7 = vpack.c.bf16 %v546_v57, %v546_v57 }
 0x255   :  { %v549_v59 = vpop.f32.mrb[22].mxu1 }
 0x256   :  { %v1184_v60 = vpop.f32.mrb[23].mxu1 }
 0x25e   :  { %1212 = vmatmul.mubr.msk.bf16.vlgmr.msra.gmra.mrb[0].mxu0 %vm562_vm8, %v772_v62 }
 0x25f   :  { %1216 = vmatpush3.bf16.msra.mxu0 %v1292_v63  ;;  %1217 = vmatprep.mubr.msk.bf16.mxu0 %vm1638_vm0, %v1637_v1 }
 0x260   :  { %1221 = vmatprep.subr.bf16.mxu0 %v1637_v1 }
 0x26a   :  { %1218 = vmatmul.mubr.msk.bf16.vlgmr.msra.gmra.mrb[0].mxu0 %vm562_vm8, %v825_v3 }
 0x26b   :  { %1222 = vmatpush3.bf16.msra.mxu0 %v1293_v4  ;;  %1223 = vmatprep.mubr.msk.bf16.mxu0 %vm1638_vm0, %v1637_v1 }
 0x26c   :  { %1227 = vmatprep.subr.bf16.mxu0 %v1637_v1 }
 0x276   :  { %1224 = vmatmul.mubr.msk.bf16.vlgmr.msra.gmra.mrb[0].mxu0 %vm562_vm8, %v878_v5 }
 0x277   :  { %1228 = vmatpush3.bf16.msra.mxu0 %v1294_v6  ;;  %1229 = vmatprep.mubr.msk.bf16.mxu0 %vm1638_vm0, %v1637_v1 }
 0x282   :  { %1230 = vmatmul.mubr.msk.bf16.vlgmr.msra.gmra.mrb[0].mxu0 %vm562_vm8, %v931_v7 }
 0x355   :  { %v977_v9 = vpop.f32.mrb[0].mxu0 }
 0x356   :  { %v1239_v10 = vadd.f32 %v1102_v8, %v977_v9  ;;  %v1231_v11 = vpop.f32.mrb[1].mxu0 }
 0x357   :  { %v980_v12 = vpop.f32.mrb[2].mxu0 }
 0x358   :  { %v984_v13 = vmax.f32 %v1239_v10, 0.0  ;;  %v1232_v14 = vpop.f32.mrb[3].mxu0 }
 0x35a   :  { %v985_v15 = vpack.c.bf16 %v984_v13, %v984_v13 }
 0x35c   :  { %1236 = vmatmul.mubr.msk.bf16.vlgmr.msra.gmra.mrb[24].mxu1 %vm562_vm8, %v985_v15 }
 0x42f   :  { %v1036_v19 = vpop.f32.mrb[24].mxu1 }
 0x430   :  { %v1037_v20 = vadd.f32 %v1036_v19, %v992_v18  ;;  %v1237_v1 = vpop.f32.mrb[25].mxu1 }
 0x431   :  { %v1039_v21 = vpop.f32.mrb[26].mxu1 }
 0x432   :  { %v1238_v22 = vpop.f32.mrb[27].mxu1  ;;  %v1042_v23 = vsel %vm562_vm8, %v1037_v20, 0.0 }
 0x433   :  { %1043 = vadd.xlane.f32.xlu1 %v1042_v23 }
 0x4c0   :  { %v1044_v24 = vpop.xlane.xlu1 %1043 }
 0x4c1   :  { %v1046_v25 = vmul.f32 0.0625, %v1044_v24 }
 0x4c3   :  { %v1047_v26 = vsub.f32 %v1037_v20, %v1046_v25 }
 0x4c5   :  { %v1048_v27 = vmul.f32 %v1047_v26, %v1047_v26 }
 0x4c7   :  { %v1049_v28 = vsel %vm562_vm8, %v1048_v27, 0.0 }
 0x4c8   :  { %1050 = vadd.xlane.f32.xlu0 %v1049_v28 }
 0x555   :  { %v1051_v29 = vpop.xlane.xlu0 %1050 }
 0x556   :  { %v1052_v30 = vmul.f32 0.0625, %v1051_v29 }
 0x558   :  { %v1053_v31 = vadd.f32 1e-05, %v1052_v30 }
 0x55a   :  { %1296 = vrsqrt.f32 %v1053_v31 }
 0x564   :  { %v1297_v35 = vpop.eup %1296 }
 0x565   :  { %v1055_v37 = vmul.f32 %v1297_v35, %v1047_v26 }
 0x567   :  { %v1060_v38 = vmul.f32 %v1059_v34, %v1055_v37 }
 0x569   :  { %v1065_v39 = vadd.f32 %v1064_v36, %v1060_v38 }
 0x56b   :  { %1066 = vst.msk [vmem:[#allocation23] sm:$0xff] %vm562_vm8, %v1065_v39 }
 0x56c   :  { %1595 = shalt.err (!%p1592_p10)
}
 0x56d   :  { %s1596_s11 = scalar_lea.hbm %s1965_s13, 128 }
 0x56e   :  { %p1597_p11 = scmp.ne.s32.totalorder %s1965_s13, %s1596_s11  ;;  %p1600_p12 = scmp.lt.u32.totalorder %s1596_s11, %s1965_s13 }
 0x570   :  { %p1602_p13 = pnand %p1600_p12, %p1597_p11 }
 0x572   :  { %1605 = shalt.err (!%p1602_p13)
}
 0x573   :  { %1076 = dma.vmem_to_hbm [thread:$0]  %s1074_s1, 128, %s1965_s13, [#allocation4]  }
 0x574   :  { %1620 = dma.done.wait [#allocation4], 128  }
 0x575   :  { %1621 = vsyncadd [#allocation4], 4294967168 }
 0x576   :  { %1080 = vsyncpa [#allocation3], 1 }
 0x577   :  { %1081 = vsyncpa [#allocation6], 1 }
 0x578   :  { %1082 = vsyncpa [#allocation9], 1 }
 0x579   :  { %1083 = vsyncpa [#allocation12], 1 }
 0x57a   :  { %1084 = vsyncpa [#allocation15], 1 }
 0x57b   :  { %1085 = vsyncpa [#allocation18], 1 }
 0x57c   :  { %1086 = vsyncpa [#allocation21], 1 }
 0x57d   :  { %1087 = vsyncpa [#allocation4], 1 }

// kernel: _epd_core_pallas.29
= control target key start
LH: loop header
LB: loop body
LE: loop exit
PB: predicated region body
PF: predicated region fallthrough
CT: control target
= control target key end

     0   :  { %10 = vsyncpa [#allocation3], 0  ;;  %s531_s0 = inlined_call_operand.hbm [shape: f32[2,16], index: 0, kind: input, shape index: {}]   ;;  %s532_s1 = inlined_call_operand.hbm [shape: bf16[16,8], index: 1, kind: input, shape index: {}]   ;;  %s533_s2 = inlined_call_operand.hbm [shape: f32[1,8], index: 2, kind: input, shape index: {}]   ;;  %s534_s3 = inlined_call_operand.hbm [shape: bf16[8,8], index: 3, kind: input, shape index: {}]   ;;  %s535_s4 = inlined_call_operand.hbm [shape: f32[3,8], index: 4, kind: input, shape index: {}]   ;;  %s536_s5 = inlined_call_operand.hbm [shape: f32[2,8], index: 5, kind: output, shape index: {}]  }
   0x1   :  { %11 = vsyncpa [#allocation6], 0 }
   0x2   :  { %12 = vsyncpa [#allocation9], 0 }
   0x3   :  { %13 = vsyncpa [#allocation4], 0  ;;  %s416_s18 = smov [#allocation5]   ;;  %s276_s22 = scalar_lea.hbm %s532_s1, 128 }
   0x4   :  { %s29_s19 = sshll.u32 %s416_s18, 4  ;;  %p277_p0 = scmp.ne.s32.totalorder %s532_s1, %s276_s22  ;;  %s30_s19 = int_to_ptr.vmem [resolvable:$true] %s29_s19 }
   0x5   :  { %p280_p1 = scmp.lt.u32.totalorder %s276_s22, %s532_s1 }
   0x7   :  { %p282_p2 = pnand %p280_p1, %p277_p0 }
   0x9   :  { %285 = shalt.err (!%p282_p2)
}
   0xa   :  { %s286_s27 = scalar_lea.vmem %s30_s19, 128  ;;  %p291_p4 = scmp.lt.s32.totalorder %s30_s19, %s30_s19 }
   0xb   :  { %p287_p3 = scmp.ne.s32.totalorder %s30_s19, %s286_s27  ;;  %p292_p5 = scmp.lt.s32.totalorder %s286_s27, %s286_s27 }
   0xd   :  { %p293_p6 = por %p292_p5, %p291_p4 }
   0xf   :  { %p294_p7 = pnand %p293_p6, %p287_p3 }
  0x11   :  { %297 = shalt.err (!%p294_p7)
}
  0x12   :  { %s417_s28 = smov 64   ;;  %s418_s29 = smov 4  }
  0x13   :  { %35 = dma.hbm_to_vmem [thread:$0]  %s532_s1, 128, %s30_s19, [#allocation6], %s417_s28, %s417_s28, %s418_s29  }
  0x14   :  { %s419_s7 = smov [#allocation8]   ;;  %s420_s9 = smov [#allocation2]  }
  0x15   :  { %s52_s8 = sshll.u32 %s419_s7, 4  ;;  %s20_s10 = sshll.u32 %s420_s9, 4  ;;  %s53_s8 = int_to_ptr.vmem [resolvable:$true] %s52_s8  ;;  %s21_s10 = int_to_ptr.vmem [resolvable:$true] %s20_s10 }
  0x16   :  { %s298_s13 = scalar_lea.hbm %s534_s3, 64 }
  0x17   :  { %p299_p8 = scmp.ne.s32.totalorder %s534_s3, %s298_s13  ;;  %p302_p9 = scmp.lt.u32.totalorder %s298_s13, %s534_s3 }
  0x19   :  { %p304_p10 = pnand %p302_p9, %p299_p8 }
  0x1b   :  { %307 = shalt.err (!%p304_p10)
}
  0x1c   :  { %s308_s1 = scalar_lea.vmem %s53_s8, 64  ;;  %p313_p12 = scmp.lt.s32.totalorder %s53_s8, %s53_s8 }
  0x1d   :  { %p309_p11 = scmp.ne.s32.totalorder %s53_s8, %s308_s1  ;;  %p314_p13 = scmp.lt.s32.totalorder %s308_s1, %s308_s1 }
  0x1f   :  { %p315_p0 = por %p314_p13, %p313_p12 }
  0x21   :  { %p316_p1 = pnand %p315_p0, %p309_p11 }
  0x23   :  { %319 = shalt.err (!%p316_p1)
}
  0x24   :  { %55 = dma.hbm_to_vmem [thread:$0]  %s534_s3, 64, %s53_s8, [#allocation9]  }
  0x25   :  { %s320_s22 = scalar_lea.hbm %s531_s0, 32 }
  0x26   :  { %p321_p2 = scmp.ne.s32.totalorder %s531_s0, %s320_s22  ;;  %p324_p3 = scmp.lt.u32.totalorder %s320_s22, %s531_s0 }
  0x28   :  { %p326_p4 = pnand %p324_p3, %p321_p2 }
  0x2a   :  { %329 = shalt.err (!%p326_p4)
}
  0x2b   :  { %s330_s27 = scalar_lea.vmem %s21_s10, 32  ;;  %p335_p6 = scmp.lt.s32.totalorder %s21_s10, %s21_s10 }
  0x2c   :  { %p331_p5 = scmp.ne.s32.totalorder %s21_s10, %s330_s27  ;;  %p336_p7 = scmp.lt.s32.totalorder %s330_s27, %s330_s27 }
  0x2e   :  { %p337_p8 = por %p336_p7, %p335_p6 }
  0x30   :  { %p338_p9 = pnand %p337_p8, %p331_p5 }
  0x32   :  { %341 = shalt.err (!%p338_p9)
}
  0x33   :  { %23 = dma.hbm_to_vmem [thread:$0]  %s531_s0, 32, %s21_s10, [#allocation3]  }
  0x34   :  { %s421_s29 = smov [#allocation7]   ;;  %s422_s6 = smov [#allocation10]  }
  0x35   :  { %s42_s30 = sshll.u32 %s421_s29, 4  ;;  %s62_s7 = sshll.u32 %s422_s6, 4  ;;  %s43_s30 = int_to_ptr.vmem [resolvable:$true] %s42_s30  ;;  %s63_s7 = int_to_ptr.vmem [resolvable:$true] %s62_s7 }
  0x36   :  { %s342_s11 = scalar_lea.hbm %s533_s2, 16 }
  0x37   :  { %p343_p10 = scmp.ne.s32.totalorder %s533_s2, %s342_s11  ;;  %p346_p11 = scmp.lt.u32.totalorder %s342_s11, %s533_s2 }
  0x39   :  { %p348_p12 = pnand %p346_p11, %p343_p10 }
  0x3b   :  { %351 = shalt.err (!%p348_p12)
}
  0x3c   :  { %s352_s0 = scalar_lea.vmem %s43_s30, 16  ;;  %s356_s10 = scalar_lea.vmem %s43_s30, 32 }
  0x3d   :  { %p353_p13 = scmp.ne.s32.totalorder %s43_s30, %s352_s0  ;;  %p357_p0 = scmp.lt.s32.totalorder %s43_s30, %s43_s30 }
  0x3e   :  { %p358_p1 = scmp.lt.s32.totalorder %s356_s10, %s352_s0 }
  0x40   :  { %p359_p2 = por %p358_p1, %p357_p0 }
  0x42   :  { %p360_p3 = pnand %p359_p2, %p353_p13 }
  0x44   :  { %363 = shalt.err (!%p360_p3)
}
  0x45   :  { %45 = dma.hbm_to_vmem [thread:$0]  %s533_s2, 16, %s43_s30, [#allocation6]  }
  0x46   :  { %s364_s19 = scalar_lea.hbm %s535_s4, 64 }
  0x47   :  { %p365_p4 = scmp.ne.s32.totalorder %s535_s4, %s364_s19  ;;  %p368_p5 = scmp.lt.u32.totalorder %s364_s19, %s535_s4 }
  0x49   :  { %p370_p6 = pnand %p368_p5, %p365_p4 }
  0x4b   :  { %373 = shalt.err (!%p370_p6)
}
  0x4c   :  { %s374_s24 = scalar_lea.vmem %s63_s7, 64  ;;  %p379_p8 = scmp.lt.s32.totalorder %s63_s7, %s63_s7 }
  0x4d   :  { %p375_p7 = scmp.ne.s32.totalorder %s63_s7, %s374_s24  ;;  %p380_p9 = scmp.lt.s32.totalorder %s374_s24, %s374_s24 }
  0x4f   :  { %p381_p10 = por %p380_p9, %p379_p8 }
  0x51   :  { %p382_p11 = pnand %p381_p10, %p375_p7 }
  0x53   :  { %385 = shalt.err (!%p382_p11)
}
  0x54   :  { %65 = dma.hbm_to_vmem [thread:$0]  %s535_s4, 64, %s63_s7, [#allocation9]  }
  0x55   :  { %408 = dma.done.wait [#allocation3], 32  }
  0x56   :  { %409 = vsyncadd [#allocation3], 4294967264 }
  0x57   :  { %410 = dma.done.wait [#allocation6], 144  }
  0x58   :  { %411 = vsyncadd [#allocation6], 4294967152 }
  0x59   :  { %412 = dma.done.wait [#allocation9], 128  }
  0x5a   :  { %413 = vsyncadd [#allocation9], 4294967168  ;;  %v423_v0 = vmov 0.0   ;;  %vm424_vm0 = vmmov 0   ;;  %v273_v1 = vld [vmem:[#allocation5] sm:$0xff]   ;;  %vm93_vm1 = vcmask 130048   ;;  %v148_v14 = vlaneseq }
  0x5b   :  { %251 = vmatprep.subr.bf16.mxu0 %v423_v0  ;;  %253 = vmatprep.mubr.msk.bf16.mxu0 %vm424_vm0, %v423_v0  ;;  %v82_v2 = vld [vmem:[#allocation2] sm:$0x3]  ;;  %v146_v4 = vld [vmem:[#allocation8] sm:$0xf]  ;;  %vm156_vm2 = vcmask 1043456   ;;  %vm152_vm3 = vcmask 64512  }
  0x5c   :  { %257 = vmatprep.subr.bf16.mxu1 %v423_v0  ;;  %259 = vmatprep.mubr.msk.bf16.mxu1 %vm424_vm0, %v423_v0  ;;  %v84_v3 = vpack.c.bf16 %v82_v2, %v82_v2  ;;  %v158_v5 = vsel %vm156_vm2, %v146_v4, 0  ;;  %v245_v6 = vld [vmem:[#allocation7] ss:$0 sm:$0xff]  ;;  %v149_v15 = vshrl.u32 %v148_v14, 7  ;;  %v147_v17 = vld [vmem:[#allocation10] sm:$0x7] }
  0x5d   :  { %252 = vmatpush3.bf16.msra.mxu0 %v273_v1  ;;  %258 = vmatpush3.bf16.msra.mxu1 %v158_v5  ;;  %vm200_vm4 = vcmask 58368   ;;  %s425_s4 = smov [#allocation11]  }
  0x5e   :  { %v150_v16 = vsub.s32 0, %v149_v15  ;;  %v217_v33 = vsub.s32 1, %v149_v15  ;;  %v222_v34 = vsub.s32 2, %v149_v15  ;;  %s232_s26 = sshll.u32 %s425_s4, 4  ;;  %s233_s26 = int_to_ptr.vmem [resolvable:$true] %s232_s26 }
  0x5f   :  { %s386_s27 = scalar_lea.vmem %s233_s26, 32  ;;  %p391_p13 = scmp.lt.s32.totalorder %s233_s26, %s233_s26 }
  0x60   :  { %254 = vmatmul.mubr.msk.bf16.vlgmr.msra.gmra.mrb[0].mxu0 %vm93_vm1, %v84_v3  ;;  %v151_v18 = vrot.slane %v147_v17, %v150_v16  ;;  %v218_v35 = vrot.slane %v147_v17, %v217_v33  ;;  %v223_v37 = vrot.slane %v147_v17, %v222_v34  ;;  %p387_p12 = scmp.ne.s32.totalorder %s233_s26, %s386_s27  ;;  %p392_p0 = scmp.lt.s32.totalorder %s386_s27, %s386_s27 }
  0x62   :  { %p393_p1 = por %p392_p0, %p391_p13 }
  0x64   :  { %p394_p2 = pnand %p393_p1, %p387_p12 }
 0x133   :  { %v131_v7 = vpop.f32.mrb[0].mxu0 }
 0x134   :  { %v143_v8 = vadd.f32 %v245_v6, %v131_v7  ;;  %v255_v9 = vpop.f32.mrb[1].mxu0 }
 0x135   :  { %v134_v10 = vpop.f32.mrb[2].mxu0 }
 0x136   :  { %v144_v11 = vmax.f32 %v143_v8, 0.0  ;;  %v256_v12 = vpop.f32.mrb[3].mxu0 }
 0x138   :  { %v145_v13 = vpack.c.bf16 %v144_v11, %v144_v11 }
 0x13a   :  { %260 = vmatmul.mubr.msk.bf16.vlgmr.msra.gmra.mrb[0].mxu1 %vm152_vm3, %v145_v13 }
 0x20d   :  { %v194_v19 = vpop.f32.mrb[0].mxu1 }
 0x20e   :  { %v195_v20 = vadd.f32 %v194_v19, %v151_v18  ;;  %v261_v21 = vpop.f32.mrb[1].mxu1 }
 0x20f   :  { %v197_v22 = vpop.f32.mrb[2].mxu1 }
 0x210   :  { %v262_v23 = vpop.f32.mrb[3].mxu1  ;;  %v201_v24 = vsel %vm200_vm4, %v195_v20, 0.0 }
 0x211   :  { %202 = vadd.xlane.f32.xlu0 %v201_v24 }
 0x29e   :  { %v203_v25 = vpop.xlane.xlu0 %202 }
 0x29f   :  { %v205_v26 = vmul.f32 0.125, %v203_v25 }
 0x2a1   :  { %v206_v27 = vsub.f32 %v195_v20, %v205_v26 }
 0x2a3   :  { %v207_v28 = vmul.f32 %v206_v27, %v206_v27 }
 0x2a5   :  { %v208_v29 = vsel %vm200_vm4, %v207_v28, 0.0 }
 0x2a6   :  { %209 = vadd.xlane.f32.xlu0 %v208_v29 }
 0x333   :  { %v210_v30 = vpop.xlane.xlu0 %209 }
 0x334   :  { %v211_v31 = vmul.f32 0.125, %v210_v30 }
 0x336   :  { %v212_v32 = vadd.f32 1e-05, %v211_v31 }
 0x338   :  { %274 = vrsqrt.f32 %v212_v32 }
 0x342   :  { %v275_v36 = vpop.eup %274 }
 0x343   :  { %v214_v38 = vmul.f32 %v275_v36, %v206_v27 }
 0x345   :  { %v219_v39 = vmul.f32 %v218_v35, %v214_v38 }
 0x347   :  { %v224_v40 = vadd.f32 %v223_v37, %v219_v39 }
 0x349   :  { %225 = vst.msk [vmem:[#allocation11] sm:$0x3] %vm200_vm4, %v224_v40 }
 0x34a   :  { %397 = shalt.err (!%p394_p2)
}
 0x34b   :  { %s398_s29 = scalar_lea.hbm %s536_s5, 32 }
 0x34c   :  { %p399_p3 = scmp.ne.s32.totalorder %s536_s5, %s398_s29  ;;  %p402_p4 = scmp.lt.u32.totalorder %s398_s29, %s536_s5 }
 0x34e   :  { %p404_p5 = pnand %p402_p4, %p399_p3 }
 0x350   :  { %407 = shalt.err (!%p404_p5)
}
 0x351   :  { %235 = dma.vmem_to_hbm [thread:$0]  %s233_s26, 32, %s536_s5, [#allocation4]  }
 0x352   :  { %414 = dma.done.wait [#allocation4], 32  }
 0x353   :  { %415 = vsyncadd [#allocation4], 4294967264 }
 0x354   :  { %239 = vsyncpa [#allocation3], 1 }
 0x355   :  { %240 = vsyncpa [#allocation6], 1 }
 0x356   :  { %241 = vsyncpa [#allocation9], 1 }
 0x357   :  { %242 = vsyncpa [#allocation4], 1 }

// kernel: _epd_core_pallas.19
= control target key start
LH: loop header
LB: loop body
LE: loop exit
PB: predicated region body
PF: predicated region fallthrough
CT: control target
= control target key end

     0   :  { %16 = vsyncpa [#allocation3], 0  ;;  %s1419_s0 = inlined_call_operand.hbm [shape: s32[1,8], index: 0, kind: input, shape index: {}]   ;;  %s1420_s1 = inlined_call_operand.hbm [shape: s32[1,8], index: 1, kind: input, shape index: {}]   ;;  %s1421_s2 = inlined_call_operand.hbm [shape: f32[8,16], index: 2, kind: input, shape index: {}, may-alias: {2,3}]   ;;  %s1422_s3 = inlined_call_operand.hbm [shape: f32[8,16], index: 3, kind: input, shape index: {}, may-alias: {2,3}]   ;;  %s1423_s4 = inlined_call_operand.hbm [shape: f32[8,16], index: 4, kind: input, shape index: {}]   ;;  %s1424_s5 = inlined_call_operand.hbm [shape: f32[2,16], index: 5, kind: input, shape index: {}, may-alias: {5,6}]   ;;  %s1425_s6 = inlined_call_operand.hbm [shape: f32[2,16], index: 6, kind: input, shape index: {}, may-alias: {5,6}]   ;;  %s1426_s7 = inlined_call_operand.hbm [shape: bf16[80,16], index: 7, kind: input, shape index: {}]   ;;  %s1427_s8 = inlined_call_operand.hbm [shape: f32[1,16], index: 8, kind: input, shape index: {}]   ;;  %s1428_s9 = inlined_call_operand.hbm [shape: bf16[16,16], index: 9, kind: input, shape index: {}]   ;;  %s1429_s10 = inlined_call_operand.hbm [shape: f32[3,16], index: 10, kind: input, shape index: {}]   ;;  %s1430_s11 = inlined_call_operand.hbm [shape: f32[8,16], index: 11, kind: output, shape index: {}]  }
   0x1   :  { %17 = vsyncpa [#allocation6], 0 }
   0x2   :  { %18 = vsyncpa [#allocation9], 0 }
   0x3   :  { %19 = vsyncpa [#allocation12], 0 }
   0x4   :  { %20 = vsyncpa [#allocation15], 0 }
   0x5   :  { %21 = vsyncpa [#allocation18], 0 }
   0x6   :  { %22 = vsyncpa [#allocation4], 0  ;;  %s1145_s17 = smov [#allocation5]   ;;  %s1146_s19 = smov [#allocation8]  }
   0x7   :  { %s39_s18 = sshll.u32 %s1145_s17, 4  ;;  %s59_s20 = sshll.u32 %s1146_s19, 4  ;;  %s40_s18 = int_to_ptr.vmem [resolvable:$true] %s39_s18  ;;  %s60_s20 = int_to_ptr.vmem [resolvable:$true] %s59_s20 }
   0x8   :  { %s867_s23 = scalar_lea.hbm %s1420_s1, 16 }
   0x9   :  { %p868_p0 = scmp.ne.s32.totalorder %s1420_s1, %s867_s23  ;;  %p871_p1 = scmp.lt.u32.totalorder %s867_s23, %s1420_s1 }
   0xb   :  { %p873_p2 = pnand %p871_p1, %p868_p0 }
   0xd   :  { %876 = shalt.err (!%p873_p2)
}
   0xe   :  { %s877_s28 = scalar_lea.vmem %s40_s18, 16  ;;  %s881_s29 = scalar_lea.vmem %s40_s18, 32 }
   0xf   :  { %p878_p3 = scmp.ne.s32.totalorder %s40_s18, %s877_s28  ;;  %p882_p4 = scmp.lt.s32.totalorder %s40_s18, %s40_s18 }
  0x10   :  { %p883_p5 = scmp.lt.s32.totalorder %s881_s29, %s877_s28 }
  0x12   :  { %p884_p6 = por %p883_p5, %p882_p4 }
  0x14   :  { %p885_p7 = pnand %p884_p6, %p878_p3 }
  0x16   :  { %888 = shalt.err (!%p885_p7)
}
  0x17   :  { %42 = dma.hbm_to_vmem [thread:$0]  %s1420_s1, 16, %s40_s18, [#allocation6]  }
  0x18   :  { %s889_s15 = scalar_lea.hbm %s1422_s3, 128 }
  0x19   :  { %p890_p8 = scmp.ne.s32.totalorder %s1422_s3, %s889_s15  ;;  %p893_p9 = scmp.lt.u32.totalorder %s889_s15, %s1422_s3 }
  0x1b   :  { %p895_p10 = pnand %p893_p9, %p890_p8 }
  0x1d   :  { %898 = shalt.err (!%p895_p10)
}
  0x1e   :  { %s899_s22 = scalar_lea.vmem %s60_s20, 128  ;;  %p904_p12 = scmp.lt.s32.totalorder %s60_s20, %s60_s20 }
  0x1f   :  { %p900_p11 = scmp.ne.s32.totalorder %s60_s20, %s899_s22  ;;  %p905_p13 = scmp.lt.s32.totalorder %s899_s22, %s899_s22 }
  0x21   :  { %p906_p0 = por %p905_p13, %p904_p12 }
  0x23   :  { %p907_p1 = pnand %p906_p0, %p900_p11 }
  0x25   :  { %910 = shalt.err (!%p907_p1)
}
  0x26   :  { %62 = dma.hbm_to_vmem [thread:$0]  %s1422_s3, 128, %s60_s20, [#allocation9]  }
  0x27   :  { %s1147_s23 = smov [#allocation11]   ;;  %s1148_s25 = smov [#allocation14]  }
  0x28   :  { %s79_s24 = sshll.u32 %s1147_s23, 4  ;;  %s98_s26 = sshll.u32 %s1148_s25, 4  ;;  %s80_s24 = int_to_ptr.vmem [resolvable:$true] %s79_s24  ;;  %s1245_s26 = int_to_ptr.vmem [resolvable:$true] %s98_s26 }
  0x29   :  { %s911_s29 = scalar_lea.hbm %s1424_s5, 32 }
  0x2a   :  { %p912_p2 = scmp.ne.s32.totalorder %s1424_s5, %s911_s29  ;;  %p915_p3 = scmp.lt.u32.totalorder %s911_s29, %s1424_s5 }
  0x2c   :  { %p917_p4 = pnand %p915_p3, %p912_p2 }
  0x2e   :  { %920 = shalt.err (!%p917_p4)
}
  0x2f   :  { %s921_s3 = scalar_lea.vmem %s80_s24, 32  ;;  %p926_p6 = scmp.lt.s32.totalorder %s80_s24, %s80_s24 }
  0x30   :  { %p922_p5 = scmp.ne.s32.totalorder %s80_s24, %s921_s3  ;;  %p927_p7 = scmp.lt.s32.totalorder %s921_s3, %s921_s3 }
  0x32   :  { %p928_p8 = por %p927_p7, %p926_p6 }
  0x34   :  { %p929_p9 = pnand %p928_p8, %p922_p5 }
  0x36   :  { %932 = shalt.err (!%p929_p9)
}
  0x37   :  { %82 = dma.hbm_to_vmem [thread:$0]  %s1424_s5, 32, %s80_s24, [#allocation12]  }
  0x38   :  { %s933_s19 = scalar_lea.hbm %s1426_s7, 640 }
  0x39   :  { %p934_p10 = scmp.ne.s32.totalorder %s1426_s7, %s933_s19  ;;  %p937_p11 = scmp.lt.u32.totalorder %s933_s19, %s1426_s7 }
  0x3b   :  { %p939_p12 = pnand %p937_p11, %p934_p10 }
  0x3d   :  { %942 = shalt.err (!%p939_p12)
}
  0x3e   :  { %s943_s23 = scalar_lea.vmem %s1245_s26, 640  ;;  %p948_p0 = scmp.lt.s32.totalorder %s1245_s26, %s1245_s26 }
  0x3f   :  { %p944_p13 = scmp.ne.s32.totalorder %s1245_s26, %s943_s23  ;;  %p949_p1 = scmp.lt.s32.totalorder %s943_s23, %s943_s23 }
  0x41   :  { %p950_p2 = por %p949_p1, %p948_p0 }
  0x43   :  { %p951_p3 = pnand %p950_p2, %p944_p13 }
  0x45   :  { %954 = shalt.err (!%p951_p3)
}
  0x46   :  { %s1149_s5 = smov 64   ;;  %s1150_s24 = smov 4  }
  0x47   :  { %104 = dma.hbm_to_vmem [thread:$0]  %s1426_s7, 640, %s1245_s26, [#allocation15], %s1149_s5, %s1149_s5, %s1150_s24  }
  0x48   :  { %s1151_s28 = smov [#allocation17]   ;;  %s1152_s30 = smov [#allocation2]  }
  0x49   :  { %s120_s29 = sshll.u32 %s1151_s28, 4  ;;  %s29_s12 = sshll.u32 %s1152_s30, 4  ;;  %s121_s29 = int_to_ptr.vmem [resolvable:$true] %s120_s29  ;;  %s30_s12 = int_to_ptr.vmem [resolvable:$true] %s29_s12 }
  0x4a   :  { %s955_s3 = scalar_lea.hbm %s1428_s9, 128 }
  0x4b   :  { %p956_p4 = scmp.ne.s32.totalorder %s1428_s9, %s955_s3  ;;  %p959_p5 = scmp.lt.u32.totalorder %s955_s3, %s1428_s9 }
  0x4d   :  { %p961_p6 = pnand %p959_p5, %p956_p4 }
  0x4f   :  { %964 = shalt.err (!%p961_p6)
}
  0x50   :  { %s965_s7 = scalar_lea.vmem %s121_s29, 128  ;;  %p970_p8 = scmp.lt.s32.totalorder %s121_s29, %s121_s29 }
  0x51   :  { %p966_p7 = scmp.ne.s32.totalorder %s121_s29, %s965_s7  ;;  %p971_p9 = scmp.lt.s32.totalorder %s965_s7, %s965_s7 }
  0x53   :  { %p972_p10 = por %p971_p9, %p970_p8 }
  0x55   :  { %p973_p11 = pnand %p972_p10, %p966_p7 }
  0x57   :  { %976 = shalt.err (!%p973_p11)
}
  0x58   :  { %126 = dma.hbm_to_vmem [thread:$0]  %s1428_s9, 128, %s121_s29, [#allocation18], %s1149_s5, %s1149_s5, %s1150_s24  }
  0x59   :  { %s977_s1 = scalar_lea.hbm %s1419_s0, 16 }
  0x5a   :  { %p978_p12 = scmp.ne.s32.totalorder %s1419_s0, %s977_s1  ;;  %p981_p13 = scmp.lt.u32.totalorder %s977_s1, %s1419_s0 }
  0x5c   :  { %p983_p0 = pnand %p981_p13, %p978_p12 }
  0x5e   :  { %986 = shalt.err (!%p983_p0)
}
  0x5f   :  { %s987_s28 = scalar_lea.vmem %s30_s12, 16  ;;  %s991_s30 = scalar_lea.vmem %s30_s12, 32 }
  0x60   :  { %p988_p1 = scmp.ne.s32.totalorder %s30_s12, %s987_s28  ;;  %p992_p2 = scmp.lt.s32.totalorder %s30_s12, %s30_s12 }
  0x61   :  { %p993_p3 = scmp.lt.s32.totalorder %s991_s30, %s987_s28 }
  0x63   :  { %p994_p4 = por %p993_p3, %p992_p2 }
  0x65   :  { %p995_p5 = pnand %p994_p4, %p988_p1 }
  0x67   :  { %998 = shalt.err (!%p995_p5)
}
  0x68   :  { %32 = dma.hbm_to_vmem [thread:$0]  %s1419_s0, 16, %s30_s12, [#allocation3]  }
  0x69   :  { %s1153_s24 = smov [#allocation7]   ;;  %s1154_s13 = smov [#allocation10]  }
  0x6a   :  { %s49_s29 = sshll.u32 %s1153_s24, 4  ;;  %s69_s14 = sshll.u32 %s1154_s13, 4  ;;  %s50_s29 = int_to_ptr.vmem [resolvable:$true] %s49_s29  ;;  %s70_s14 = int_to_ptr.vmem [resolvable:$true] %s69_s14 }
  0x6b   :  { %s999_s15 = scalar_lea.hbm %s1421_s2, 128 }
  0x6c   :  { %p1000_p6 = scmp.ne.s32.totalorder %s1421_s2, %s999_s15  ;;  %p1003_p7 = scmp.lt.u32.totalorder %s999_s15, %s1421_s2 }
  0x6e   :  { %p1005_p8 = pnand %p1003_p7, %p1000_p6 }
  0x70   :  { %1008 = shalt.err (!%p1005_p8)
}
  0x71   :  { %s1009_s0 = scalar_lea.vmem %s50_s29, 128  ;;  %p1014_p10 = scmp.lt.s32.totalorder %s50_s29, %s50_s29 }
  0x72   :  { %p1010_p9 = scmp.ne.s32.totalorder %s50_s29, %s1009_s0  ;;  %p1015_p11 = scmp.lt.s32.totalorder %s1009_s0, %s1009_s0 }
  0x74   :  { %p1016_p12 = por %p1015_p11, %p1014_p10 }
  0x76   :  { %p1017_p13 = pnand %p1016_p12, %p1010_p9 }
  0x78   :  { %1020 = shalt.err (!%p1017_p13)
}
  0x79   :  { %52 = dma.hbm_to_vmem [thread:$0]  %s1421_s2, 128, %s50_s29, [#allocation6]  }
  0x7a   :  { %s1021_s1 = scalar_lea.hbm %s1423_s4, 128 }
  0x7b   :  { %p1022_p0 = scmp.ne.s32.totalorder %s1423_s4, %s1021_s1  ;;  %p1025_p1 = scmp.lt.u32.totalorder %s1021_s1, %s1423_s4 }
  0x7d   :  { %p1027_p2 = pnand %p1025_p1, %p1022_p0 }
  0x7f   :  { %1030 = shalt.err (!%p1027_p2)
}
  0x80   :  { %s1031_s28 = scalar_lea.vmem %s70_s14, 128  ;;  %p1036_p4 = scmp.lt.s32.totalorder %s70_s14, %s70_s14 }
  0x81   :  { %p1032_p3 = scmp.ne.s32.totalorder %s70_s14, %s1031_s28  ;;  %p1037_p5 = scmp.lt.s32.totalorder %s1031_s28, %s1031_s28 }
  0x83   :  { %p1038_p6 = por %p1037_p5, %p1036_p4 }
  0x85   :  { %p1039_p7 = pnand %p1038_p6, %p1032_p3 }
  0x87   :  { %1042 = shalt.err (!%p1039_p7)
}
  0x88   :  { %72 = dma.hbm_to_vmem [thread:$0]  %s1423_s4, 128, %s70_s14, [#allocation9]  }
  0x89   :  { %s1155_s9 = smov [#allocation13]   ;;  %s1156_s24 = smov [#allocation16]  }
  0x8a   :  { %s89_s5 = sshll.u32 %s1155_s9, 4  ;;  %s111_s29 = sshll.u32 %s1156_s24, 4  ;;  %s90_s5 = int_to_ptr.vmem [resolvable:$true] %s89_s5  ;;  %s112_s29 = int_to_ptr.vmem [resolvable:$true] %s111_s29 }
  0x8b   :  { %s1043_s20 = scalar_lea.hbm %s1425_s6, 32 }
  0x8c   :  { %p1044_p8 = scmp.ne.s32.totalorder %s1425_s6, %s1043_s20  ;;  %p1047_p9 = scmp.lt.u32.totalorder %s1043_s20, %s1425_s6 }
  0x8e   :  { %p1049_p10 = pnand %p1047_p9, %p1044_p8 }
  0x90   :  { %1052 = shalt.err (!%p1049_p10)
}
  0x91   :  { %s1053_s4 = scalar_lea.vmem %s90_s5, 32  ;;  %p1058_p12 = scmp.lt.s32.totalorder %s90_s5, %s90_s5 }
  0x92   :  { %p1054_p11 = scmp.ne.s32.totalorder %s90_s5, %s1053_s4  ;;  %p1059_p13 = scmp.lt.s32.totalorder %s1053_s4, %s1053_s4 }
  0x94   :  { %p1060_p0 = por %p1059_p13, %p1058_p12 }
  0x96   :  { %p1061_p1 = pnand %p1060_p0, %p1054_p11 }
  0x98   :  { %1064 = shalt.err (!%p1061_p1)
}
  0x99   :  { %92 = dma.hbm_to_vmem [thread:$0]  %s1425_s6, 32, %s90_s5, [#allocation12]  }
  0x9a   :  { %s1065_s19 = scalar_lea.hbm %s1427_s8, 16 }
  0x9b   :  { %p1066_p2 = scmp.ne.s32.totalorder %s1427_s8, %s1065_s19  ;;  %p1069_p3 = scmp.lt.u32.totalorder %s1065_s19, %s1427_s8 }
  0x9d   :  { %p1071_p4 = pnand %p1069_p3, %p1066_p2 }
  0x9f   :  { %1074 = shalt.err (!%p1071_p4)
}
  0xa0   :  { %s1075_s23 = scalar_lea.vmem %s112_s29, 16  ;;  %s1079_s25 = scalar_lea.vmem %s112_s29, 32 }
  0xa1   :  { %p1076_p5 = scmp.ne.s32.totalorder %s112_s29, %s1075_s23  ;;  %p1080_p6 = scmp.lt.s32.totalorder %s112_s29, %s112_s29 }
  0xa2   :  { %p1081_p7 = scmp.lt.s32.totalorder %s1079_s25, %s1075_s23 }
  0xa4   :  { %p1082_p8 = por %p1081_p7, %p1080_p6 }
  0xa6   :  { %p1083_p9 = pnand %p1082_p8, %p1076_p5 }
  0xa8   :  { %1086 = shalt.err (!%p1083_p9)
}
  0xa9   :  { %114 = dma.hbm_to_vmem [thread:$0]  %s1427_s8, 16, %s112_s29, [#allocation15]  }
  0xaa   :  { %s1157_s28 = smov [#allocation19]   ;;  %s1087_s5 = scalar_lea.hbm %s1429_s10, 64 }
  0xab   :  { %s133_s2 = sshll.u32 %s1157_s28, 4  ;;  %p1088_p10 = scmp.ne.s32.totalorder %s1429_s10, %s1087_s5  ;;  %s134_s2 = int_to_ptr.vmem [resolvable:$true] %s133_s2 }
  0xac   :  { %p1091_p11 = scmp.lt.u32.totalorder %s1087_s5, %s1429_s10 }
  0xae   :  { %p1093_p12 = pnand %p1091_p11, %p1088_p10 }
  0xb0   :  { %1096 = shalt.err (!%p1093_p12)
}
  0xb1   :  { %s1097_s15 = scalar_lea.vmem %s134_s2, 64  ;;  %p1102_p0 = scmp.lt.s32.totalorder %s134_s2, %s134_s2 }
  0xb2   :  { %p1098_p13 = scmp.ne.s32.totalorder %s134_s2, %s1097_s15  ;;  %p1103_p1 = scmp.lt.s32.totalorder %s1097_s15, %s1097_s15 }
  0xb4   :  { %p1104_p2 = por %p1103_p1, %p1102_p0 }
  0xb6   :  { %p1105_p3 = pnand %p1104_p2, %p1098_p13 }
  0xb8   :  { %1108 = shalt.err (!%p1105_p3)
}
  0xb9   :  { %136 = dma.hbm_to_vmem [thread:$0]  %s1429_s10, 64, %s134_s2, [#allocation18]  }
  0xba   :  { %1131 = dma.done.wait [#allocation3], 16  }
  0xbb   :  { %1132 = vsyncadd [#allocation3], 4294967280 }
  0xbc   :  { %1133 = dma.done.wait [#allocation6], 144  }
  0xbd   :  { %1134 = vsyncadd [#allocation6], 4294967152 }
  0xbe   :  { %1135 = dma.done.wait [#allocation9], 256  }
  0xbf   :  { %1136 = vsyncadd [#allocation9], 4294967040 }
  0xc0   :  { %1137 = dma.done.wait [#allocation12], 64  }
  0xc1   :  { %1138 = vsyncadd [#allocation12], 4294967232 }
  0xc2   :  { %1139 = dma.done.wait [#allocation15], 656  }
  0xc3   :  { %1140 = vsyncadd [#allocation15], 4294966640 }
  0xc4   :  { %1141 = dma.done.wait [#allocation18], 192  }
  0xc5   :  { %1142 = vsyncadd [#allocation18], 4294967104  ;;  %v172_v0 = vlaneseq  ;;  %v1158_v1 = vmov 0.0   ;;  %vm1159_vm0 = vmmov 0   ;;  %v736_v3 = vld [vmem:[#allocation2] ss:$0 sm:$0xff] }
  0xc6   :  { %771 = vmatprep.subr.bf16.mxu0 %v1158_v1  ;;  %773 = vmatprep.mubr.msk.bf16.mxu0 %vm1159_vm0, %v1158_v1  ;;  %v185_v4 = vld [vmem:[#allocation10] sm:$0xff]  ;;  %vm191_vm1 = vcmask 1043456   ;;  %v733_v5 = vld [vmem:[#allocation5] ss:$0 sm:$0xff]  ;;  %v246_v7 = vld [vmem:[#allocation11] sm:$0x3] }
  0xc7   :  { %789 = vmatprep.subr.bf16.mxu1 %v1158_v1  ;;  %791 = vmatprep.mubr.msk.bf16.mxu1 %vm1159_vm0, %v1158_v1  ;;  %v1366_v2 = vshrl.u32 %v172_v0, 7  ;;  %v186_v6 = vpack.c.bf16 %v185_v4, %v185_v4  ;;  %vm268_vm4 = vcmask 1040384   ;;  %v247_v10 = vpack.c.bf16 %v246_v7, %v246_v7  ;;  %v859_v11 = vld [vmem:[#allocation14] sm:$0xff]   ;;  %v860_v17 = vld [vmem:[#allocation14 + $0x8] sm:$0xff]   ;;  %v861_v21 = vld [vmem:[#allocation14 + $0x10] sm:$0xff]   ;;  %s1160_s10 = smov [#allocation20]  }
  0xc8   :  { %v244_v12 = vld [vmem:[#allocation7] sm:$0xff]  ;;  %vm187_vm5 = vcmask 64512   ;;  %790 = vmatpush3.bf16.msra.mxu1 %v859_v11  ;;  %vm367_vm6 = vcmask 130048   ;;  %v245_v19 = vld [vmem:[#allocation8] sm:$0xff]  ;;  %v312_v22 = vld [vmem:[#allocation13] sm:$0x3] }
  0xc9   :  { %vm240_vm2 = vcmp.eq.s32.totalorder %v1366_v2, %v736_v3  ;;  %vm181_vm3 = vcmp.eq.s32.totalorder %v1366_v2, %v733_v5  ;;  %v193_v14 = vsel %vm191_vm1, %v186_v6, 0  ;;  %v358_v16 = vpack.c.bf16 %v244_v12, %v244_v12  ;;  %795 = vmatprep.subr.bf16.mxu1 %v1158_v1  ;;  %v864_v26 = vld [vmem:[#allocation17] sm:$0xff]   ;;  %v862_v28 = vld [vmem:[#allocation14 + $0x18] sm:$0xff]   ;;  %v863_v34 = vld [vmem:[#allocation14 + $0x20] sm:$0xff]   ;;  %s719_s16 = sshll.u32 %s1160_s10, 4  ;;  %s720_s16 = int_to_ptr.vmem [resolvable:$true] %s719_s16 }
  0xca   :  { %v737_v8 = vsel %vm240_vm2, 1.0, %v1158_v1  ;;  %v734_v9 = vsel %vm181_vm3, 1.0, %v1158_v1  ;;  %772 = vmatpush3.bf16.msra.mxu0 %v193_v14  ;;  %v270_v18 = vsel %vm268_vm4, %v247_v10, 0  ;;  %v418_v20 = vpack.c.bf16 %v245_v19, %v245_v19  ;;  %v742_v44 = vld [vmem:[#allocation16] ss:$0 sm:$0xff]  ;;  %s1109_s17 = scalar_lea.vmem %s720_s16, 128  ;;  %p1114_p5 = scmp.lt.s32.totalorder %s720_s16, %s720_s16 }
  0xcb   :  { %v243_v13 = vpack.c.bf16 %v737_v8, %v737_v8  ;;  %v184_v15 = vpack.c.bf16 %v734_v9, %v734_v9  ;;  %777 = vmatprep.subr.bf16.mxu0 %v1158_v1  ;;  %792 = vmatmul.mubr.msk.bf16.vlgmr.msra.gmra.mrb[0].mxu1 %vm367_vm6, %v358_v16  ;;  %v313_v23 = vpack.c.bf16 %v312_v22, %v312_v22  ;;  %vm264_vm7 = vcmask 15360   ;;  %v634_v53 = vld [vmem:[#allocation19] sm:$0x7]  ;;  %p1110_p4 = scmp.ne.s32.totalorder %s720_s16, %s1109_s17  ;;  %p1115_p6 = scmp.lt.s32.totalorder %s1109_s17, %s1109_s17 }
  0xcc   :  { %796 = vmatpush3.bf16.msra.mxu1 %v860_v17  ;;  %797 = vmatprep.mubr.msk.bf16.mxu1 %vm1159_vm0, %v1158_v1  ;;  %v637_v52 = vsub.s32 0, %v1366_v2  ;;  %v704_v6 = vsub.s32 1, %v1366_v2  ;;  %v709_v7 = vsub.s32 2, %v1366_v2 }
  0xcd   :  { %248 = vxpose.xlu0.c.b16.start.end [1/1] (short) (narrow) %v243_v13, 16  ;;  %774 = vmatmul.mubr.msk.bf16.vlgmr.msra.gmra.mrb[0].mxu0 %vm187_vm5, %v184_v15  ;;  %v315_v24 = vsel %vm268_vm4, %v313_v23, 0  ;;  %p1116_p7 = por %p1115_p6, %p1114_p5 }
  0xce   :  { %778 = vmatpush3.bf16.msra.mxu0 %v270_v18  ;;  %779 = vmatprep.mubr.msk.bf16.mxu0 %vm1159_vm0, %v1158_v1  ;;  %v638_v54 = vrot.slane %v634_v53, %v637_v52  ;;  %v705_v8 = vrot.slane %v634_v53, %v704_v6  ;;  %v710_v10 = vrot.slane %v634_v53, %v709_v7 }
  0xcf   :  { %783 = vmatprep.subr.bf16.mxu0 %v1158_v1  ;;  %801 = vmatprep.subr.bf16.mxu1 %v1158_v1  ;;  %p1117_p8 = pnand %p1116_p7, %p1110_p4 }
  0xd7   :  { %798 = vmatmul.mubr.msk.bf16.vlgmr.msra.gmra.mrb[0].mxu1 %vm367_vm6, %v418_v20 }
  0xd8   :  { %802 = vmatpush3.bf16.msra.mxu1 %v861_v21  ;;  %803 = vmatprep.mubr.msk.bf16.mxu1 %vm1159_vm0, %v1158_v1 }
  0xd9   :  { %807 = vmatprep.subr.bf16.mxu1 %v1158_v1 }
 0x133   :  { %v256_v25 = vpop.trf.xlu0 }
 0x134   :  { %780 = vmatmul.mubr.msk.bf16.vlgmr.msra.gmra.mrb[4].mxu0 %vm264_vm7, %v256_v25 }
 0x135   :  { %784 = vmatpush3.bf16.msra.mxu0 %v315_v24  ;;  %785 = vmatprep.mubr.msk.bf16.mxu0 %vm1159_vm0, %v1158_v1 }
 0x136   :  { %819 = vmatprep.subr.bf16.mxu0 %v1158_v1 }
 0x13c   :  { %786 = vmatmul.mubr.msk.bf16.vlgmr.msra.gmra.mrb[8].mxu0 %vm264_vm7, %v256_v25 }
 0x13d   :  { %821 = vmatprep.mubr.msk.bf16.mxu0 %vm1159_vm0, %v1158_v1  ;;  %820 = vmatpush3.bf16.msra.mxu0 %v864_v26 }
 0x1a0   :  { %v229_v27 = vpop.f32.mrb[0].mxu0 }
 0x1a1   :  { %v471_v29 = vpack.c.bf16 %v229_v27, %v229_v27  ;;  %v775_v30 = vpop.f32.mrb[1].mxu0 }
 0x1a2   :  { %v232_v31 = vpop.f32.mrb[2].mxu0 }
 0x1a3   :  { %v776_v32 = vpop.f32.mrb[3].mxu0  ;;  %804 = vmatmul.mubr.msk.bf16.vlgmr.msra.gmra.mrb[0].mxu1 %vm367_vm6, %v471_v29 }
 0x1a4   :  { %808 = vmatpush3.bf16.msra.mxu1 %v862_v28  ;;  %809 = vmatprep.mubr.msk.bf16.mxu1 %vm1159_vm0, %v1158_v1 }
 0x1a5   :  { %813 = vmatprep.subr.bf16.mxu1 %v1158_v1 }
 0x207   :  { %v306_v33 = vpop.f32.mrb[4].mxu0 }
 0x208   :  { %v524_v35 = vpack.c.bf16 %v306_v33, %v306_v33  ;;  %v781_v36 = vpop.f32.mrb[5].mxu0 }
 0x209   :  { %v309_v37 = vpop.f32.mrb[6].mxu0 }
 0x20a   :  { %v782_v38 = vpop.f32.mrb[7].mxu0  ;;  %810 = vmatmul.mubr.msk.bf16.vlgmr.msra.gmra.mrb[0].mxu1 %vm367_vm6, %v524_v35 }
 0x20b   :  { %814 = vmatpush3.bf16.msra.mxu1 %v863_v34  ;;  %815 = vmatprep.mubr.msk.bf16.mxu1 %vm1159_vm0, %v1158_v1 }
 0x20f   :  { %v351_v39 = vpop.f32.mrb[8].mxu0 }
 0x210   :  { %v787_v40 = vpop.f32.mrb[9].mxu0  ;;  %v577_v43 = vpack.c.bf16 %v351_v39, %v351_v39 }
 0x211   :  { %v354_v41 = vpop.f32.mrb[10].mxu0 }
 0x212   :  { %v788_v42 = vpop.f32.mrb[11].mxu0 }
 0x216   :  { %816 = vmatmul.mubr.msk.bf16.vlgmr.msra.gmra.mrb[0].mxu1 %vm367_vm6, %v577_v43 }
 0x2e9   :  { %v623_v45 = vpop.f32.mrb[0].mxu1 }
 0x2ea   :  { %v825_v46 = vadd.f32 %v742_v44, %v623_v45  ;;  %v817_v47 = vpop.f32.mrb[1].mxu1 }
 0x2eb   :  { %v626_v48 = vpop.f32.mrb[2].mxu1 }
 0x2ec   :  { %v630_v49 = vmax.f32 %v825_v46, 0.0  ;;  %v818_v50 = vpop.f32.mrb[3].mxu1 }
 0x2ee   :  { %v631_v51 = vpack.c.bf16 %v630_v49, %v630_v49 }
 0x2f0   :  { %822 = vmatmul.mubr.msk.bf16.vlgmr.msra.gmra.mrb[12].mxu0 %vm367_vm6, %v631_v51 }
 0x3c3   :  { %v682_v55 = vpop.f32.mrb[12].mxu0 }
 0x3c4   :  { %v683_v56 = vadd.f32 %v682_v55, %v638_v54  ;;  %v823_v57 = vpop.f32.mrb[13].mxu0 }
 0x3c5   :  { %v685_v58 = vpop.f32.mrb[14].mxu0 }
 0x3c6   :  { %v824_v59 = vpop.f32.mrb[15].mxu0  ;;  %v688_v60 = vsel %vm367_vm6, %v683_v56, 0.0 }
 0x3c7   :  { %689 = vadd.xlane.f32.xlu0 %v688_v60 }
 0x454   :  { %v690_v61 = vpop.xlane.xlu0 %689 }
 0x455   :  { %v692_v62 = vmul.f32 0.0625, %v690_v61 }
 0x457   :  { %v693_v63 = vsub.f32 %v683_v56, %v692_v62 }
 0x459   :  { %v694_v0 = vmul.f32 %v693_v63, %v693_v63 }
 0x45b   :  { %v695_v1 = vsel %vm367_vm6, %v694_v0, 0.0 }
 0x45c   :  { %696 = vadd.xlane.f32.xlu1 %v695_v1 }
 0x4e9   :  { %v697_v3 = vpop.xlane.xlu1 %696 }
 0x4ea   :  { %v698_v4 = vmul.f32 0.0625, %v697_v3 }
 0x4ec   :  { %v699_v5 = vadd.f32 1e-05, %v698_v4 }
 0x4ee   :  { %865 = vrsqrt.f32 %v699_v5 }
 0x4f8   :  { %v866_v9 = vpop.eup %865 }
 0x4f9   :  { %v701_v11 = vmul.f32 %v866_v9, %v693_v63 }
 0x4fb   :  { %v706_v12 = vmul.f32 %v705_v8, %v701_v11 }
 0x4fd   :  { %v711_v13 = vadd.f32 %v710_v10, %v706_v12 }
 0x4ff   :  { %712 = vst.msk [vmem:[#allocation20] sm:$0xff] %vm367_vm6, %v711_v13 }
 0x500   :  { %1120 = shalt.err (!%p1117_p8)
}
 0x501   :  { %s1121_s14 = scalar_lea.hbm %s1430_s11, 128 }
 0x502   :  { %p1122_p9 = scmp.ne.s32.totalorder %s1430_s11, %s1121_s14  ;;  %p1125_p10 = scmp.lt.u32.totalorder %s1121_s14, %s1430_s11 }
 0x504   :  { %p1127_p11 = pnand %p1125_p10, %p1122_p9 }
 0x506   :  { %1130 = shalt.err (!%p1127_p11)
}
 0x507   :  { %722 = dma.vmem_to_hbm [thread:$0]  %s720_s16, 128, %s1430_s11, [#allocation4]  }
 0x508   :  { %1143 = dma.done.wait [#allocation4], 128  }
 0x509   :  { %1144 = vsyncadd [#allocation4], 4294967168 }
 0x50a   :  { %726 = vsyncpa [#allocation3], 1 }
 0x50b   :  { %727 = vsyncpa [#allocation6], 1 }
 0x50c   :  { %728 = vsyncpa [#allocation9], 1 }
 0x50d   :  { %729 = vsyncpa [#allocation12], 1 }
 0x50e   :  { %730 = vsyncpa [#allocation15], 1 }
 0x50f   :  { %731 = vsyncpa [#allocation18], 1 }
 0x510   :  { %732 = vsyncpa [#allocation4], 1 }

// kernel: _epd_core_pallas.20
= control target key start
LH: loop header
LB: loop body
LE: loop exit
PB: predicated region body
PF: predicated region fallthrough
CT: control target
= control target key end

     0   :  { %15 = vsyncpa [#allocation3], 0  ;;  %s1203_s0 = inlined_call_operand.hbm [shape: s32[1,8], index: 0, kind: input, shape index: {}]   ;;  %s1204_s1 = inlined_call_operand.hbm [shape: s32[1,8], index: 1, kind: input, shape index: {}]   ;;  %s1205_s2 = inlined_call_operand.hbm [shape: f32[2,16], index: 2, kind: input, shape index: {}, may-alias: {2,3}]   ;;  %s1206_s3 = inlined_call_operand.hbm [shape: f32[2,16], index: 3, kind: input, shape index: {}, may-alias: {2,3}]   ;;  %s1207_s4 = inlined_call_operand.hbm [shape: f32[8,16], index: 4, kind: input, shape index: {}]   ;;  %s1208_s5 = inlined_call_operand.hbm [shape: f32[8,16], index: 5, kind: input, shape index: {}]   ;;  %s1209_s6 = inlined_call_operand.hbm [shape: bf16[64,16], index: 6, kind: input, shape index: {}]   ;;  %s1210_s7 = inlined_call_operand.hbm [shape: f32[1,16], index: 7, kind: input, shape index: {}]   ;;  %s1211_s8 = inlined_call_operand.hbm [shape: bf16[16,16], index: 8, kind: input, shape index: {}]   ;;  %s1212_s9 = inlined_call_operand.hbm [shape: f32[3,16], index: 9, kind: input, shape index: {}]   ;;  %s1213_s10 = inlined_call_operand.hbm [shape: f32[2,16], index: 10, kind: output, shape index: {}]  }
   0x1   :  { %16 = vsyncpa [#allocation6], 0 }
   0x2   :  { %17 = vsyncpa [#allocation9], 0 }
   0x3   :  { %18 = vsyncpa [#allocation12], 0 }
   0x4   :  { %19 = vsyncpa [#allocation15], 0 }
   0x5   :  { %20 = vsyncpa [#allocation18], 0 }
   0x6   :  { %21 = vsyncpa [#allocation4], 0  ;;  %s968_s13 = smov [#allocation5]   ;;  %s969_s15 = smov [#allocation8]  }
   0x7   :  { %s38_s14 = sshll.u32 %s968_s13, 4  ;;  %s58_s16 = sshll.u32 %s969_s15, 4  ;;  %s39_s14 = int_to_ptr.vmem [resolvable:$true] %s38_s14  ;;  %s59_s16 = int_to_ptr.vmem [resolvable:$true] %s58_s16 }
   0x8   :  { %s712_s19 = scalar_lea.hbm %s1204_s1, 16 }
   0x9   :  { %p713_p0 = scmp.ne.s32.totalorder %s1204_s1, %s712_s19  ;;  %p716_p1 = scmp.lt.u32.totalorder %s712_s19, %s1204_s1 }
   0xb   :  { %p718_p2 = pnand %p716_p1, %p713_p0 }
   0xd   :  { %721 = shalt.err (!%p718_p2)
}
   0xe   :  { %s722_s24 = scalar_lea.vmem %s39_s14, 16  ;;  %s726_s25 = scalar_lea.vmem %s39_s14, 32 }
   0xf   :  { %p723_p3 = scmp.ne.s32.totalorder %s39_s14, %s722_s24  ;;  %p727_p4 = scmp.lt.s32.totalorder %s39_s14, %s39_s14 }
  0x10   :  { %p728_p5 = scmp.lt.s32.totalorder %s726_s25, %s722_s24 }
  0x12   :  { %p729_p6 = por %p728_p5, %p727_p4 }
  0x14   :  { %p730_p7 = pnand %p729_p6, %p723_p3 }
  0x16   :  { %733 = shalt.err (!%p730_p7)
}
  0x17   :  { %41 = dma.hbm_to_vmem [thread:$0]  %s1204_s1, 16, %s39_s14, [#allocation6]  }
  0x18   :  { %s734_s30 = scalar_lea.hbm %s1206_s3, 32 }
  0x19   :  { %p735_p8 = scmp.ne.s32.totalorder %s1206_s3, %s734_s30  ;;  %p738_p9 = scmp.lt.u32.totalorder %s734_s30, %s1206_s3 }
  0x1b   :  { %p740_p10 = pnand %p738_p9, %p735_p8 }
  0x1d   :  { %743 = shalt.err (!%p740_p10)
}
  0x1e   :  { %s744_s17 = scalar_lea.vmem %s59_s16, 32  ;;  %p749_p12 = scmp.lt.s32.totalorder %s59_s16, %s59_s16 }
  0x1f   :  { %p745_p11 = scmp.ne.s32.totalorder %s59_s16, %s744_s17  ;;  %p750_p13 = scmp.lt.s32.totalorder %s744_s17, %s744_s17 }
  0x21   :  { %p751_p0 = por %p750_p13, %p749_p12 }
  0x23   :  { %p752_p1 = pnand %p751_p0, %p745_p11 }
  0x25   :  { %755 = shalt.err (!%p752_p1)
}
  0x26   :  { %61 = dma.hbm_to_vmem [thread:$0]  %s1206_s3, 32, %s59_s16, [#allocation9]  }
  0x27   :  { %s970_s18 = smov [#allocation11]   ;;  %s971_s20 = smov [#allocation14]  }
  0x28   :  { %s78_s19 = sshll.u32 %s970_s18, 4  ;;  %s100_s21 = sshll.u32 %s971_s20, 4  ;;  %s79_s19 = int_to_ptr.vmem [resolvable:$true] %s78_s19  ;;  %s101_s21 = int_to_ptr.vmem [resolvable:$true] %s100_s21 }
  0x29   :  { %s756_s24 = scalar_lea.hbm %s1208_s5, 128 }
  0x2a   :  { %p757_p2 = scmp.ne.s32.totalorder %s1208_s5, %s756_s24  ;;  %p760_p3 = scmp.lt.u32.totalorder %s756_s24, %s1208_s5 }
  0x2c   :  { %p762_p4 = pnand %p760_p3, %p757_p2 }
  0x2e   :  { %765 = shalt.err (!%p762_p4)
}
  0x2f   :  { %s766_s3 = scalar_lea.vmem %s79_s19, 128  ;;  %p771_p6 = scmp.lt.s32.totalorder %s79_s19, %s79_s19 }
  0x30   :  { %p767_p5 = scmp.ne.s32.totalorder %s79_s19, %s766_s3  ;;  %p772_p7 = scmp.lt.s32.totalorder %s766_s3, %s766_s3 }
  0x32   :  { %p773_p8 = por %p772_p7, %p771_p6 }
  0x34   :  { %p774_p9 = pnand %p773_p8, %p767_p5 }
  0x36   :  { %777 = shalt.err (!%p774_p9)
}
  0x37   :  { %81 = dma.hbm_to_vmem [thread:$0]  %s1208_s5, 128, %s79_s19, [#allocation12]  }
  0x38   :  { %s778_s12 = scalar_lea.hbm %s1210_s7, 16 }
  0x39   :  { %p779_p10 = scmp.ne.s32.totalorder %s1210_s7, %s778_s12  ;;  %p782_p11 = scmp.lt.u32.totalorder %s778_s12, %s1210_s7 }
  0x3b   :  { %p784_p12 = pnand %p782_p11, %p779_p10 }
  0x3d   :  { %787 = shalt.err (!%p784_p12)
}
  0x3e   :  { %s788_s14 = scalar_lea.vmem %s101_s21, 16  ;;  %s792_s18 = scalar_lea.vmem %s101_s21, 32 }
  0x3f   :  { %p789_p13 = scmp.ne.s32.totalorder %s101_s21, %s788_s14  ;;  %p793_p0 = scmp.lt.s32.totalorder %s101_s21, %s101_s21 }
  0x40   :  { %p794_p1 = scmp.lt.s32.totalorder %s792_s18, %s788_s14 }
  0x42   :  { %p795_p2 = por %p794_p1, %p793_p0 }
  0x44   :  { %p796_p3 = pnand %p795_p2, %p789_p13 }
  0x46   :  { %799 = shalt.err (!%p796_p3)
}
  0x47   :  { %103 = dma.hbm_to_vmem [thread:$0]  %s1210_s7, 16, %s101_s21, [#allocation15]  }
  0x48   :  { %s972_s20 = smov [#allocation2]   ;;  %s973_s23 = smov [#allocation7]  }
  0x49   :  { %s28_s22 = sshll.u32 %s972_s20, 4  ;;  %s48_s24 = sshll.u32 %s973_s23, 4  ;;  %s29_s22 = int_to_ptr.vmem [resolvable:$true] %s28_s22  ;;  %s49_s24 = int_to_ptr.vmem [resolvable:$true] %s48_s24 }
  0x4a   :  { %s800_s27 = scalar_lea.hbm %s1203_s0, 16 }
  0x4b   :  { %p801_p4 = scmp.ne.s32.totalorder %s1203_s0, %s800_s27  ;;  %p804_p5 = scmp.lt.u32.totalorder %s800_s27, %s1203_s0 }
  0x4d   :  { %p806_p6 = pnand %p804_p5, %p801_p4 }
  0x4f   :  { %809 = shalt.err (!%p806_p6)
}
  0x50   :  { %s810_s7 = scalar_lea.vmem %s29_s22, 16  ;;  %s814_s21 = scalar_lea.vmem %s29_s22, 32 }
  0x51   :  { %p811_p7 = scmp.ne.s32.totalorder %s29_s22, %s810_s7  ;;  %p815_p8 = scmp.lt.s32.totalorder %s29_s22, %s29_s22 }
  0x52   :  { %p816_p9 = scmp.lt.s32.totalorder %s814_s21, %s810_s7 }
  0x54   :  { %p817_p10 = por %p816_p9, %p815_p8 }
  0x56   :  { %p818_p11 = pnand %p817_p10, %p811_p7 }
  0x58   :  { %821 = shalt.err (!%p818_p11)
}
  0x59   :  { %31 = dma.hbm_to_vmem [thread:$0]  %s1203_s0, 16, %s29_s22, [#allocation3]  }
  0x5a   :  { %s822_s15 = scalar_lea.hbm %s1205_s2, 32 }
  0x5b   :  { %p823_p12 = scmp.ne.s32.totalorder %s1205_s2, %s822_s15  ;;  %p826_p13 = scmp.lt.u32.totalorder %s822_s15, %s1205_s2 }
  0x5d   :  { %p828_p0 = pnand %p826_p13, %p823_p12 }
  0x5f   :  { %831 = shalt.err (!%p828_p0)
}
  0x60   :  { %s832_s5 = scalar_lea.vmem %s49_s24, 32  ;;  %p837_p2 = scmp.lt.s32.totalorder %s49_s24, %s49_s24 }
  0x61   :  { %p833_p1 = scmp.ne.s32.totalorder %s49_s24, %s832_s5  ;;  %p838_p3 = scmp.lt.s32.totalorder %s832_s5, %s832_s5 }
  0x63   :  { %p839_p4 = por %p838_p3, %p837_p2 }
  0x65   :  { %p840_p5 = pnand %p839_p4, %p833_p1 }
  0x67   :  { %843 = shalt.err (!%p840_p5)
}
  0x68   :  { %51 = dma.hbm_to_vmem [thread:$0]  %s1205_s2, 32, %s49_s24, [#allocation6]  }
  0x69   :  { %s974_s20 = smov [#allocation10]   ;;  %s975_s23 = smov [#allocation13]  }
  0x6a   :  { %s68_s22 = sshll.u32 %s974_s20, 4  ;;  %s87_s25 = sshll.u32 %s975_s23, 4  ;;  %s69_s22 = int_to_ptr.vmem [resolvable:$true] %s68_s22  ;;  %s1110_s25 = int_to_ptr.vmem [resolvable:$true] %s87_s25 }
  0x6b   :  { %s844_s28 = scalar_lea.hbm %s1207_s4, 128 }
  0x6c   :  { %p845_p6 = scmp.ne.s32.totalorder %s1207_s4, %s844_s28  ;;  %p848_p7 = scmp.lt.u32.totalorder %s844_s28, %s1207_s4 }
  0x6e   :  { %p850_p8 = pnand %p848_p7, %p845_p6 }
  0x70   :  { %853 = shalt.err (!%p850_p8)
}
  0x71   :  { %s854_s2 = scalar_lea.vmem %s69_s22, 128  ;;  %p859_p10 = scmp.lt.s32.totalorder %s69_s22, %s69_s22 }
  0x72   :  { %p855_p9 = scmp.ne.s32.totalorder %s69_s22, %s854_s2  ;;  %p860_p11 = scmp.lt.s32.totalorder %s854_s2, %s854_s2 }
  0x74   :  { %p861_p12 = por %p860_p11, %p859_p10 }
  0x76   :  { %p862_p13 = pnand %p861_p12, %p855_p9 }
  0x78   :  { %865 = shalt.err (!%p862_p13)
}
  0x79   :  { %71 = dma.hbm_to_vmem [thread:$0]  %s1207_s4, 128, %s69_s22, [#allocation9]  }
  0x7a   :  { %s866_s12 = scalar_lea.hbm %s1209_s6, 512 }
  0x7b   :  { %p867_p0 = scmp.ne.s32.totalorder %s1209_s6, %s866_s12  ;;  %p870_p1 = scmp.lt.u32.totalorder %s866_s12, %s1209_s6 }
  0x7d   :  { %p872_p2 = pnand %p870_p1, %p867_p0 }
  0x7f   :  { %875 = shalt.err (!%p872_p2)
}
  0x80   :  { %s876_s14 = scalar_lea.vmem %s1110_s25, 512  ;;  %p881_p4 = scmp.lt.s32.totalorder %s1110_s25, %s1110_s25 }
  0x81   :  { %p877_p3 = scmp.ne.s32.totalorder %s1110_s25, %s876_s14  ;;  %p882_p5 = scmp.lt.s32.totalorder %s876_s14, %s876_s14 }
  0x83   :  { %p883_p6 = por %p882_p5, %p881_p4 }
  0x85   :  { %p884_p7 = pnand %p883_p6, %p877_p3 }
  0x87   :  { %887 = shalt.err (!%p884_p7)
}
  0x88   :  { %s976_s4 = smov 64   ;;  %s977_s18 = smov 4  }
  0x89   :  { %93 = dma.hbm_to_vmem [thread:$0]  %s1209_s6, 512, %s1110_s25, [#allocation12], %s976_s4, %s976_s4, %s977_s18  }
  0x8a   :  { %s978_s19 = smov [#allocation16]   ;;  %s979_s22 = smov [#allocation17]  }
  0x8b   :  { %s109_s20 = sshll.u32 %s978_s19, 4  ;;  %s122_s23 = sshll.u32 %s979_s22, 4  ;;  %s110_s20 = int_to_ptr.vmem [resolvable:$true] %s109_s20  ;;  %s123_s23 = int_to_ptr.vmem [resolvable:$true] %s122_s23 }
  0x8c   :  { %s888_s28 = scalar_lea.hbm %s1211_s8, 128 }
  0x8d   :  { %p889_p8 = scmp.ne.s32.totalorder %s1211_s8, %s888_s28  ;;  %p892_p9 = scmp.lt.u32.totalorder %s888_s28, %s1211_s8 }
  0x8f   :  { %p894_p10 = pnand %p892_p9, %p889_p8 }
  0x91   :  { %897 = shalt.err (!%p894_p10)
}
  0x92   :  { %s898_s6 = scalar_lea.vmem %s110_s20, 128  ;;  %p903_p12 = scmp.lt.s32.totalorder %s110_s20, %s110_s20 }
  0x93   :  { %p899_p11 = scmp.ne.s32.totalorder %s110_s20, %s898_s6  ;;  %p904_p13 = scmp.lt.s32.totalorder %s898_s6, %s898_s6 }
  0x95   :  { %p905_p0 = por %p904_p13, %p903_p12 }
  0x97   :  { %p906_p1 = pnand %p905_p0, %p899_p11 }
  0x99   :  { %909 = shalt.err (!%p906_p1)
}
  0x9a   :  { %115 = dma.hbm_to_vmem [thread:$0]  %s1211_s8, 128, %s110_s20, [#allocation15], %s976_s4, %s976_s4, %s977_s18  }
  0x9b   :  { %s910_s30 = scalar_lea.hbm %s1212_s9, 64 }
  0x9c   :  { %p911_p2 = scmp.ne.s32.totalorder %s1212_s9, %s910_s30  ;;  %p914_p3 = scmp.lt.u32.totalorder %s910_s30, %s1212_s9 }
  0x9e   :  { %p916_p4 = pnand %p914_p3, %p911_p2 }
  0xa0   :  { %919 = shalt.err (!%p916_p4)
}
  0xa1   :  { %s920_s17 = scalar_lea.vmem %s123_s23, 64  ;;  %p925_p6 = scmp.lt.s32.totalorder %s123_s23, %s123_s23 }
  0xa2   :  { %p921_p5 = scmp.ne.s32.totalorder %s123_s23, %s920_s17  ;;  %p926_p7 = scmp.lt.s32.totalorder %s920_s17, %s920_s17 }
  0xa4   :  { %p927_p8 = por %p926_p7, %p925_p6 }
  0xa6   :  { %p928_p9 = pnand %p927_p8, %p921_p5 }
  0xa8   :  { %931 = shalt.err (!%p928_p9)
}
  0xa9   :  { %125 = dma.hbm_to_vmem [thread:$0]  %s1212_s9, 64, %s123_s23, [#allocation18]  }
  0xaa   :  { %954 = dma.done.wait [#allocation3], 16  }
  0xab   :  { %955 = vsyncadd [#allocation3], 4294967280 }
  0xac   :  { %956 = dma.done.wait [#allocation6], 48  }
  0xad   :  { %957 = vsyncadd [#allocation6], 4294967248 }
  0xae   :  { %958 = dma.done.wait [#allocation9], 160  }
  0xaf   :  { %959 = vsyncadd [#allocation9], 4294967136 }
  0xb0   :  { %960 = dma.done.wait [#allocation12], 640  }
  0xb1   :  { %961 = vsyncadd [#allocation12], 4294966656 }
  0xb2   :  { %962 = dma.done.wait [#allocation15], 144  }
  0xb3   :  { %963 = vsyncadd [#allocation15], 4294967152 }
  0xb4   :  { %964 = dma.done.wait [#allocation18], 64  }
  0xb5   :  { %965 = vsyncadd [#allocation18], 4294967232  ;;  %v158_v0 = vlaneseq  ;;  %v980_v1 = vmov 0.0   ;;  %vm981_vm0 = vmmov 0   ;;  %v180_v3 = vld [vmem:[#allocation10] sm:$0xff]  ;;  %vm186_vm1 = vcmask 1043456  }
  0xb6   :  { %635 = vmatprep.subr.bf16.mxu1 %v980_v1  ;;  %637 = vmatprep.mubr.msk.bf16.mxu1 %vm981_vm0, %v980_v1  ;;  %v230_v4 = vld [vmem:[#allocation11] sm:$0xff]  ;;  %v604_v5 = vld [vmem:[#allocation2] ss:$0 sm:$0xff]  ;;  %v181_v6 = vpack.c.bf16 %v180_v3, %v180_v3  ;;  %v606_v8 = vld [vmem:[#allocation5] ss:$0 sm:$0xff]  ;;  %vm182_vm3 = vcmask 64512  }
  0xb7   :  { %647 = vmatprep.subr.bf16.mxu0 %v980_v1  ;;  %649 = vmatprep.mubr.msk.bf16.mxu0 %vm981_vm0, %v980_v1  ;;  %v1167_v2 = vshrl.u32 %v158_v0, 7  ;;  %v231_v7 = vpack.c.bf16 %v230_v4, %v230_v4  ;;  %v705_v10 = vld [vmem:[#allocation13] sm:$0xff]   ;;  %v278_v11 = vld [vmem:[#allocation7] sm:$0x3]  ;;  %vm290_vm4 = vcmask 130048   ;;  %v707_v21 = vld [vmem:[#allocation13 + $0x10] sm:$0xff]  }
  0xb8   :  { %v188_v12 = vsel %vm186_vm1, %v181_v6, 0  ;;  %648 = vmatpush3.bf16.msra.mxu0 %v705_v10  ;;  %v281_v14 = vpack.c.bf16 %v278_v11, %v278_v11  ;;  %v706_v16 = vld [vmem:[#allocation13 + $0x8] sm:$0xff]   ;;  %v708_v24 = vld [vmem:[#allocation13 + $0x18] sm:$0xff]   ;;  %v612_v34 = vld [vmem:[#allocation14] ss:$0 sm:$0xff]  ;;  %vm558_vm6 = vcmask 123904  }
  0xb9   :  { %vm167_vm2 = vcmp.eq.s32.totalorder %v1167_v2, %v604_v5  ;;  %636 = vmatpush3.bf16.msra.mxu1 %v188_v12  ;;  %v236_v15 = vsel %vm186_vm1, %v231_v7, 0  ;;  %vm176_vm5 = vcmp.eq.s32.totalorder %v1167_v2, %v606_v8  ;;  %653 = vmatprep.subr.bf16.mxu0 %v980_v1  ;;  %v279_v19 = vld [vmem:[#allocation8] sm:$0x3]  ;;  %v709_v22 = vld [vmem:[#allocation16] sm:$0xff]   ;;  %v507_v42 = vsub.s32 0, %v1167_v2  ;;  %s982_s9 = smov [#allocation19]  }
  0xba   :  { %v605_v9 = vsel %vm167_vm2, 1.0, %v980_v1  ;;  %641 = vmatprep.subr.bf16.mxu1 %v980_v1  ;;  %v607_v17 = vsel %vm176_vm5, 1.0, %v980_v1  ;;  %v341_v20 = vpack.c.bf16 %v279_v19, %v279_v19  ;;  %v504_v43 = vld [vmem:[#allocation17] sm:$0x7]  ;;  %v575_v59 = vsub.s32 1, %v1167_v2  ;;  %s590_s14 = sshll.u32 %s982_s9, 4  ;;  %s591_s14 = int_to_ptr.vmem [resolvable:$true] %s590_s14 }
  0xbb   :  { %v170_v13 = vpack.c.bf16 %v605_v9, %v605_v9  ;;  %650 = vmatmul.mubr.msk.bf16.vlgmr.msra.gmra.mrb[0].mxu0 %vm290_vm4, %v281_v14  ;;  %v179_v18 = vpack.c.bf16 %v607_v17, %v607_v17  ;;  %v508_v44 = vrot.slane %v504_v43, %v507_v42  ;;  %v580_v60 = vsub.s32 2, %v1167_v2  ;;  %s932_s4 = scalar_lea.vmem %s591_s14, 32  ;;  %p937_p11 = scmp.lt.s32.totalorder %s591_s14, %s591_s14 }
  0xbc   :  { %654 = vmatpush3.bf16.msra.mxu0 %v706_v16  ;;  %655 = vmatprep.mubr.msk.bf16.mxu0 %vm981_vm0, %v980_v1  ;;  %v576_v61 = vrot.slane %v504_v43, %v575_v59  ;;  %p933_p10 = scmp.ne.s32.totalorder %s591_s14, %s932_s4  ;;  %p938_p12 = scmp.lt.s32.totalorder %s932_s4, %s932_s4 }
  0xbd   :  { %638 = vmatmul.mubr.msk.bf16.vlgmr.msra.gmra.mrb[0].mxu1 %vm182_vm3, %v170_v13  ;;  %659 = vmatprep.subr.bf16.mxu0 %v980_v1  ;;  %v581_v63 = vrot.slane %v504_v43, %v580_v60 }
  0xbe   :  { %642 = vmatpush3.bf16.msra.mxu1 %v236_v15  ;;  %643 = vmatprep.mubr.msk.bf16.mxu1 %vm981_vm0, %v980_v1  ;;  %p939_p13 = por %p938_p12, %p937_p11 }
  0xbf   :  { %671 = vmatprep.subr.bf16.mxu1 %v980_v1 }
  0xc0   :  { %p940_p0 = pnand %p939_p13, %p933_p10 }
  0xc5   :  { %644 = vmatmul.mubr.msk.bf16.vlgmr.msra.gmra.mrb[4].mxu1 %vm182_vm3, %v179_v18 }
  0xc6   :  { %673 = vmatprep.mubr.msk.bf16.mxu1 %vm981_vm0, %v980_v1  ;;  %672 = vmatpush3.bf16.msra.mxu1 %v709_v22 }
  0xc7   :  { %656 = vmatmul.mubr.msk.bf16.vlgmr.msra.gmra.mrb[0].mxu0 %vm290_vm4, %v341_v20 }
  0xc8   :  { %660 = vmatpush3.bf16.msra.mxu0 %v707_v21  ;;  %661 = vmatprep.mubr.msk.bf16.mxu0 %vm981_vm0, %v980_v1 }
  0xc9   :  { %665 = vmatprep.subr.bf16.mxu0 %v980_v1 }
 0x190   :  { %v224_v23 = vpop.f32.mrb[0].mxu1 }
 0x191   :  { %v394_v25 = vpack.c.bf16 %v224_v23, %v224_v23  ;;  %v639_v26 = vpop.f32.mrb[1].mxu1 }
 0x192   :  { %v227_v27 = vpop.f32.mrb[2].mxu1 }
 0x193   :  { %v640_v28 = vpop.f32.mrb[3].mxu1  ;;  %662 = vmatmul.mubr.msk.bf16.vlgmr.msra.gmra.mrb[0].mxu0 %vm290_vm4, %v394_v25 }
 0x194   :  { %666 = vmatpush3.bf16.msra.mxu0 %v708_v24  ;;  %667 = vmatprep.mubr.msk.bf16.mxu0 %vm981_vm0, %v980_v1 }
 0x198   :  { %v272_v29 = vpop.f32.mrb[4].mxu1 }
 0x199   :  { %v645_v30 = vpop.f32.mrb[5].mxu1  ;;  %v447_v32 = vpack.c.bf16 %v272_v29, %v272_v29 }
 0x19a   :  { %v275_v31 = vpop.f32.mrb[6].mxu1 }
 0x19b   :  { %v646_v33 = vpop.f32.mrb[7].mxu1 }
 0x19f   :  { %668 = vmatmul.mubr.msk.bf16.vlgmr.msra.gmra.mrb[0].mxu0 %vm290_vm4, %v447_v32 }
 0x272   :  { %v493_v35 = vpop.f32.mrb[0].mxu0 }
 0x273   :  { %v677_v36 = vadd.f32 %v612_v34, %v493_v35  ;;  %v669_v37 = vpop.f32.mrb[1].mxu0 }
 0x274   :  { %v496_v38 = vpop.f32.mrb[2].mxu0 }
 0x275   :  { %v500_v39 = vmax.f32 %v677_v36, 0.0  ;;  %v670_v40 = vpop.f32.mrb[3].mxu0 }
 0x277   :  { %v501_v41 = vpack.c.bf16 %v500_v39, %v500_v39 }
 0x279   :  { %674 = vmatmul.mubr.msk.bf16.vlgmr.msra.gmra.mrb[8].mxu1 %vm290_vm4, %v501_v41 }
 0x34c   :  { %v552_v45 = vpop.f32.mrb[8].mxu1 }
 0x34d   :  { %v553_v46 = vadd.f32 %v552_v45, %v508_v44  ;;  %v675_v47 = vpop.f32.mrb[9].mxu1 }
 0x34e   :  { %v555_v48 = vpop.f32.mrb[10].mxu1 }
 0x34f   :  { %v676_v49 = vpop.f32.mrb[11].mxu1  ;;  %v559_v50 = vsel %vm558_vm6, %v553_v46, 0.0 }
 0x350   :  { %560 = vadd.xlane.f32.xlu0 %v559_v50 }
 0x3dd   :  { %v561_v51 = vpop.xlane.xlu0 %560 }
 0x3de   :  { %v563_v52 = vmul.f32 0.0625, %v561_v51 }
 0x3e0   :  { %v564_v53 = vsub.f32 %v553_v46, %v563_v52 }
 0x3e2   :  { %v565_v54 = vmul.f32 %v564_v53, %v564_v53 }
 0x3e4   :  { %v566_v55 = vsel %vm558_vm6, %v565_v54, 0.0 }
 0x3e5   :  { %567 = vadd.xlane.f32.xlu0 %v566_v55 }
 0x472   :  { %v568_v56 = vpop.xlane.xlu0 %567 }
 0x473   :  { %v569_v57 = vmul.f32 0.0625, %v568_v56 }
 0x475   :  { %v570_v58 = vadd.f32 1e-05, %v569_v57 }
 0x477   :  { %710 = vrsqrt.f32 %v570_v58 }
 0x481   :  { %v711_v62 = vpop.eup %710 }
 0x482   :  { %v572_v0 = vmul.f32 %v711_v62, %v564_v53 }
 0x484   :  { %v577_v1 = vmul.f32 %v576_v61, %v572_v0 }
 0x486   :  { %v582_v3 = vadd.f32 %v581_v63, %v577_v1 }
 0x488   :  { %583 = vst.msk [vmem:[#allocation19] sm:$0x3] %vm558_vm6, %v582_v3 }
 0x489   :  { %943 = shalt.err (!%p940_p0)
}
 0x48a   :  { %s944_s0 = scalar_lea.hbm %s1213_s10, 32 }
 0x48b   :  { %p945_p1 = scmp.ne.s32.totalorder %s1213_s10, %s944_s0  ;;  %p948_p2 = scmp.lt.u32.totalorder %s944_s0, %s1213_s10 }
 0x48d   :  { %p950_p3 = pnand %p948_p2, %p945_p1 }
 0x48f   :  { %953 = shalt.err (!%p950_p3)
}
 0x490   :  { %593 = dma.vmem_to_hbm [thread:$0]  %s591_s14, 32, %s1213_s10, [#allocation4]  }
 0x491   :  { %966 = dma.done.wait [#allocation4], 32  }
 0x492   :  { %967 = vsyncadd [#allocation4], 4294967264 }
 0x493   :  { %597 = vsyncpa [#allocation3], 1 }
 0x494   :  { %598 = vsyncpa [#allocation6], 1 }
 0x495   :  { %599 = vsyncpa [#allocation9], 1 }
 0x496   :  { %600 = vsyncpa [#allocation12], 1 }
 0x497   :  { %601 = vsyncpa [#allocation15], 1 }
 0x498   :  { %602 = vsyncpa [#allocation18], 1 }
 0x499   :  { %603 = vsyncpa [#allocation4], 1 }

// kernel: _epd_core_pallas.28
= control target key start
LH: loop header
LB: loop body
LE: loop exit
PB: predicated region body
PF: predicated region fallthrough
CT: control target
= control target key end

     0   :  { %10 = vsyncpa [#allocation3], 0  ;;  %s531_s0 = inlined_call_operand.hbm [shape: f32[8,16], index: 0, kind: input, shape index: {}]   ;;  %s532_s1 = inlined_call_operand.hbm [shape: bf16[16,8], index: 1, kind: input, shape index: {}]   ;;  %s533_s2 = inlined_call_operand.hbm [shape: f32[1,8], index: 2, kind: input, shape index: {}]   ;;  %s534_s3 = inlined_call_operand.hbm [shape: bf16[8,8], index: 3, kind: input, shape index: {}]   ;;  %s535_s4 = inlined_call_operand.hbm [shape: f32[3,8], index: 4, kind: input, shape index: {}]   ;;  %s536_s5 = inlined_call_operand.hbm [shape: f32[8,8], index: 5, kind: output, shape index: {}]  }
   0x1   :  { %11 = vsyncpa [#allocation6], 0 }
   0x2   :  { %12 = vsyncpa [#allocation9], 0 }
   0x3   :  { %13 = vsyncpa [#allocation4], 0  ;;  %s415_s18 = smov [#allocation5]   ;;  %s275_s22 = scalar_lea.hbm %s532_s1, 128 }
   0x4   :  { %s29_s19 = sshll.u32 %s415_s18, 4  ;;  %p276_p0 = scmp.ne.s32.totalorder %s532_s1, %s275_s22  ;;  %s30_s19 = int_to_ptr.vmem [resolvable:$true] %s29_s19 }
   0x5   :  { %p279_p1 = scmp.lt.u32.totalorder %s275_s22, %s532_s1 }
   0x7   :  { %p281_p2 = pnand %p279_p1, %p276_p0 }
   0x9   :  { %284 = shalt.err (!%p281_p2)
}
   0xa   :  { %s285_s27 = scalar_lea.vmem %s30_s19, 128  ;;  %p290_p4 = scmp.lt.s32.totalorder %s30_s19, %s30_s19 }
   0xb   :  { %p286_p3 = scmp.ne.s32.totalorder %s30_s19, %s285_s27  ;;  %p291_p5 = scmp.lt.s32.totalorder %s285_s27, %s285_s27 }
   0xd   :  { %p292_p6 = por %p291_p5, %p290_p4 }
   0xf   :  { %p293_p7 = pnand %p292_p6, %p286_p3 }
  0x11   :  { %296 = shalt.err (!%p293_p7)
}
  0x12   :  { %s416_s28 = smov 64   ;;  %s417_s29 = smov 4  }
  0x13   :  { %35 = dma.hbm_to_vmem [thread:$0]  %s532_s1, 128, %s30_s19, [#allocation6], %s416_s28, %s416_s28, %s417_s29  }
  0x14   :  { %s418_s7 = smov [#allocation8]   ;;  %s419_s9 = smov [#allocation2]  }
  0x15   :  { %s52_s8 = sshll.u32 %s418_s7, 4  ;;  %s20_s10 = sshll.u32 %s419_s9, 4  ;;  %s53_s8 = int_to_ptr.vmem [resolvable:$true] %s52_s8  ;;  %s21_s10 = int_to_ptr.vmem [resolvable:$true] %s20_s10 }
  0x16   :  { %s297_s13 = scalar_lea.hbm %s534_s3, 64 }
  0x17   :  { %p298_p8 = scmp.ne.s32.totalorder %s534_s3, %s297_s13  ;;  %p301_p9 = scmp.lt.u32.totalorder %s297_s13, %s534_s3 }
  0x19   :  { %p303_p10 = pnand %p301_p9, %p298_p8 }
  0x1b   :  { %306 = shalt.err (!%p303_p10)
}
  0x1c   :  { %s307_s1 = scalar_lea.vmem %s53_s8, 64  ;;  %p312_p12 = scmp.lt.s32.totalorder %s53_s8, %s53_s8 }
  0x1d   :  { %p308_p11 = scmp.ne.s32.totalorder %s53_s8, %s307_s1  ;;  %p313_p13 = scmp.lt.s32.totalorder %s307_s1, %s307_s1 }
  0x1f   :  { %p314_p0 = por %p313_p13, %p312_p12 }
  0x21   :  { %p315_p1 = pnand %p314_p0, %p308_p11 }
  0x23   :  { %318 = shalt.err (!%p315_p1)
}
  0x24   :  { %55 = dma.hbm_to_vmem [thread:$0]  %s534_s3, 64, %s53_s8, [#allocation9]  }
  0x25   :  { %s319_s22 = scalar_lea.hbm %s531_s0, 128 }
  0x26   :  { %p320_p2 = scmp.ne.s32.totalorder %s531_s0, %s319_s22  ;;  %p323_p3 = scmp.lt.u32.totalorder %s319_s22, %s531_s0 }
  0x28   :  { %p325_p4 = pnand %p323_p3, %p320_p2 }
  0x2a   :  { %328 = shalt.err (!%p325_p4)
}
  0x2b   :  { %s329_s27 = scalar_lea.vmem %s21_s10, 128  ;;  %p334_p6 = scmp.lt.s32.totalorder %s21_s10, %s21_s10 }
  0x2c   :  { %p330_p5 = scmp.ne.s32.totalorder %s21_s10, %s329_s27  ;;  %p335_p7 = scmp.lt.s32.totalorder %s329_s27, %s329_s27 }
  0x2e   :  { %p336_p8 = por %p335_p7, %p334_p6 }
  0x30   :  { %p337_p9 = pnand %p336_p8, %p330_p5 }
  0x32   :  { %340 = shalt.err (!%p337_p9)
}
  0x33   :  { %23 = dma.hbm_to_vmem [thread:$0]  %s531_s0, 128, %s21_s10, [#allocation3]  }
  0x34   :  { %s420_s29 = smov [#allocation7]   ;;  %s421_s6 = smov [#allocation10]  }
  0x35   :  { %s42_s30 = sshll.u32 %s420_s29, 4  ;;  %s62_s7 = sshll.u32 %s421_s6, 4  ;;  %s43_s30 = int_to_ptr.vmem [resolvable:$true] %s42_s30  ;;  %s63_s7 = int_to_ptr.vmem [resolvable:$true] %s62_s7 }
  0x36   :  { %s341_s11 = scalar_lea.hbm %s533_s2, 16 }
  0x37   :  { %p342_p10 = scmp.ne.s32.totalorder %s533_s2, %s341_s11  ;;  %p345_p11 = scmp.lt.u32.totalorder %s341_s11, %s533_s2 }
  0x39   :  { %p347_p12 = pnand %p345_p11, %p342_p10 }
  0x3b   :  { %350 = shalt.err (!%p347_p12)
}
  0x3c   :  { %s351_s0 = scalar_lea.vmem %s43_s30, 16  ;;  %s355_s10 = scalar_lea.vmem %s43_s30, 32 }
  0x3d   :  { %p352_p13 = scmp.ne.s32.totalorder %s43_s30, %s351_s0  ;;  %p356_p0 = scmp.lt.s32.totalorder %s43_s30, %s43_s30 }
  0x3e   :  { %p357_p1 = scmp.lt.s32.totalorder %s355_s10, %s351_s0 }
  0x40   :  { %p358_p2 = por %p357_p1, %p356_p0 }
  0x42   :  { %p359_p3 = pnand %p358_p2, %p352_p13 }
  0x44   :  { %362 = shalt.err (!%p359_p3)
}
  0x45   :  { %45 = dma.hbm_to_vmem [thread:$0]  %s533_s2, 16, %s43_s30, [#allocation6]  }
  0x46   :  { %s363_s19 = scalar_lea.hbm %s535_s4, 64 }
  0x47   :  { %p364_p4 = scmp.ne.s32.totalorder %s535_s4, %s363_s19  ;;  %p367_p5 = scmp.lt.u32.totalorder %s363_s19, %s535_s4 }
  0x49   :  { %p369_p6 = pnand %p367_p5, %p364_p4 }
  0x4b   :  { %372 = shalt.err (!%p369_p6)
}
  0x4c   :  { %s373_s24 = scalar_lea.vmem %s63_s7, 64  ;;  %p378_p8 = scmp.lt.s32.totalorder %s63_s7, %s63_s7 }
  0x4d   :  { %p374_p7 = scmp.ne.s32.totalorder %s63_s7, %s373_s24  ;;  %p379_p9 = scmp.lt.s32.totalorder %s373_s24, %s373_s24 }
  0x4f   :  { %p380_p10 = por %p379_p9, %p378_p8 }
  0x51   :  { %p381_p11 = pnand %p380_p10, %p374_p7 }
  0x53   :  { %384 = shalt.err (!%p381_p11)
}
  0x54   :  { %65 = dma.hbm_to_vmem [thread:$0]  %s535_s4, 64, %s63_s7, [#allocation9]  }
  0x55   :  { %407 = dma.done.wait [#allocation3], 128  }
  0x56   :  { %408 = vsyncadd [#allocation3], 4294967168 }
  0x57   :  { %409 = dma.done.wait [#allocation6], 144  }
  0x58   :  { %410 = vsyncadd [#allocation6], 4294967152 }
  0x59   :  { %411 = dma.done.wait [#allocation9], 128  }
  0x5a   :  { %412 = vsyncadd [#allocation9], 4294967168  ;;  %v422_v0 = vmov 0.0   ;;  %vm423_vm0 = vmmov 0   ;;  %v272_v1 = vld [vmem:[#allocation5] sm:$0xff]   ;;  %v82_v2 = vld [vmem:[#allocation2] sm:$0xff]  ;;  %v148_v14 = vlaneseq }
  0x5b   :  { %250 = vmatprep.subr.bf16.mxu0 %v422_v0  ;;  %252 = vmatprep.mubr.msk.bf16.mxu0 %vm423_vm0, %v422_v0  ;;  %v84_v3 = vpack.c.bf16 %v82_v2, %v82_v2  ;;  %vm93_vm1 = vcmask 130048   ;;  %v146_v4 = vld [vmem:[#allocation8] sm:$0xf]  ;;  %vm156_vm2 = vcmask 1043456   ;;  %v244_v6 = vld [vmem:[#allocation7] ss:$0 sm:$0xff] }
  0x5c   :  { %256 = vmatprep.subr.bf16.mxu1 %v422_v0  ;;  %258 = vmatprep.mubr.msk.bf16.mxu1 %vm423_vm0, %v422_v0  ;;  %v158_v5 = vsel %vm156_vm2, %v146_v4, 0  ;;  %vm152_vm3 = vcmask 64512   ;;  %v149_v15 = vshrl.u32 %v148_v14, 7  ;;  %v147_v17 = vld [vmem:[#allocation10] sm:$0x7]  ;;  %s424_s4 = smov [#allocation11]  }
  0x5d   :  { %251 = vmatpush3.bf16.msra.mxu0 %v272_v1  ;;  %257 = vmatpush3.bf16.msra.mxu1 %v158_v5  ;;  %s231_s26 = sshll.u32 %s424_s4, 4  ;;  %s232_s26 = int_to_ptr.vmem [resolvable:$true] %s231_s26 }
  0x5e   :  { %v150_v16 = vsub.s32 0, %v149_v15  ;;  %v216_v33 = vsub.s32 1, %v149_v15  ;;  %v221_v34 = vsub.s32 2, %v149_v15  ;;  %s385_s27 = scalar_lea.vmem %s232_s26, 128  ;;  %p390_p13 = scmp.lt.s32.totalorder %s232_s26, %s232_s26 }
  0x5f   :  { %p386_p12 = scmp.ne.s32.totalorder %s232_s26, %s385_s27  ;;  %p391_p0 = scmp.lt.s32.totalorder %s385_s27, %s385_s27 }
  0x60   :  { %253 = vmatmul.mubr.msk.bf16.vlgmr.msra.gmra.mrb[0].mxu0 %vm93_vm1, %v84_v3  ;;  %v151_v18 = vrot.slane %v147_v17, %v150_v16  ;;  %v217_v35 = vrot.slane %v147_v17, %v216_v33  ;;  %v222_v37 = vrot.slane %v147_v17, %v221_v34 }
  0x61   :  { %p392_p1 = por %p391_p0, %p390_p13 }
  0x63   :  { %p393_p2 = pnand %p392_p1, %p386_p12 }
 0x133   :  { %v131_v7 = vpop.f32.mrb[0].mxu0 }
 0x134   :  { %v143_v8 = vadd.f32 %v244_v6, %v131_v7  ;;  %v254_v9 = vpop.f32.mrb[1].mxu0 }
 0x135   :  { %v134_v10 = vpop.f32.mrb[2].mxu0 }
 0x136   :  { %v144_v11 = vmax.f32 %v143_v8, 0.0  ;;  %v255_v12 = vpop.f32.mrb[3].mxu0 }
 0x138   :  { %v145_v13 = vpack.c.bf16 %v144_v11, %v144_v11 }
 0x13a   :  { %259 = vmatmul.mubr.msk.bf16.vlgmr.msra.gmra.mrb[0].mxu1 %vm152_vm3, %v145_v13 }
 0x20d   :  { %v194_v19 = vpop.f32.mrb[0].mxu1 }
 0x20e   :  { %v195_v20 = vadd.f32 %v194_v19, %v151_v18  ;;  %v260_v21 = vpop.f32.mrb[1].mxu1 }
 0x20f   :  { %v197_v22 = vpop.f32.mrb[2].mxu1 }
 0x210   :  { %v261_v23 = vpop.f32.mrb[3].mxu1  ;;  %v200_v24 = vsel %vm152_vm3, %v195_v20, 0.0 }
 0x211   :  { %201 = vadd.xlane.f32.xlu0 %v200_v24 }
 0x29e   :  { %v202_v25 = vpop.xlane.xlu0 %201 }
 0x29f   :  { %v204_v26 = vmul.f32 0.125, %v202_v25 }
 0x2a1   :  { %v205_v27 = vsub.f32 %v195_v20, %v204_v26 }
 0x2a3   :  { %v206_v28 = vmul.f32 %v205_v27, %v205_v27 }
 0x2a5   :  { %v207_v29 = vsel %vm152_vm3, %v206_v28, 0.0 }
 0x2a6   :  { %208 = vadd.xlane.f32.xlu0 %v207_v29 }
 0x333   :  { %v209_v30 = vpop.xlane.xlu0 %208 }
 0x334   :  { %v210_v31 = vmul.f32 0.125, %v209_v30 }
 0x336   :  { %v211_v32 = vadd.f32 1e-05, %v210_v31 }
 0x338   :  { %273 = vrsqrt.f32 %v211_v32 }
 0x342   :  { %v274_v36 = vpop.eup %273 }
 0x343   :  { %v213_v38 = vmul.f32 %v274_v36, %v205_v27 }
 0x345   :  { %v218_v39 = vmul.f32 %v217_v35, %v213_v38 }
 0x347   :  { %v223_v40 = vadd.f32 %v222_v37, %v218_v39 }
 0x349   :  { %224 = vst.msk [vmem:[#allocation11] sm:$0xff] %vm152_vm3, %v223_v40 }
 0x34a   :  { %396 = shalt.err (!%p393_p2)
}
 0x34b   :  { %s397_s29 = scalar_lea.hbm %s536_s5, 128 }
 0x34c   :  { %p398_p3 = scmp.ne.s32.totalorder %s536_s5, %s397_s29  ;;  %p401_p4 = scmp.lt.u32.totalorder %s397_s29, %s536_s5 }
 0x34e   :  { %p403_p5 = pnand %p401_p4, %p398_p3 }
 0x350   :  { %406 = shalt.err (!%p403_p5)
}
 0x351   :  { %234 = dma.vmem_to_hbm [thread:$0]  %s232_s26, 128, %s536_s5, [#allocation4]  }
 0x352   :  { %413 = dma.done.wait [#allocation4], 128  }
 0x353   :  { %414 = vsyncadd [#allocation4], 4294967168 }
 0x354   :  { %238 = vsyncpa [#allocation3], 1 }
 0x355   :  { %239 = vsyncpa [#allocation6], 1 }
 0x356   :  { %240 = vsyncpa [#allocation9], 1 }
 0x357   :  { %241 = vsyncpa [#allocation4], 1 }

</bundles_post_ra>
